<compile_context>
chip_gen: v6e
topology: v6e:2x2x1
jax: 0.10.0
libtpu: 0.0.40
codegen_flags: <defaults>
</compile_context>

<pallas_src>
import functools

import jax
import jax.numpy as jnp
from jax.experimental import pallas as pl
from jax.experimental.pallas import tpu as pltpu


# --------------------------------------------------------------------------
# Per-generation configuration (VMEM limit + classifier tile caps)
# --------------------------------------------------------------------------
def _physical_vmem_bytes():
    try:
        info = pltpu.get_tpu_info()
        for name in ("vmem_capacity_bytes", "vmem_size_bytes", "vmem_bytes"):
            cap = getattr(info, name, None)
            if cap:
                return int(cap)
    except Exception:
        pass
    return 64 * 1024 * 1024          # conservative fallback (v7x-sized)


_PHYS_VMEM = _physical_vmem_bytes()
if _PHYS_VMEM >= 100 * 1024 * 1024:      # v5e / v6e: 128 MiB physical per core
    _VMEM_LIMIT = 96 * 1024 * 1024
    _CLS_TK_CAP = 3584                   # 25088/3584 = 7 K-steps for fc1
    _CLS_TN_CAP = 4096                   # 58.7 MB double-buffered weight slab fits
else:                                    # v7x (64 MiB per core) or unknown chip
    _VMEM_LIMIT = 48 * 1024 * 1024
    _CLS_TK_CAP = 1792
    _CLS_TN_CAP = 2048                   # keep Nout//tn >= 2 for the two TCs


# --------------------------------------------------------------------------
# Conv 3x3 (stride 1, pad 1) + folded BatchNorm + ReLU  --  Pallas kernel
# --------------------------------------------------------------------------
def _conv_kernel(x_ref, w_ref, b_ref, o_ref, pad3_ref, *, H, W, RB, NB):
    # x_ref:    (NB, H, W, Cin)      bf16  input image block (NB images)
    # w_ref:    (3, 3, Cin, TC)      bf16  BN-folded weights, one Cout tile
    # b_ref:    (1, TC)              f32   BN-folded bias, one Cout tile
    # o_ref:    (NB, RB, W, TC)      bf16  one row-block of one Cout tile
    # pad3_ref: (3*NB, H+2, W, Cin)  bf16  scratch: plane kw (kw=0,1,2) holds the
    #           row-padded image shifted so that its column j equals padded
    #           column j+kw; the tap loop below then only slices MAJOR dims.
    Cin = x_ref.shape[-1]
    TC = o_ref.shape[-1]
    r = pl.program_id(2)

    # (Re)build the shifted/padded copies on the first row-block of every
    # (cout-tile, image-block) pair; only the halo border rows are zeroed.
    @pl.when(r == 0)
    def _():
        xv = x_ref[...]                                        # (NB, H, W, Cin)
        zcol = jnp.zeros((NB, H, 1, Cin), xv.dtype)
        pad3_ref[pl.ds(0 * NB, NB), pl.ds(1, H), :, :] = jnp.concatenate(
            [zcol, xv[:, :, : W - 1, :]], axis=2)              # kw = 0 (left)
        pad3_ref[pl.ds(1 * NB, NB), pl.ds(1, H), :, :] = xv    # kw = 1 (center)
        pad3_ref[pl.ds(2 * NB, NB), pl.ds(1, H), :, :] = jnp.concatenate(
            [xv[:, :, 1:, :], zcol], axis=2)                   # kw = 2 (right)
        zrow = jnp.zeros((3 * NB, 1, W, Cin), xv.dtype)
        pad3_ref[:, pl.ds(0, 1), :, :] = zrow                  # top halo row
        pad3_ref[:, pl.ds(H + 1, 1), :, :] = zrow              # bottom halo row

    r0 = r * RB
    acc = None
    for kh in range(3):                      # 9 taps -> 9 MXU matmuls, f32 acc
        for kw in range(3):
            patch = pad3_ref[pl.ds(kw * NB, NB), pl.ds(r0 + kh, RB), :, :]
            d = jnp.dot(patch.reshape(NB * RB * W, Cin), w_ref[kh, kw],
                        preferred_element_type=jnp.float32)
            acc = d if acc is None else acc + d

    acc = acc + b_ref[...]                   # bias once per block (f32 epilogue)
    acc = jnp.maximum(acc, 0.0)              # fused ReLU
    o_ref[...] = acc.reshape(NB, RB, W, TC).astype(o_ref.dtype)


def _conv_blocking(N, H, W):
    # Tiny-spatial tail layers (4x4, 2x2): fold batch into the matmul M so
    # M = N*H*W instead of collapsing to RB*W = 16/4.
    if H * W <= 16:
        return N, H
    rb = max(1, min(H, 256 // max(W, 1)))    # target M = RB*W ~ 256
    while H % rb != 0:
        rb -= 1
    return 1, rb


@functools.lru_cache(maxsize=None)
def _make_conv_call(N, H, W, Cin, Cout, NB, RB, TC):
    n_cout = Cout // TC
    n_img = N // NB
    n_rb = H // RB
    kernel = functools.partial(_conv_kernel, H=H, W=W, RB=RB, NB=NB)
    return pl.pallas_call(
        kernel,
        out_shape=jax.ShapeDtypeStruct((N, H, W, Cout), jnp.bfloat16),
        grid_spec=pltpu.PrefetchScalarGridSpec(
            num_scalar_prefetch=0,
            # Cout tiles outermost: each weight tile is DMA'd exactly once and
            # pipelines against the (cheap) re-fetch of the small activations.
            grid=(n_cout, n_img, n_rb),
            in_specs=[
                pl.BlockSpec((NB, H, W, Cin), lambda c, n, r: (n, 0, 0, 0)),
                pl.BlockSpec((3, 3, Cin, TC), lambda c, n, r: (0, 0, 0, c)),
                pl.BlockSpec((1, TC), lambda c, n, r: (0, c)),
            ],
            out_specs=pl.BlockSpec((NB, RB, W, TC), lambda c, n, r: (n, r, 0, c)),
            scratch_shapes=[pltpu.VMEM((3 * NB, H + 2, W, Cin), jnp.bfloat16)],
        ),
        compiler_params=pltpu.CompilerParams(
            # Cout-tile and image axes are independent (scratch rebuilt at r==0
            # of every (c, n) pair); the row-block axis carries the scratch and
            # must stay sequential -> "arbitrary".
            dimension_semantics=("parallel", "parallel", "arbitrary"),
            vmem_limit_bytes=_VMEM_LIMIT,
        ),
    )


def conv3x3_bn_relu(x, w, b):
    # x: (N, H, W, Cin) bf16 ;  w: (3, 3, Cin, Cout) bf16 ;  b: (Cout,) f32
    N, H, W, Cin = x.shape
    Cout = w.shape[-1]
    NB, RB = _conv_blocking(N, H, W)
    TC = min(Cout, 256)                      # Cout tile (full for 64/128 layers)
    call = _make_conv_call(N, H, W, Cin, Cout, NB, RB, TC)
    return call(x, w, b.reshape(1, Cout).astype(jnp.float32))


# --------------------------------------------------------------------------
# Linear (+ optional ReLU)  --  K-tiled Pallas matmul with VMEM accumulator
# --------------------------------------------------------------------------
def _linear_kernel(x_ref, w_ref, b_ref, o_ref, acc_ref, *, apply_relu):
    k = pl.program_id(1)

    @pl.when(k == 0)
    def _():
        acc_ref[...] = jnp.zeros_like(acc_ref)

    acc_ref[...] += jnp.dot(x_ref[...], w_ref[...],
                            preferred_element_type=jnp.float32)

    @pl.when(k == pl.num_programs(1) - 1)
    def _():
        r = acc_ref[...] + b_ref[...]
        if apply_relu:
            r = jnp.maximum(r, 0.0)          # f32 epilogue (v5e-safe)
        o_ref[...] = r.astype(o_ref.dtype)


def _pick_tile(dim, cap):
    # Tiles must be a multiple of 128 (lane constraint) or the full dimension.
    if dim <= cap:
        return dim
    best = 0
    for t in range(128, cap + 1, 128):
        if dim % t == 0:
            best = t
    if best == 0:
        raise ValueError(
            f"dim={dim} has no 128-multiple tile <= {cap}; pad the dimension")
    return best


@functools.lru_cache(maxsize=None)
def _make_linear_call(M, K, Nout, tk, tn, apply_relu, out_dtype):
    kernel = functools.partial(_linear_kernel, apply_relu=apply_relu)
    return pl.pallas_call(
        kernel,
        out_shape=jax.ShapeDtypeStruct((M, Nout), out_dtype),
        grid_spec=pltpu.PrefetchScalarGridSpec(
            num_scalar_prefetch=0,
            grid=(Nout // tn, K // tk),          # reduction (K) axis last
            in_specs=[
                pl.BlockSpec((M, tk), lambda j, k: (0, k)),
                pl.BlockSpec((tk, tn), lambda j, k: (k, j)),
                pl.BlockSpec((1, tn), lambda j, k: (0, j)),
            ],
            out_specs=pl.BlockSpec((M, tn), lambda j, k: (0, j)),
            scratch_shapes=[pltpu.VMEM((M, tn), jnp.float32)],
        ),
        compiler_params=pltpu.CompilerParams(
            dimension_semantics=("parallel", "arbitrary"),
            vmem_limit_bytes=_VMEM_LIMIT,
        ),
    )


def linear(x, w, b, apply_relu=False, out_dtype=jnp.bfloat16):
    # x: (M, K) bf16 ; w: (K, Nout) bf16 ; b: (Nout,) f32
    M, K = x.shape
    Nout = w.shape[1]
    tk = _pick_tile(K, _CLS_TK_CAP)
    tn = _pick_tile(Nout, _CLS_TN_CAP)
    call = _make_linear_call(M, K, Nout, tk, tn, apply_relu, out_dtype)
    return call(x, w, b.reshape(1, Nout).astype(jnp.float32))


# --------------------------------------------------------------------------
# Cheap glue ops (tiny, memory-bound): pooling stays in plain JAX.
# --------------------------------------------------------------------------
def maxpool2x2(x):
    N, H, W, C = x.shape
    return jnp.max(x.reshape(N, H // 2, 2, W // 2, 2, C), axis=(2, 4))


def adaptive_avg_pool(x, out_hw=7):
    # PyTorch AdaptiveAvgPool2d bin semantics
    N, H, W, C = x.shape
    rows = []
    for i in range(out_hw):
        hs, he = (i * H) // out_hw, -((-(i + 1) * H) // out_hw)
        cols = []
        for j in range(out_hw):
            ws, we = (j * W) // out_hw, -((-(j + 1) * W) // out_hw)
            cols.append(jnp.mean(x[:, hs:he, ws:we, :], axis=(1, 2)))
        rows.append(jnp.stack(cols, axis=1))
    return jnp.stack(rows, axis=1)  # (N, 7, 7, C)


# --------------------------------------------------------------------------
# Parameters (deterministic, synthetic) -- vgg19_bn cfg 'E' + custom classifier
# --------------------------------------------------------------------------
VGG19_CFG = [64, 64, 'M', 128, 128, 'M', 256, 256, 256, 256, 'M',
             512, 512, 512, 512, 'M', 512, 512, 512, 512, 'M']


def init_params(key, num_classes=1000):
    eps = 1e-5
    params = {'features': [], 'classifier': [], 'num_classes': num_classes}
    in_c = 3
    for v in VGG19_CFG:
        if v == 'M':
            params['features'].append('M')
            continue
        key, k1 = jax.random.split(key)
        fan_in, fan_out = in_c * 9, v * 9
        limit = (6.0 / (fan_in + fan_out)) ** 0.5           # xavier uniform
        w = jax.random.uniform(k1, (3, 3, in_c, v), jnp.float32, -limit, limit)
        conv_b = jnp.zeros((v,), jnp.float32)
        # BatchNorm2d (eval mode): gamma=1, beta=0, running_mean=0, running_var=1
        gamma = jnp.ones((v,), jnp.float32)
        beta = jnp.zeros((v,), jnp.float32)
        mean = jnp.zeros((v,), jnp.float32)
        var = jnp.ones((v,), jnp.float32)
        scale = gamma / jnp.sqrt(var + eps)
        w_folded = (w * scale).astype(jnp.bfloat16)          # bf16 MXU operand
        b_folded = (conv_b - mean) * scale + beta            # f32 epilogue bias
        params['features'].append((w_folded, b_folded))
        in_c = v

    # classifier: Linear(512*7*7, 4096) ReLU Dropout Linear(4096,4096) ReLU
    #             Dropout Linear(4096, num_classes) -- init normal(0, 0.01), b=0.
    # (weights generated directly as (in, out); torch stores (out, in), x @ W.T)
    dims = [(512 * 7 * 7, 4096), (4096, 4096), (4096, num_classes)]
    for li, (din, dout) in enumerate(dims):
        key, k1 = jax.random.split(key)
        w = 0.01 * jax.random.normal(k1, (din, dout), jnp.float32)
        b = jnp.zeros((dout,), jnp.float32)
        if li == 2:
            # Lane-dense output for fc3: pad Nout up to a 128 multiple with zero
            # weight/bias columns; the extra logits are sliced off after the call.
            dpad = -(-dout // 128) * 128
            if dpad != dout:
                w = jnp.pad(w, ((0, 0), (0, dpad - dout)))
                b = jnp.pad(b, ((0, dpad - dout),))
        params['classifier'].append((w.astype(jnp.bfloat16), b))
    return params


# --------------------------------------------------------------------------
# Forward pass
# --------------------------------------------------------------------------
def forward(params, x_nchw):
    x = jnp.transpose(x_nchw, (0, 2, 3, 1)).astype(jnp.bfloat16)  # NCHW->NHWC bf16
    for layer in params['features']:
        if layer == 'M':
            x = maxpool2x2(x)
        else:
            w, b = layer
            x = conv3x3_bn_relu(x, w, b)

    x = adaptive_avg_pool(x.astype(jnp.float32), 7)   # (N, 7, 7, 512) f32
    x = jnp.transpose(x, (0, 3, 1, 2))                # back to NCHW flatten order
    x = x.reshape(x.shape[0], -1).astype(jnp.bfloat16)  # (N, 25088) bf16

    (w1, b1), (w2, b2), (w3, b3) = params['classifier']
    x = linear(x, w1, b1, apply_relu=True, out_dtype=jnp.bfloat16)
    # TODO(synk): Dropout implemented as identity (inference mode), no stochastic mask.
    x = linear(x, w2, b2, apply_relu=True, out_dtype=jnp.bfloat16)
    x = linear(x, w3, b3, apply_relu=False, out_dtype=jnp.float32)
    return x[:, : params['num_classes']]              # drop fc3 lane padding


if __name__ == "__main__":
    key = jax.random.PRNGKey(0)
    pkey, xkey = jax.random.split(key)
    params = init_params(pkey, num_classes=1000)
    # Small input consistent with the module: NCHW, 3 channels, 32x32 spatial
    # (32x32 -> 1x1 after the 5 maxpools; AdaptiveAvgPool2d((7,7)) then broadcasts).
    x = jax.random.normal(xkey, (2, 3, 32, 32), jnp.float32)

    out = forward(params, x)
    out = jax.block_until_ready(out)
    assert out.shape == (2, 1000) and out.dtype == jnp.float32
    print("KERNEL_OK")
</pallas_src>

<mosaic_0001>
module attributes {stable_mosaic.version = 11 : i64} {
  func.func @_conv_kernel(%arg0: i32, %arg1: i32, %arg2: i32, %arg3: memref<1x32x32x3xbf16, #tpu.memory_space<vmem>>, %arg4: memref<3x3x3x64xbf16, #tpu.memory_space<vmem>>, %arg5: memref<1x64xf32, #tpu.memory_space<vmem>>, %arg6: memref<1x8x32x64xbf16, #tpu.memory_space<vmem>>, %arg7: memref<3x34x32x3xbf16, #tpu.memory_space<vmem>>) attributes {dimension_semantics = [#tpu.dimension_semantics<parallel>, #tpu.dimension_semantics<parallel>, #tpu.dimension_semantics<arbitrary>], iteration_bounds = array<i64: 1, 2, 4>, scalar_prefetch = 0 : i64, scratch_operands = 1 : i64, tpu.core_type = #tpu.core_type<tc>, window_params = [{transform_indices = @transform_0, window_bounds = array<i64: 1, 32, 32, 3>}, {transform_indices = @transform_1, window_bounds = array<i64: 3, 3, 3, 64>}, {transform_indices = @transform_2, window_bounds = array<i64: 1, 64>}, {transform_indices = @transform_3, window_bounds = array<i64: 1, 8, 32, 64>}]} {
    %c0_i32 = arith.constant 0 : i32
    %0 = arith.cmpi eq, %arg2, %c0_i32 : i32
    %1 = arith.extui %0 : i1 to i32
    %c0_i32_0 = arith.constant 0 : i32
    %2 = arith.cmpi ne, %1, %c0_i32_0 : i32
    scf.if %2 {
      %c0_83 = arith.constant 0 : index
      %c0_84 = arith.constant 0 : index
      %c0_85 = arith.constant 0 : index
      %c0_86 = arith.constant 0 : index
      %83 = vector.load %arg3[%c0_83, %c0_84, %c0_85, %c0_86] : memref<1x32x32x3xbf16, #tpu.memory_space<vmem>>, vector<1x32x32x3xbf16>
      %cst_87 = arith.constant 0.000000e+00 : bf16
      %84 = vector.broadcast %cst_87 : bf16 to vector<1x32x1x3xbf16>
      %85 = vector.extract_strided_slice %83 {offsets = [0, 0, 0, 0], sizes = [1, 32, 31, 3], strides = [1, 1, 1, 1]} : vector<1x32x32x3xbf16> to vector<1x32x31x3xbf16>
      %86 = tpu.concatenate %84, %85 in 2 : vector<1x32x1x3xbf16>, vector<1x32x31x3xbf16> -> vector<1x32x32x3xbf16>
      %c0_88 = arith.constant 0 : index
      %c1_89 = arith.constant 1 : index
      %c0_90 = arith.constant 0 : index
      %c0_91 = arith.constant 0 : index
      %87 = vector.load %arg7[%c0_88, %c1_89, %c0_90, %c0_91] : memref<3x34x32x3xbf16, #tpu.memory_space<vmem>>, vector<1x32x32x3xbf16>
      tpu.vector_store %arg7[%c0_88, %c1_89, %c0_90, %c0_91], %86 {strides = array<i32>} : memref<3x34x32x3xbf16, #tpu.memory_space<vmem>>, vector<1x32x32x3xbf16>,
      %c1_92 = arith.constant 1 : index
      %c1_93 = arith.constant 1 : index
      %c0_94 = arith.constant 0 : index
      %c0_95 = arith.constant 0 : index
      %88 = vector.load %arg7[%c1_92, %c1_93, %c0_94, %c0_95] : memref<3x34x32x3xbf16, #tpu.memory_space<vmem>>, vector<1x32x32x3xbf16>
      tpu.vector_store %arg7[%c1_92, %c1_93, %c0_94, %c0_95], %83 {strides = array<i32>} : memref<3x34x32x3xbf16, #tpu.memory_space<vmem>>, vector<1x32x32x3xbf16>,
      %89 = vector.extract_strided_slice %83 {offsets = [0, 0, 1, 0], sizes = [1, 32, 31, 3], strides = [1, 1, 1, 1]} : vector<1x32x32x3xbf16> to vector<1x32x31x3xbf16>
      %90 = tpu.concatenate %89, %84 in 2 : vector<1x32x31x3xbf16>, vector<1x32x1x3xbf16> -> vector<1x32x32x3xbf16>
      %c2_96 = arith.constant 2 : index
      %c1_97 = arith.constant 1 : index
      %c0_98 = arith.constant 0 : index
      %c0_99 = arith.constant 0 : index
      %91 = vector.load %arg7[%c2_96, %c1_97, %c0_98, %c0_99] : memref<3x34x32x3xbf16, #tpu.memory_space<vmem>>, vector<1x32x32x3xbf16>
      tpu.vector_store %arg7[%c2_96, %c1_97, %c0_98, %c0_99], %90 {strides = array<i32>} : memref<3x34x32x3xbf16, #tpu.memory_space<vmem>>, vector<1x32x32x3xbf16>,
      %cst_100 = arith.constant 0.000000e+00 : bf16
      %92 = vector.broadcast %cst_100 : bf16 to vector<3x1x32x3xbf16>
      %c0_101 = arith.constant 0 : index
      %c0_102 = arith.constant 0 : index
      %c0_103 = arith.constant 0 : index
      %c0_104 = arith.constant 0 : index
      %93 = vector.load %arg7[%c0_101, %c0_102, %c0_103, %c0_104] : memref<3x34x32x3xbf16, #tpu.memory_space<vmem>>, vector<3x1x32x3xbf16>
      tpu.vector_store %arg7[%c0_101, %c0_102, %c0_103, %c0_104], %92 {strides = array<i32>} : memref<3x34x32x3xbf16, #tpu.memory_space<vmem>>, vector<3x1x32x3xbf16>,
      %c0_105 = arith.constant 0 : index
      %c33 = arith.constant 33 : index
      %c0_106 = arith.constant 0 : index
      %c0_107 = arith.constant 0 : index
      %94 = vector.load %arg7[%c0_105, %c33, %c0_106, %c0_107] : memref<3x34x32x3xbf16, #tpu.memory_space<vmem>>, vector<3x1x32x3xbf16>
      tpu.vector_store %arg7[%c0_105, %c33, %c0_106, %c0_107], %92 {strides = array<i32>} : memref<3x34x32x3xbf16, #tpu.memory_space<vmem>>, vector<3x1x32x3xbf16>,
    } else {
    }
    %c8_i32 = arith.constant 8 : i32
    %3 = arith.muli %arg2, %c8_i32 : i32
    %c0_i32_1 = arith.constant 0 : i32
    %4 = arith.addi %3, %c0_i32_1 : i32
    %c0 = arith.constant 0 : index
    %5 = arith.index_cast %4 : i32 to index
    %c0_2 = arith.constant 0 : index
    %c0_3 = arith.constant 0 : index
    %6 = vector.load %arg7[%c0, %5, %c0_2, %c0_3] : memref<3x34x32x3xbf16, #tpu.memory_space<vmem>>, vector<1x8x32x3xbf16>
    %7 = vector.shape_cast %6 : vector<1x8x32x3xbf16> to vector<256x3xbf16>
    %c0_4 = arith.constant 0 : index
    %c0_5 = arith.constant 0 : index
    %c0_6 = arith.constant 0 : index
    %c0_7 = arith.constant 0 : index
    %8 = vector.load %arg4[%c0_4, %c0_5, %c0_6, %c0_7] : memref<3x3x3x64xbf16, #tpu.memory_space<vmem>>, vector<1x1x3x64xbf16>
    %9 = vector.shape_cast %8 : vector<1x1x3x64xbf16> to vector<3x64xbf16>
    %cst = arith.constant dense<0.000000e+00> : vector<256x64xf32>
    %10 = tpu.matmul %7, %9, %cst {dimension_numbers = #tpu.dot_dimension_numbers<[1], [0], [0], [1], [0, 0, 1, 1], [], []>} : vector<256x3xbf16>, vector<3x64xbf16>, vector<256x64xf32> -> vector<256x64xf32>
    %c0_i32_8 = arith.constant 0 : i32
    %11 = arith.addi %3, %c0_i32_8 : i32
    %c1 = arith.constant 1 : index
    %12 = arith.index_cast %11 : i32 to index
    %c0_9 = arith.constant 0 : index
    %c0_10 = arith.constant 0 : index
    %13 = vector.load %arg7[%c1, %12, %c0_9, %c0_10] : memref<3x34x32x3xbf16, #tpu.memory_space<vmem>>, vector<1x8x32x3xbf16>
    %14 = vector.shape_cast %13 : vector<1x8x32x3xbf16> to vector<256x3xbf16>
    %c0_11 = arith.constant 0 : index
    %c1_12 = arith.constant 1 : index
    %c0_13 = arith.constant 0 : index
    %c0_14 = arith.constant 0 : index
    %15 = vector.load %arg4[%c0_11, %c1_12, %c0_13, %c0_14] : memref<3x3x3x64xbf16, #tpu.memory_space<vmem>>, vector<1x1x3x64xbf16>
    %16 = vector.shape_cast %15 : vector<1x1x3x64xbf16> to vector<3x64xbf16>
    %cst_15 = arith.constant dense<0.000000e+00> : vector<256x64xf32>
    %17 = tpu.matmul %14, %16, %cst_15 {dimension_numbers = #tpu.dot_dimension_numbers<[1], [0], [0], [1], [0, 0, 1, 1], [], []>} : vector<256x3xbf16>, vector<3x64xbf16>, vector<256x64xf32> -> vector<256x64xf32>
    %18 = arith.addf %10, %17 : vector<256x64xf32>
    %c0_i32_16 = arith.constant 0 : i32
    %19 = arith.addi %3, %c0_i32_16 : i32
    %c2 = arith.constant 2 : index
    %20 = arith.index_cast %19 : i32 to index
    %c0_17 = arith.constant 0 : index
    %c0_18 = arith.constant 0 : index
    %21 = vector.load %arg7[%c2, %20, %c0_17, %c0_18] : memref<3x34x32x3xbf16, #tpu.memory_space<vmem>>, vector<1x8x32x3xbf16>
    %22 = vector.shape_cast %21 : vector<1x8x32x3xbf16> to vector<256x3xbf16>
    %c0_19 = arith.constant 0 : index
    %c2_20 = arith.constant 2 : index
    %c0_21 = arith.constant 0 : index
    %c0_22 = arith.constant 0 : index
    %23 = vector.load %arg4[%c0_19, %c2_20, %c0_21, %c0_22] : memref<3x3x3x64xbf16, #tpu.memory_space<vmem>>, vector<1x1x3x64xbf16>
    %24 = vector.shape_cast %23 : vector<1x1x3x64xbf16> to vector<3x64xbf16>
    %cst_23 = arith.constant dense<0.000000e+00> : vector<256x64xf32>
    %25 = tpu.matmul %22, %24, %cst_23 {dimension_numbers = #tpu.dot_dimension_numbers<[1], [0], [0], [1], [0, 0, 1, 1], [], []>} : vector<256x3xbf16>, vector<3x64xbf16>, vector<256x64xf32> -> vector<256x64xf32>
    %26 = arith.addf %18, %25 : vector<256x64xf32>
    %c1_i32 = arith.constant 1 : i32
    %27 = arith.addi %3, %c1_i32 : i32
    %c0_24 = arith.constant 0 : index
    %28 = arith.index_cast %27 : i32 to index
    %c0_25 = arith.constant 0 : index
    %c0_26 = arith.constant 0 : index
    %29 = vector.load %arg7[%c0_24, %28, %c0_25, %c0_26] : memref<3x34x32x3xbf16, #tpu.memory_space<vmem>>, vector<1x8x32x3xbf16>
    %30 = vector.shape_cast %29 : vector<1x8x32x3xbf16> to vector<256x3xbf16>
    %c1_27 = arith.constant 1 : index
    %c0_28 = arith.constant 0 : index
    %c0_29 = arith.constant 0 : index
    %c0_30 = arith.constant 0 : index
    %31 = vector.load %arg4[%c1_27, %c0_28, %c0_29, %c0_30] : memref<3x3x3x64xbf16, #tpu.memory_space<vmem>>, vector<1x1x3x64xbf16>
    %32 = vector.shape_cast %31 : vector<1x1x3x64xbf16> to vector<3x64xbf16>
    %cst_31 = arith.constant dense<0.000000e+00> : vector<256x64xf32>
    %33 = tpu.matmul %30, %32, %cst_31 {dimension_numbers = #tpu.dot_dimension_numbers<[1], [0], [0], [1], [0, 0, 1, 1], [], []>} : vector<256x3xbf16>, vector<3x64xbf16>, vector<256x64xf32> -> vector<256x64xf32>
    %34 = arith.addf %26, %33 : vector<256x64xf32>
    %c1_i32_32 = arith.constant 1 : i32
    %35 = arith.addi %3, %c1_i32_32 : i32
    %c1_33 = arith.constant 1 : index
    %36 = arith.index_cast %35 : i32 to index
    %c0_34 = arith.constant 0 : index
    %c0_35 = arith.constant 0 : index
    %37 = vector.load %arg7[%c1_33, %36, %c0_34, %c0_35] : memref<3x34x32x3xbf16, #tpu.memory_space<vmem>>, vector<1x8x32x3xbf16>
    %38 = vector.shape_cast %37 : vector<1x8x32x3xbf16> to vector<256x3xbf16>
    %c1_36 = arith.constant 1 : index
    %c1_37 = arith.constant 1 : index
    %c0_38 = arith.constant 0 : index
    %c0_39 = arith.constant 0 : index
    %39 = vector.load %arg4[%c1_36, %c1_37, %c0_38, %c0_39] : memref<3x3x3x64xbf16, #tpu.memory_space<vmem>>, vector<1x1x3x64xbf16>
    %40 = vector.shape_cast %39 : vector<1x1x3x64xbf16> to vector<3x64xbf16>
    %cst_40 = arith.constant dense<0.000000e+00> : vector<256x64xf32>
    %41 = tpu.matmul %38, %40, %cst_40 {dimension_numbers = #tpu.dot_dimension_numbers<[1], [0], [0], [1], [0, 0, 1, 1], [], []>} : vector<256x3xbf16>, vector<3x64xbf16>, vector<256x64xf32> -> vector<256x64xf32>
    %42 = arith.addf %34, %41 : vector<256x64xf32>
    %c1_i32_41 = arith.constant 1 : i32
    %43 = arith.addi %3, %c1_i32_41 : i32
    %c2_42 = arith.constant 2 : index
    %44 = arith.index_cast %43 : i32 to index
    %c0_43 = arith.constant 0 : index
    %c0_44 = arith.constant 0 : index
    %45 = vector.load %arg7[%c2_42, %44, %c0_43, %c0_44] : memref<3x34x32x3xbf16, #tpu.memory_space<vmem>>, vector<1x8x32x3xbf16>
    %46 = vector.shape_cast %45 : vector<1x8x32x3xbf16> to vector<256x3xbf16>
    %c1_45 = arith.constant 1 : index
    %c2_46 = arith.constant 2 : index
    %c0_47 = arith.constant 0 : index
    %c0_48 = arith.constant 0 : index
    %47 = vector.load %arg4[%c1_45, %c2_46, %c0_47, %c0_48] : memref<3x3x3x64xbf16, #tpu.memory_space<vmem>>, vector<1x1x3x64xbf16>
    %48 = vector.shape_cast %47 : vector<1x1x3x64xbf16> to vector<3x64xbf16>
    %cst_49 = arith.constant dense<0.000000e+00> : vector<256x64xf32>
    %49 = tpu.matmul %46, %48, %cst_49 {dimension_numbers = #tpu.dot_dimension_numbers<[1], [0], [0], [1], [0, 0, 1, 1], [], []>} : vector<256x3xbf16>, vector<3x64xbf16>, vector<256x64xf32> -> vector<256x64xf32>
    %50 = arith.addf %42, %49 : vector<256x64xf32>
    %c2_i32 = arith.constant 2 : i32
    %51 = arith.addi %3, %c2_i32 : i32
    %c0_50 = arith.constant 0 : index
    %52 = arith.index_cast %51 : i32 to index
    %c0_51 = arith.constant 0 : index
    %c0_52 = arith.constant 0 : index
    %53 = vector.load %arg7[%c0_50, %52, %c0_51, %c0_52] : memref<3x34x32x3xbf16, #tpu.memory_space<vmem>>, vector<1x8x32x3xbf16>
    %54 = vector.shape_cast %53 : vector<1x8x32x3xbf16> to vector<256x3xbf16>
    %c2_53 = arith.constant 2 : index
    %c0_54 = arith.constant 0 : index
    %c0_55 = arith.constant 0 : index
    %c0_56 = arith.constant 0 : index
    %55 = vector.load %arg4[%c2_53, %c0_54, %c0_55, %c0_56] : memref<3x3x3x64xbf16, #tpu.memory_space<vmem>>, vector<1x1x3x64xbf16>
    %56 = vector.shape_cast %55 : vector<1x1x3x64xbf16> to vector<3x64xbf16>
    %cst_57 = arith.constant dense<0.000000e+00> : vector<256x64xf32>
    %57 = tpu.matmul %54, %56, %cst_57 {dimension_numbers = #tpu.dot_dimension_numbers<[1], [0], [0], [1], [0, 0, 1, 1], [], []>} : vector<256x3xbf16>, vector<3x64xbf16>, vector<256x64xf32> -> vector<256x64xf32>
    %58 = arith.addf %50, %57 : vector<256x64xf32>
    %c2_i32_58 = arith.constant 2 : i32
    %59 = arith.addi %3, %c2_i32_58 : i32
    %c1_59 = arith.constant 1 : index
    %60 = arith.index_cast %59 : i32 to index
    %c0_60 = arith.constant 0 : index
    %c0_61 = arith.constant 0 : index
    %61 = vector.load %arg7[%c1_59, %60, %c0_60, %c0_61] : memref<3x34x32x3xbf16, #tpu.memory_space<vmem>>, vector<1x8x32x3xbf16>
    %62 = vector.shape_cast %61 : vector<1x8x32x3xbf16> to vector<256x3xbf16>
    %c2_62 = arith.constant 2 : index
    %c1_63 = arith.constant 1 : index
    %c0_64 = arith.constant 0 : index
    %c0_65 = arith.constant 0 : index
    %63 = vector.load %arg4[%c2_62, %c1_63, %c0_64, %c0_65] : memref<3x3x3x64xbf16, #tpu.memory_space<vmem>>, vector<1x1x3x64xbf16>
    %64 = vector.shape_cast %63 : vector<1x1x3x64xbf16> to vector<3x64xbf16>
    %cst_66 = arith.constant dense<0.000000e+00> : vector<256x64xf32>
    %65 = tpu.matmul %62, %64, %cst_66 {dimension_numbers = #tpu.dot_dimension_numbers<[1], [0], [0], [1], [0, 0, 1, 1], [], []>} : vector<256x3xbf16>, vector<3x64xbf16>, vector<256x64xf32> -> vector<256x64xf32>
    %66 = arith.addf %58, %65 : vector<256x64xf32>
    %c2_i32_67 = arith.constant 2 : i32
    %67 = arith.addi %3, %c2_i32_67 : i32
    %c2_68 = arith.constant 2 : index
    %68 = arith.index_cast %67 : i32 to index
    %c0_69 = arith.constant 0 : index
    %c0_70 = arith.constant 0 : index
    %69 = vector.load %arg7[%c2_68, %68, %c0_69, %c0_70] : memref<3x34x32x3xbf16, #tpu.memory_space<vmem>>, vector<1x8x32x3xbf16>
    %70 = vector.shape_cast %69 : vector<1x8x32x3xbf16> to vector<256x3xbf16>
    %c2_71 = arith.constant 2 : index
    %c2_72 = arith.constant 2 : index
    %c0_73 = arith.constant 0 : index
    %c0_74 = arith.constant 0 : index
    %71 = vector.load %arg4[%c2_71, %c2_72, %c0_73, %c0_74] : memref<3x3x3x64xbf16, #tpu.memory_space<vmem>>, vector<1x1x3x64xbf16>
    %72 = vector.shape_cast %71 : vector<1x1x3x64xbf16> to vector<3x64xbf16>
    %cst_75 = arith.constant dense<0.000000e+00> : vector<256x64xf32>
    %73 = tpu.matmul %70, %72, %cst_75 {dimension_numbers = #tpu.dot_dimension_numbers<[1], [0], [0], [1], [0, 0, 1, 1], [], []>} : vector<256x3xbf16>, vector<3x64xbf16>, vector<256x64xf32> -> vector<256x64xf32>
    %74 = arith.addf %66, %73 : vector<256x64xf32>
    %c0_76 = arith.constant 0 : index
    %c0_77 = arith.constant 0 : index
    %75 = vector.load %arg5[%c0_76, %c0_77] : memref<1x64xf32, #tpu.memory_space<vmem>>, vector<1x64xf32>
    %76 = vector.broadcast %75 : vector<1x64xf32> to vector<256x64xf32>
    %77 = arith.addf %74, %76 : vector<256x64xf32>
    %cst_78 = arith.constant 0.000000e+00 : f32
    %78 = vector.broadcast %cst_78 : f32 to vector<256x64xf32>
    %79 = arith.maximumf %77, %78 : vector<256x64xf32>
    %80 = vector.shape_cast %79 : vector<256x64xf32> to vector<1x8x32x64xf32>
    %81 = arith.truncf %80 : vector<1x8x32x64xf32> to vector<1x8x32x64xbf16>
    %c0_79 = arith.constant 0 : index
    %c0_80 = arith.constant 0 : index
    %c0_81 = arith.constant 0 : index
    %c0_82 = arith.constant 0 : index
    %82 = vector.load %arg6[%c0_79, %c0_80, %c0_81, %c0_82] : memref<1x8x32x64xbf16, #tpu.memory_space<vmem>>, vector<1x8x32x64xbf16>
    tpu.vector_store %arg6[%c0_79, %c0_80, %c0_81, %c0_82], %81 {strides = array<i32>} : memref<1x8x32x64xbf16, #tpu.memory_space<vmem>>, vector<1x8x32x64xbf16>,
    return
  }
  func.func @transform_0(%arg0: i32, %arg1: i32, %arg2: i32) -> (i32, i32, i32, i32) {
    %c0_i32 = arith.constant 0 : i32
    %c0_i32_0 = arith.constant 0 : i32
    %c0_i32_1 = arith.constant 0 : i32
    %c0_i32_2 = arith.constant 0 : i32
    return %arg1, %c0_i32, %c0_i32_0, %c0_i32_1 : i32, i32, i32, i32
  }
  func.func @transform_1(%arg0: i32, %arg1: i32, %arg2: i32) -> (i32, i32, i32, i32) {
    %c0_i32 = arith.constant 0 : i32
    %c0_i32_0 = arith.constant 0 : i32
    %c0_i32_1 = arith.constant 0 : i32
    %c0_i32_2 = arith.constant 0 : i32
    return %c0_i32, %c0_i32_0, %c0_i32_1, %arg0 : i32, i32, i32, i32
  }
  func.func @transform_2(%arg0: i32, %arg1: i32, %arg2: i32) -> (i32, i32) {
    %c0_i32 = arith.constant 0 : i32
    %c0_i32_0 = arith.constant 0 : i32
    return %c0_i32, %arg0 : i32, i32
  }
  func.func @transform_3(%arg0: i32, %arg1: i32, %arg2: i32) -> (i32, i32, i32, i32) {
    %c0_i32 = arith.constant 0 : i32
    %c0_i32_0 = arith.constant 0 : i32
    return %arg1, %arg2, %c0_i32, %arg0 : i32, i32, i32, i32
  }
}

</mosaic_0001>

<bundles_post_ra>
// kernel: tpu_custom_call.1
= control target key start
LH: loop header
LB: loop body
LE: loop exit
PB: predicated region body
PF: predicated region fallthrough
CT: control target
= control target key end

     0   :  { %8 = vsyncpa [#allocation4], 0  ;;  %s11106_s0 = inlined_call_operand.vmem [shape: bf16[2,32,32,3], index: 0, kind: input, shape index: {}]   ;;  %s11107_s1 = inlined_call_operand.vmem [shape: bf16[3,3,3,64], index: 1, kind: input, shape index: {}]   ;;  %s11108_s2 = inlined_call_operand.vmem [shape: f32[1,64], index: 2, kind: input, shape index: {}]   ;;  %s11109_s3 = inlined_call_operand.hbm [shape: bf16[2,32,32,64], index: 3, kind: output, shape index: {}]  }
   0x1   :  { %10 = vsyncpa [#allocation4 + $0x1], 0  ;;  %s8140_s12 = smov 0   ;;  %s8142_s13 = smov 0  }
   0x2   :  { %s8144_s14 = smov 0   ;;  %s8146_s15 = smov 0  }
   0x3   :  { %s8148_s16 = smov 0   ;;  %s8150_s17 = smov 0  }
   0x4   :  { %s8152_s18 = smov 0   ;;  %s8154_s19 = smov 0  }
   0x5 LB: > { %s6283_s20 = sadd.s32 4294967295, %s8113_s19   ;;  %s6284_s21 = sadd.s32 4294967294, %s8113_s19   ;;  %s8113_s19 = sphi %s8154_s19, %s16_s19   ;;  %s8109_s18 = sphi %s8152_s18, %s11619_s18   ;;  %s8105_s17 = sphi %s8150_s17, %s11618_s17   ;;  %s8101_s16 = sphi %s8148_s16, %s11617_s16   ;;  %s8097_s15 = sphi %s8146_s15, %s11616_s15   ;;  %s8093_s14 = sphi %s8144_s14, %s11615_s14   ;;  %s8089_s13 = sphi %s8142_s13, %s11614_s13   ;;  %s8085_s12 = sphi %s8140_s12, %s11613_s12  }
   0x6   : > { %s28_s22 = sadd.s32 1, %s8105_s17  ;;  %s31_s23 = sadd.s32 1, %s8109_s18 }
   0x7   : > { %p29_p0 = scmp.ge.s32.totalorder %s28_s22, 4  ;;  %p134_p1 = scmp.ne.s32.totalorder %s8093_s14, %s8089_s13 }
   0x8   : > { %p135_p2 = scmp.eq.s32.totalorder %s6283_s20, 7  ;;  %p140_p5 = scmp.ne.s32.totalorder %s8089_s13, %s8085_s12 }
   0x9   : > { %s11621_s22 = smov (%p29_p0, %s28_s22), 0  ;;  %s11623_s23 = smov (!%p29_p0, %s31_s23), %s8109_s18 }
   0xa   : > { %s118_s24 = ssub.s32 %s8105_s17, %s11621_s22  ;;  %p8191_p3 = por %p135_p2, %p134_p1 }
   0xb   : > { %p33_p4 = scmp.ge.s32.totalorder %s11623_s23, 2  ;;  %p141_p6 = scmp.eq.s32.totalorder %s6284_s21, 7 }
   0xc   : > { %p6289_p7 = scmp.ge.s32.totalorder %s8113_s19, 1  ;;  %p180_p9 = scmp.lt.s32.totalorder %s8113_s19, 9 }
   0xd   : > { %s11625_s23 = smov (%p33_p4, %s11623_s23), 0  ;;  %p8200_p8 = por %p141_p6, %p140_p5 }
   0xe   : > { %s117_s27 = ssub.s32 %s8109_s18, %s11625_s23  ;;  %s124_s28 = sadd.s32 1, %s8093_s14 }
   0xf   : > { %s119_s29 = sor.u32 %s118_s24, %s117_s27  ;;  %p181_p10 = pnand %p6289_p7, %p180_p9 }
  0x10   : > { %p122_p11 = scmp.eq.s32.totalorder %s119_s29, 0 }
  0x11   : > { %184 = sbr.rel (%p181_p10) target bundleno = 872 (0x368), region = 32 }
  0x12   : > { %s8209_s30 = scalar_select %p122_p11, %s8093_s14, %s124_s28  }
  0x16   : > { %s208_s4 = sand.u32 1, %s8089_s13   ;;  %p211_p12 = scmp.lt.s32.totalorder %s8101_s16, 1 }
  0x17   : > { %s6290_s5 = sshll.u32 %s208_s4, 7  ;;  %p6293_p13 = scmp.ne.s32.totalorder %s8097_s15, 0 }
  0x18   : > { %s212_s6 = scalar_select %p211_p12, %s8101_s16, 1 }
  0x19   : > { %s8221_s11 = scalar_lea.vmem [#allocation3], %s6290_s5  ;;  %228 = sbr.rel (%p6293_p13) target bundleno = 360 (0x168), region = 36 }
  0x1a   : > { %s7229_s7 = sshll.u32 %s212_s6, 9 }
  0x1b   : > { %s8219_s10 = scalar_lea.vmem %s11106_s0, %s7229_s7 }
  0x1e   : > { %v229_v0 = vld [vmem:[%s8219_s10] sm:$0xf]  ;;  %v230_v1 = vld [vmem:[%s8219_s10 + $0x4] sm:$0xf]  ;;  %vm677_vm0 = vsmask.f32 256 }
  0x1f   : > { %v8226_v2 = vcombine.low %v229_v0, %v230_v1  ;;  %vm1641_vm1 = vcmask 19456   ;;  %v231_v3 = vld [vmem:[%s8219_s10 + $0x8] sm:$0xf]  ;;  %v232_v4 = vld [vmem:[%s8219_s10 + $0xc] sm:$0xf]  ;;  %vm1190_vm2 = vcmask 1040384  }
  0x20   : > { %1771 = vst.msk [vmem:[#allocation2 + $0x230] sm:$0xf] %vm1641_vm1, %v229_v0  ;;  %1772 = vst.msk [vmem:[#allocation2 + $0x234] sm:$0xf] %vm1641_vm1, %v230_v1  ;;  %v8232_v5 = vcombine.low %v231_v3, %v232_v4  ;;  %v233_v6 = vld [vmem:[%s8219_s10 + $0x10] sm:$0xf] }
  0x21   : > { %11254 = vst [vmem:[#allocation6_spill] sm:$0xff] %v8226_v2  ;;  %1773 = vst.msk [vmem:[#allocation2 + $0x238] sm:$0xf] %vm1641_vm1, %v231_v3  ;;  %v234_v7 = vld [vmem:[%s8219_s10 + $0x14] sm:$0xf]  ;;  %v11129_v8 = vshrl.u32 %v8226_v2, 16 }
  0x22   : > { %11255 = vst [vmem:[#allocation7_spill] sm:$0xff] %v8232_v5  ;;  %1774 = vst.msk [vmem:[#allocation2 + $0x23c] sm:$0xf] %vm1641_vm1, %v232_v4  ;;  %v682_v9 = vshll.u32 %v8226_v2, 16  ;;  %v8240_v10 = vcombine.low %v233_v6, %v234_v7  ;;  %v235_v11 = vld [vmem:[%s8219_s10 + $0x18] sm:$0xf] }
  0x23   : > { %1775 = vst.msk [vmem:[#allocation2 + $0x240] sm:$0xf] %vm1641_vm1, %v233_v6  ;;  %1776 = vst.msk [vmem:[#allocation2 + $0x244] sm:$0xf] %vm1641_vm1, %v234_v7  ;;  %v236_v12 = vld [vmem:[%s8219_s10 + $0x1c] sm:$0xf] }
  0x24   : > { %11256 = vst [vmem:[#allocation8_spill] sm:$0xff] %v8240_v10  ;;  %v11122_v13 = vshrl.u32 %v8232_v5, 16  ;;  %v11128_v14 = vshll.u32 %v8232_v5, 16  ;;  %v8248_v15 = vcombine.low %v235_v11, %v236_v12  ;;  %1777 = vst.msk [vmem:[#allocation2 + $0x248] sm:$0xf] %vm1641_vm1, %v235_v11  ;;  %v681_v18 = vrot.slane %v11129_v8, 7 }
  0x25   : > { %1778 = vst.msk [vmem:[#allocation2 + $0x24c] sm:$0xf] %vm1641_vm1, %v236_v12  ;;  %v237_v16 = vld [vmem:[%s8219_s10 + $0x20] sm:$0xf]  ;;  %v238_v17 = vld [vmem:[%s8219_s10 + $0x24] sm:$0xf]  ;;  %vm8265_vm3 = vmand %vm1190_vm2, %vm677_vm0 }
  0x26   : > { %11257 = vst [vmem:[#allocation9_spill] sm:$0xff] %v8248_v15  ;;  %v8256_v19 = vrot.slane %v682_v9, 1  ;;  %v11127_v20 = vshrl.u32 %v8240_v10, 16  ;;  %v697_v21 = vshll.u32 %v8240_v10, 16  ;;  %1779 = vst.msk [vmem:[#allocation2 + $0x250] sm:$0xf] %vm1641_vm1, %v237_v16  ;;  %v8273_v27 = vcombine.low %v237_v16, %v238_v17 }
  0x27   : > { %1780 = vst.msk [vmem:[#allocation2 + $0x254] sm:$0xf] %vm1641_vm1, %v238_v17  ;;  %v239_v22 = vld [vmem:[%s8219_s10 + $0x28] sm:$0xf]  ;;  %v688_v24 = vrot.slane %v11122_v13, 7  ;;  %v11120_v25 = vshrl.u32 %v8248_v15, 16  ;;  %v684_v29 = vor.u32 %v682_v9, %v681_v18 }
  0x28   : > { %11258 = vst [vmem:[#allocation10_spill] sm:$0xff] %v8256_v19  ;;  %v11126_v26 = vshll.u32 %v8248_v15, 16  ;;  %11261 = vst [vmem:[#allocation11_spill] sm:$0xff] %v8273_v27  ;;  %v240_v28 = vld [vmem:[%s8219_s10 + $0x2c] sm:$0xf]  ;;  %v696_v30 = vrot.slane %v11127_v20, 7 }
  0x29   : > { %1781 = vst.msk [vmem:[#allocation2 + $0x258] sm:$0xf] %vm1641_vm1, %v239_v22  ;;  %v8279_v31 = vrot.slane %v697_v21, 1  ;;  %v8281_v32 = vcombine.low %v239_v22, %v240_v28  ;;  %1782 = vst.msk [vmem:[#allocation2 + $0x25c] sm:$0xf] %vm1641_vm1, %v240_v28  ;;  %v691_v35 = vor.u32 %v11128_v14, %v688_v24  ;;  %v703_v36 = vrot.slane %v11120_v25, 7 }
  0x2a   : > { %v241_v33 = vld [vmem:[%s8219_s10 + $0x30] sm:$0xf]  ;;  %v242_v34 = vld [vmem:[%s8219_s10 + $0x34] sm:$0xf]  ;;  %v11123_v37 = vshrl.u32 %v8273_v27, 16  ;;  %v712_v38 = vshll.u32 %v8273_v27, 16  ;;  %v699_v41 = vor.u32 %v697_v21, %v696_v30 }
  0x2b   : > { %11262 = vst [vmem:[#allocation12_spill] sm:$0xff] %v8279_v31  ;;  %11263 = vst [vmem:[#allocation13_spill] sm:$0xff] %v8281_v32  ;;  %v243_v39 = vld [vmem:[%s8219_s10 + $0x38] sm:$0xf]  ;;  %v1192_v40 = vsel %vm8265_vm3, 0, %v684_v29  ;;  %v11116_v42 = vshrl.u32 %v8281_v32, 16  ;;  %v692_v47 = vsel %vm677_vm0, %v681_v18, %v691_v35  ;;  %v706_v48 = vor.u32 %v11126_v26, %v703_v36 }
  0x2c   : > { %1783 = vst.msk [vmem:[#allocation2 + $0x260] sm:$0xf] %vm1641_vm1, %v241_v33  ;;  %1784 = vst.msk [vmem:[#allocation2 + $0x264] sm:$0xf] %vm1641_vm1, %v242_v34  ;;  %v11121_v43 = vshll.u32 %v8281_v32, 16  ;;  %v6358_v45 = vcombine.low %v1192_v40, %v1192_v40  ;;  %v6359_v46 = vcombine.high %v1192_v40, %v1192_v40  ;;  %v6360_v52 = vcombine.low %v692_v47, %v692_v47 }
  0x2d   : > { %v244_v44 = vld [vmem:[%s8219_s10 + $0x3c] sm:$0xf]  ;;  %1785 = vst.msk [vmem:[#allocation2 + $0x268] sm:$0xf] %vm1641_vm1, %v243_v39  ;;  %v245_v49 = vld [vmem:[%s8219_s10 + $0x40] sm:$0xf]  ;;  %v6361_v53 = vcombine.high %v692_v47, %v692_v47  ;;  %v707_v60 = vsel %vm677_vm0, %v696_v30, %v706_v48  ;;  %v8338_v9 = vcombine.low %v241_v33, %v242_v34 }
  0x2e   : > { %1786 = vst.msk [vmem:[#allocation2 + $0x26c] sm:$0xf] %vm1641_vm1, %v244_v44  ;;  %v246_v50 = vld [vmem:[%s8219_s10 + $0x44] sm:$0xf]  ;;  %v247_v51 = vld [vmem:[%s8219_s10 + $0x48] sm:$0xf]  ;;  %v6364_v0 = vcombine.low %v707_v60, %v707_v60  ;;  %v6365_v1 = vcombine.high %v707_v60, %v707_v60  ;;  %v8340_v11 = vcombine.low %v243_v39, %v244_v44 }
  0x2f   : > { %v1193_v54 = vsel %vm8265_vm3, 0, %v699_v41  ;;  %v711_v55 = vrot.slane %v11123_v37, 7  ;;  %1787 = vst.msk [vmem:[#allocation2 + $0x270] sm:$0xf] %vm1641_vm1, %v245_v49  ;;  %1788 = vst.msk [vmem:[#allocation2 + $0x274] sm:$0xf] %vm1641_vm1, %v246_v50  ;;  %v8342_v12 = vcombine.low %v245_v49, %v246_v50 }
  0x30   : > { %v248_v56 = vld [vmem:[%s8219_s10 + $0x4c] sm:$0xf]  ;;  %1789 = vst.msk [vmem:[#allocation2 + $0x278] sm:$0xf] %vm1641_vm1, %v247_v51  ;;  %v249_v57 = vld [vmem:[%s8219_s10 + $0x50] sm:$0xf]  ;;  %v6362_v58 = vcombine.low %v1193_v54, %v1193_v54  ;;  %v6363_v59 = vcombine.high %v1193_v54, %v1193_v54 }
  0x31   : > { %1642 = vst.msk [vmem:[#allocation2 + $0x10] sm:$0xf] %vm1641_vm1, %v6358_v45  ;;  %1643 = vst.msk [vmem:[#allocation2 + $0x14] sm:$0xf] %vm1641_vm1, %v6359_v46  ;;  %v8320_v61 = vrot.slane %v712_v38, 1  ;;  %v714_v3 = vor.u32 %v712_v38, %v711_v55  ;;  %v718_v4 = vrot.slane %v11116_v42, 7  ;;  %v8344_v16 = vcombine.low %v247_v51, %v248_v56 }
  0x32   : > { %1790 = vst.msk [vmem:[#allocation2 + $0x27c] sm:$0xf] %vm1641_vm1, %v248_v56  ;;  %v250_v62 = vld [vmem:[%s8219_s10 + $0x54] sm:$0xf]  ;;  %1791 = vst.msk [vmem:[#allocation2 + $0x280] sm:$0xf] %vm1641_vm1, %v249_v57 }
  0x33   : > { %11264 = vst [vmem:[#allocation14_spill] sm:$0xff] %v8320_v61  ;;  %v251_v63 = vld [vmem:[%s8219_s10 + $0x58] sm:$0xf]  ;;  %1644 = vst.msk [vmem:[#allocation2 + $0x18] sm:$0xf] %vm1641_vm1, %v6360_v52  ;;  %v1194_v22 = vsel %vm8265_vm3, 0, %v714_v3  ;;  %v721_v24 = vor.u32 %v11121_v43, %v718_v4  ;;  %v8364_v28 = vcombine.low %v249_v57, %v250_v62 }
  0x34   : > { %1645 = vst.msk [vmem:[#allocation2 + $0x1c] sm:$0xf] %vm1641_vm1, %v6361_v53  ;;  %1792 = vst.msk [vmem:[#allocation2 + $0x284] sm:$0xf] %vm1641_vm1, %v250_v62  ;;  %v252_v6 = vld [vmem:[%s8219_s10 + $0x5c] sm:$0xf]  ;;  %v6366_v34 = vcombine.low %v1194_v22, %v1194_v22  ;;  %v6367_v35 = vcombine.high %v1194_v22, %v1194_v22 }
  0x35   : > { %1793 = vst.msk [vmem:[#allocation2 + $0x288] sm:$0xf] %vm1641_vm1, %v251_v63  ;;  %v8334_v7 = vld [vmem:[%s8219_s10 + $0x60] sm:$0xf]  ;;  %1646 = vst.msk [vmem:[#allocation2 + $0x20] sm:$0xf] %vm1641_vm1, %v6362_v58  ;;  %v8366_v29 = vcombine.low %v251_v63, %v252_v6  ;;  %v722_v41 = vsel %vm677_vm0, %v711_v55, %v721_v24 }
  0x36   : > { %1647 = vst.msk [vmem:[#allocation2 + $0x24] sm:$0xf] %vm1641_vm1, %v6363_v59  ;;  %11265 = vst [vmem:[#allocation15_spill] sm:$0xff] %v8338_v9  ;;  %v8348_v17 = vld [vmem:[%s8219_s10 + $0x64] sm:$0xf]  ;;  %v11115_v36 = vshrl.u32 %v8338_v9, 16  ;;  %v6368_v48 = vcombine.low %v722_v41, %v722_v41  ;;  %v6369_v49 = vcombine.high %v722_v41, %v722_v41 }
  0x37   : > { %11266 = vst [vmem:[#allocation16_spill] sm:$0xff] %v8340_v11  ;;  %11267 = vst [vmem:[#allocation17_spill] sm:$0xff] %v8342_v12  ;;  %v8353_v18 = vld [vmem:[%s8219_s10 + $0x68] sm:$0xf]  ;;  %v8356_v21 = vld [vmem:[%s8219_s10 + $0x6c] sm:$0xf] }
  0x38   : > { %11268 = vst [vmem:[#allocation18_spill] sm:$0xff] %v8344_v16  ;;  %1794 = vst.msk [vmem:[#allocation2 + $0x28c] sm:$0xf] %vm1641_vm1, %v252_v6  ;;  %v8375_v30 = vld [vmem:[%s8219_s10 + $0x70] sm:$0xf]  ;;  %v727_v38 = vshll.u32 %v8338_v9, 16 }
  0x39   : > { %1795 = vst.msk [vmem:[#allocation2 + $0x290] sm:$0xf] %vm1641_vm1, %v8334_v7  ;;  %1648 = vst.msk [vmem:[#allocation2 + $0x28] sm:$0xf] %vm1641_vm1, %v6364_v0  ;;  %v8378_v33 = vld [vmem:[%s8219_s10 + $0x74] sm:$0xf] }
  0x3a   : > { %1649 = vst.msk [vmem:[#allocation2 + $0x2c] sm:$0xf] %vm1641_vm1, %v6365_v1  ;;  %11269 = vst [vmem:[#allocation19_spill] sm:$0xff] %v8364_v28  ;;  %v8387_v39 = vld [vmem:[%s8219_s10 + $0x78] sm:$0xf]  ;;  %v11111_v44 = vshrl.u32 %v8340_v11, 16 }
  0x3b   : > { %11270 = vst [vmem:[#allocation20_spill] sm:$0xff] %v8366_v29  ;;  %1796 = vst.msk [vmem:[#allocation2 + $0x294] sm:$0xf] %vm1641_vm1, %v8348_v17  ;;  %v8390_v40 = vld [vmem:[%s8219_s10 + $0x7c] sm:$0xf]  ;;  %v11114_v45 = vshll.u32 %v8340_v11, 16 }
  0x3c   : > { %1797 = vst.msk [vmem:[#allocation2 + $0x298] sm:$0xf] %vm1641_vm1, %v8353_v18  ;;  %1798 = vst.msk [vmem:[#allocation2 + $0x29c] sm:$0xf] %vm1641_vm1, %v8356_v21  ;;  %v11113_v46 = vshrl.u32 %v8342_v12, 16  ;;  %v726_v50 = vrot.slane %v11115_v36, 7 }
  0x3d   : > { %1799 = vst.msk [vmem:[#allocation2 + $0x2a0] sm:$0xf] %vm1641_vm1, %v8375_v30  ;;  %1800 = vst.msk [vmem:[#allocation2 + $0x2a4] sm:$0xf] %vm1641_vm1, %v8378_v33  ;;  %v8401_v47 = vld [vmem:[%s8219_s10 + $0x80] sm:$0xf] }
  0x3e   : > { %1801 = vst.msk [vmem:[#allocation2 + $0x2a8] sm:$0xf] %vm1641_vm1, %v8387_v39  ;;  %1802 = vst.msk [vmem:[#allocation2 + $0x2ac] sm:$0xf] %vm1641_vm1, %v8390_v40  ;;  %v8407_v51 = vrot.slane %v727_v38, 1  ;;  %v733_v54 = vrot.slane %v11111_v44, 7  ;;  %v729_v59 = vor.u32 %v727_v38, %v726_v50 }
  0x3f   : > { %1650 = vst.msk [vmem:[#allocation2 + $0x30] sm:$0xf] %vm1641_vm1, %v6366_v34  ;;  %1651 = vst.msk [vmem:[#allocation2 + $0x34] sm:$0xf] %vm1641_vm1, %v6367_v35  ;;  %v8410_v52 = vld [vmem:[%s8219_s10 + $0x84] sm:$0xf] }
  0x40   : > { %11271 = vst [vmem:[#allocation21_spill] sm:$0xff] %v8407_v51  ;;  %1803 = vst.msk [vmem:[#allocation2 + $0x2b0] sm:$0xf] %vm1641_vm1, %v8401_v47  ;;  %v8415_v53 = vld [vmem:[%s8219_s10 + $0x88] sm:$0xf]  ;;  %v8421_v55 = vrot.slane %v11113_v46, 7  ;;  %v736_v1 = vor.u32 %v11114_v45, %v733_v54 }
  0x41   : > { %v742_v56 = vshll.u32 %v8342_v12, 16  ;;  %v11110_v57 = vshrl.u32 %v8344_v16, 16  ;;  %1804 = vst.msk [vmem:[#allocation2 + $0x2b4] sm:$0xf] %vm1641_vm1, %v8410_v52  ;;  %v8428_v58 = vld [vmem:[%s8219_s10 + $0x8c] sm:$0xf] }
  0x42   : > { %1805 = vst.msk [vmem:[#allocation2 + $0x2b8] sm:$0xf] %vm1641_vm1, %v8415_v53  ;;  %1652 = vst.msk [vmem:[#allocation2 + $0x38] sm:$0xf] %vm1641_vm1, %v6368_v48  ;;  %v11119_v60 = vshll.u32 %v8344_v16, 16  ;;  %v11112_v62 = vshrl.u32 %v8364_v28, 16 }
  0x43   : > { %1653 = vst.msk [vmem:[#allocation2 + $0x3c] sm:$0xf] %vm1641_vm1, %v6369_v49  ;;  %v757_v63 = vshll.u32 %v8364_v28, 16  ;;  %1806 = vst.msk [vmem:[#allocation2 + $0x2bc] sm:$0xf] %vm1641_vm1, %v8428_v58  ;;  %v744_v3 = vor.u32 %v742_v56, %v8421_v55  ;;  %v8445_v4 = vrot.slane %v742_v56, 1  ;;  %v737_v56 = vsel %vm677_vm0, %v726_v50, %v736_v1 }
  0x44   : > { %v8440_v0 = vld [vmem:[%s8219_s10 + $0x90] sm:$0xf]  ;;  %v748_v6 = vrot.slane %v11110_v57, 7  ;;  %v8450_v22 = vld [vmem:[%s8219_s10 + $0x94] sm:$0xf]  ;;  %v1195_v34 = vsel %vm8265_vm3, 0, %v729_v59  ;;  %v6373_v46 = vcombine.high %v737_v56, %v737_v56 }
  0x45   : > { %11272 = vst [vmem:[#allocation22_spill] sm:$0xff] %v8445_v4  ;;  %1807 = vst.msk [vmem:[#allocation2 + $0x2c0] sm:$0xf] %vm1641_vm1, %v8440_v0  ;;  %v8455_v24 = vld [vmem:[%s8219_s10 + $0x98] sm:$0xf]  ;;  %v8461_v35 = vrot.slane %v11112_v62, 7  ;;  %v6370_v49 = vcombine.low %v1195_v34, %v1195_v34  ;;  %v6371_v54 = vcombine.high %v1195_v34, %v1195_v34  ;;  %v6372_v62 = vcombine.low %v737_v56, %v737_v56 }
  0x46   : > { %v8463_v38 = vrot.slane %v757_v63, 1  ;;  %v11117_v41 = vshrl.u32 %v8366_v29, 16  ;;  %1808 = vst.msk [vmem:[#allocation2 + $0x2c4] sm:$0xf] %vm1641_vm1, %v8450_v22  ;;  %v8469_v48 = vld [vmem:[%s8219_s10 + $0x9c] sm:$0xf]  ;;  %v751_v34 = vor.u32 %v11119_v60, %v748_v6  ;;  %v8523_v6 = vcombine.low %v8334_v7, %v8348_v17 }
  0x47   : > { %1809 = vst.msk [vmem:[#allocation2 + $0x2c8] sm:$0xf] %vm1641_vm1, %v8455_v24  ;;  %v1196_v59 = vsel %vm8265_vm3, 0, %v744_v3  ;;  %1810 = vst.msk [vmem:[#allocation2 + $0x2cc] sm:$0xf] %vm1641_vm1, %v8469_v48  ;;  %v759_v56 = vor.u32 %v757_v63, %v8461_v35  ;;  %v11118_v42 = vshll.u32 %v8366_v29, 16 }
  0x48   : > { %11273 = vst [vmem:[#allocation23_spill] sm:$0xff] %v8463_v38  ;;  %v8479_v57 = vld [vmem:[%s8219_s10 + $0xa0] sm:$0xf]  ;;  %v8482_v44 = vld [vmem:[%s8219_s10 + $0xa4] sm:$0xf]  ;;  %v6374_v45 = vcombine.low %v1196_v59, %v1196_v59  ;;  %v6375_v36 = vcombine.high %v1196_v59, %v1196_v59  ;;  %v763_v59 = vrot.slane %v11117_v41, 7  ;;  %v8531_v41 = vcombine.low %v8375_v30, %v8378_v33 }
  0x49   : > { %1811 = vst.msk [vmem:[#allocation2 + $0x2d0] sm:$0xf] %vm1641_vm1, %v8479_v57  ;;  %1812 = vst.msk [vmem:[#allocation2 + $0x2d4] sm:$0xf] %vm1641_vm1, %v8482_v44  ;;  %v8489_v50 = vld [vmem:[%s8219_s10 + $0xa8] sm:$0xf]  ;;  %v8558_v33 = vcombine.low %v8401_v47, %v8410_v52 }
  0x4a   : > { %v8492_v1 = vld [vmem:[%s8219_s10 + $0xac] sm:$0xf]  ;;  %v8495_v3 = vld [vmem:[%s8219_s10 + $0xb0] sm:$0xf]  ;;  %1654 = vst.msk [vmem:[#allocation2 + $0x40] sm:$0xf] %vm1641_vm1, %v6370_v49  ;;  %v766_v30 = vor.u32 %v11118_v42, %v763_v59 }
  0x4b   : > { %1655 = vst.msk [vmem:[#allocation2 + $0x44] sm:$0xf] %vm1641_vm1, %v6371_v54  ;;  %1813 = vst.msk [vmem:[#allocation2 + $0x2d8] sm:$0xf] %vm1641_vm1, %v8489_v50  ;;  %v8510_v49 = vld [vmem:[%s8219_s10 + $0xb4] sm:$0xf]  ;;  %v8527_v54 = vcombine.low %v8353_v18, %v8356_v21  ;;  %v752_v18 = vsel %vm677_vm0, %v8421_v55, %v751_v34 }
  0x4c   : > { %1814 = vst.msk [vmem:[#allocation2 + $0x2dc] sm:$0xf] %vm1641_vm1, %v8492_v1  ;;  %1815 = vst.msk [vmem:[#allocation2 + $0x2e0] sm:$0xf] %vm1641_vm1, %v8495_v3  ;;  %v8515_v63 = vld [vmem:[%s8219_s10 + $0xb8] sm:$0xf]  ;;  %v6377_v55 = vcombine.high %v752_v18, %v752_v18  ;;  %v767_v59 = vsel %vm677_vm0, %v8461_v35, %v766_v30 }
  0x4d   : > { %1656 = vst.msk [vmem:[#allocation2 + $0x48] sm:$0xf] %vm1641_vm1, %v6372_v62  ;;  %1657 = vst.msk [vmem:[#allocation2 + $0x4c] sm:$0xf] %vm1641_vm1, %v6373_v46  ;;  %v8535_v46 = vcombine.low %v8387_v39, %v8390_v40  ;;  %v8545_v7 = vld [vmem:[%s8219_s10 + $0xc0] sm:$0xf]  ;;  %v6380_v35 = vcombine.low %v767_v59, %v767_v59  ;;  %v6381_v30 = vcombine.high %v767_v59, %v767_v59 }
  0x4e   : > { %1658 = vst.msk [vmem:[#allocation2 + $0x50] sm:$0xf] %vm1641_vm1, %v6374_v45  ;;  %1659 = vst.msk [vmem:[#allocation2 + $0x54] sm:$0xf] %vm1641_vm1, %v6375_v36  ;;  %v8540_v36 = vld [vmem:[%s8219_s10 + $0xbc] sm:$0xf]  ;;  %v6376_v45 = vcombine.low %v752_v18, %v752_v18 }
  0x4f   : > { %11274 = vst [vmem:[#allocation24_spill] sm:$0xff] %v8523_v6  ;;  %11275 = vst [vmem:[#allocation25_spill] sm:$0xff] %v8527_v54  ;;  %v8548_v17 = vld [vmem:[%s8219_s10 + $0xc4] sm:$0xf]  ;;  %v1197_v21 = vsel %vm8265_vm3, 0, %v759_v56  ;;  %v11124_v42 = vshrl.u32 %v8523_v6, 16 }
  0x50   : > { %11276 = vst [vmem:[#allocation26_spill] sm:$0xff] %v8531_v41  ;;  %11277 = vst [vmem:[#allocation27_spill] sm:$0xff] %v8535_v46  ;;  %v8567_v39 = vld [vmem:[%s8219_s10 + $0xc8] sm:$0xf]  ;;  %v8570_v40 = vld [vmem:[%s8219_s10 + $0xcc] sm:$0xf]  ;;  %v6378_v62 = vcombine.low %v1197_v21, %v1197_v21  ;;  %v6379_v34 = vcombine.high %v1197_v21, %v1197_v21 }
  0x51   : > { %1816 = vst.msk [vmem:[#allocation2 + $0x2e4] sm:$0xf] %vm1641_vm1, %v8510_v49  ;;  %1817 = vst.msk [vmem:[#allocation2 + $0x2e8] sm:$0xf] %vm1641_vm1, %v8515_v63  ;;  %v8577_v47 = vld [vmem:[%s8219_s10 + $0xd0] sm:$0xf] }
  0x52   : > { %11278 = vst [vmem:[#allocation28_spill] sm:$0xff] %v8558_v33  ;;  %1818 = vst.msk [vmem:[#allocation2 + $0x2ec] sm:$0xf] %vm1641_vm1, %v8540_v36  ;;  %v8580_v52 = vld [vmem:[%s8219_s10 + $0xd4] sm:$0xf]  ;;  %v772_v18 = vshll.u32 %v8523_v6, 16 }
  0x53   : > { %1819 = vst.msk [vmem:[#allocation2 + $0x2f0] sm:$0xf] %vm1641_vm1, %v8545_v7  ;;  %1820 = vst.msk [vmem:[#allocation2 + $0x2f4] sm:$0xf] %vm1641_vm1, %v8548_v17  ;;  %v8583_v56 = vld [vmem:[%s8219_s10 + $0xd8] sm:$0xf] }
  0x54   : > { %1821 = vst.msk [vmem:[#allocation2 + $0x2f8] sm:$0xf] %vm1641_vm1, %v8567_v39  ;;  %1822 = vst.msk [vmem:[#allocation2 + $0x2fc] sm:$0xf] %vm1641_vm1, %v8570_v40  ;;  %v11125_v21 = vshrl.u32 %v8527_v54, 16  ;;  %v11134_v25 = vshll.u32 %v8527_v54, 16 }
  0x55   : > { %1823 = vst.msk [vmem:[#allocation2 + $0x300] sm:$0xf] %vm1641_vm1, %v8577_v47  ;;  %1824 = vst.msk [vmem:[#allocation2 + $0x304] sm:$0xf] %vm1641_vm1, %v8580_v52  ;;  %v8595_v60 = vld [vmem:[%s8219_s10 + $0xdc] sm:$0xf] }
  0x56   : > { %1825 = vst.msk [vmem:[#allocation2 + $0x308] sm:$0xf] %vm1641_vm1, %v8583_v56  ;;  %1660 = vst.msk [vmem:[#allocation2 + $0x58] sm:$0xf] %vm1641_vm1, %v6376_v45  ;;  %v11130_v43 = vshrl.u32 %v8531_v41, 16  ;;  %v787_v59 = vshll.u32 %v8531_v41, 16 }
  0x57   : > { %1661 = vst.msk [vmem:[#allocation2 + $0x5c] sm:$0xf] %vm1641_vm1, %v6377_v55  ;;  %1662 = vst.msk [vmem:[#allocation2 + $0x60] sm:$0xf] %vm1641_vm1, %v6378_v62  ;;  %v8608_v13 = vld [vmem:[%s8219_s10 + $0xe0] sm:$0xf] }
  0x58   : > { %1663 = vst.msk [vmem:[#allocation2 + $0x64] sm:$0xf] %vm1641_vm1, %v6379_v34  ;;  %1826 = vst.msk [vmem:[#allocation2 + $0x30c] sm:$0xf] %vm1641_vm1, %v8595_v60  ;;  %v8611_v45 = vld [vmem:[%s8219_s10 + $0xe4] sm:$0xf] }
  0x59   : > { %v771_v55 = vrot.slane %v11124_v42, 7  ;;  %v8615_v62 = vrot.slane %v772_v18, 1  ;;  %v778_v34 = vrot.slane %v11125_v21, 7  ;;  %1827 = vst.msk [vmem:[#allocation2 + $0x310] sm:$0xf] %vm1641_vm1, %v8608_v13  ;;  %v786_v42 = vrot.slane %v11130_v43, 7 }
  0x5a   : > { %1828 = vst.msk [vmem:[#allocation2 + $0x314] sm:$0xf] %vm1641_vm1, %v8611_v45  ;;  %v8625_v37 = vld [vmem:[%s8219_s10 + $0xe8] sm:$0xf]  ;;  %1664 = vst.msk [vmem:[#allocation2 + $0x68] sm:$0xf] %vm1641_vm1, %v6380_v35 }
  0x5b   : > { %11279 = vst [vmem:[#allocation29_spill] sm:$0xff] %v8615_v62  ;;  %1665 = vst.msk [vmem:[#allocation2 + $0x6c] sm:$0xf] %vm1641_vm1, %v6381_v30  ;;  %v8635_v14 = vld [vmem:[%s8219_s10 + $0xec] sm:$0xf]  ;;  %v774_v8 = vor.u32 %v772_v18, %v771_v55  ;;  %v781_v35 = vor.u32 %v11134_v25, %v778_v34  ;;  %v8641_v30 = vrot.slane %v787_v59, 1  ;;  %v789_v21 = vor.u32 %v787_v59, %v786_v42 }
  0x5c   : > { %1829 = vst.msk [vmem:[#allocation2 + $0x318] sm:$0xf] %vm1641_vm1, %v8625_v37  ;;  %v802_v43 = vshll.u32 %v8558_v33, 16  ;;  %1830 = vst.msk [vmem:[#allocation2 + $0x31c] sm:$0xf] %vm1641_vm1, %v8635_v14  ;;  %v11281_v41 = vshrl.u32 %v8535_v46, 16  ;;  %v8660_v25 = vcombine.low %v8415_v53, %v8428_v58  ;;  %v8679_v58 = vcombine.low %v8440_v0, %v8450_v22 }
  0x5d   : > { %11280 = vst [vmem:[#allocation30_spill] sm:$0xff] %v8641_v30  ;;  %v8647_v26 = vld [vmem:[%s8219_s10 + $0xf0] sm:$0xf]  ;;  %v8650_v20 = vld [vmem:[%s8219_s10 + $0xf4] sm:$0xf]  ;;  %v11282_v54 = vshrl.u32 %v8558_v33, 16 }
  0x5e   : > { %v793_v18 = vrot.slane %v11281_v41, 7  ;;  %11283 = vst [vmem:[#allocation31_spill] sm:$0xff] %v8660_v25  ;;  %1831 = vst.msk [vmem:[#allocation2 + $0x320] sm:$0xf] %vm1641_vm1, %v8647_v26  ;;  %v8667_v30 = vld [vmem:[%s8219_s10 + $0xf8] sm:$0xf] }
  0x5f   : > { %v8656_v34 = vrot.slane %v11282_v54, 7  ;;  %1832 = vst.msk [vmem:[#allocation2 + $0x324] sm:$0xf] %vm1641_vm1, %v8650_v20  ;;  %v8670_v59 = vld [vmem:[%s8219_s10 + $0xfc] sm:$0xf]  ;;  %v1198_v41 = vsel %vm8265_vm3, 0, %v774_v8  ;;  %v782_v54 = vsel %vm677_vm0, %v771_v55, %v781_v35 }
  0x60   : > { %v8675_v53 = vrot.slane %v802_v43, 1  ;;  %11285 = vst [vmem:[#allocation33_spill] sm:$0xff] %v8679_v58  ;;  %1833 = vst.msk [vmem:[#allocation2 + $0x328] sm:$0xf] %vm1641_vm1, %v8667_v30  ;;  %v8686_v33 = vld [vmem:[%s8219_s10 + $0x100] sm:$0xf]  ;;  %v6382_v8 = vcombine.low %v1198_v41, %v1198_v41  ;;  %v6383_v6 = vcombine.high %v1198_v41, %v1198_v41  ;;  %v6384_v55 = vcombine.low %v782_v54, %v782_v54 }
  0x61   : > { %1834 = vst.msk [vmem:[#allocation2 + $0x32c] sm:$0xf] %vm1641_vm1, %v8670_v59  ;;  %v8689_v62 = vld [vmem:[%s8219_s10 + $0x104] sm:$0xf]  ;;  %v6385_v35 = vcombine.high %v782_v54, %v782_v54  ;;  %1835 = vst.msk [vmem:[#allocation2 + $0x330] sm:$0xf] %vm1641_vm1, %v8686_v33  ;;  %v804_v54 = vor.u32 %v802_v43, %v8656_v34 }
  0x62   : > { %11284 = vst [vmem:[#allocation32_spill] sm:$0xff] %v8675_v53  ;;  %1836 = vst.msk [vmem:[#allocation2 + $0x334] sm:$0xf] %vm1641_vm1, %v8689_v62  ;;  %v8696_v0 = vld [vmem:[%s8219_s10 + $0x108] sm:$0xf]  ;;  %v1199_v29 = vsel %vm8265_vm3, 0, %v789_v21 }
  0x63   : > { %v8699_v22 = vld [vmem:[%s8219_s10 + $0x10c] sm:$0xf]  ;;  %v8702_v53 = vld [vmem:[%s8219_s10 + $0x110] sm:$0xf]  ;;  %v11286_v41 = vshll.u32 %v8535_v46, 16  ;;  %v6386_v43 = vcombine.low %v1199_v29, %v1199_v29  ;;  %v817_v28 = vshll.u32 %v8679_v58, 16 }
  0x64   : > { %1837 = vst.msk [vmem:[#allocation2 + $0x338] sm:$0xf] %vm1641_vm1, %v8696_v0  ;;  %1838 = vst.msk [vmem:[#allocation2 + $0x33c] sm:$0xf] %vm1641_vm1, %v8699_v22  ;;  %v8715_v16 = vld [vmem:[%s8219_s10 + $0x114] sm:$0xf] }
  0x65   : > { %v796_v38 = vor.u32 %v11286_v41, %v793_v18  ;;  %1839 = vst.msk [vmem:[#allocation2 + $0x340] sm:$0xf] %vm1641_vm1, %v8702_v53  ;;  %v8720_v21 = vld [vmem:[%s8219_s10 + $0x118] sm:$0xf]  ;;  %1666 = vst.msk [vmem:[#allocation2 + $0x70] sm:$0xf] %vm1641_vm1, %v6382_v8  ;;  %v6387_v18 = vcombine.high %v1199_v29, %v1199_v29 }
  0x66   : > { %1667 = vst.msk [vmem:[#allocation2 + $0x74] sm:$0xf] %vm1641_vm1, %v6383_v6  ;;  %1668 = vst.msk [vmem:[#allocation2 + $0x78] sm:$0xf] %vm1641_vm1, %v6384_v55  ;;  %v8731_v46 = vld [vmem:[%s8219_s10 + $0x11c] sm:$0xf] }
  0x67   : > { %1669 = vst.msk [vmem:[#allocation2 + $0x7c] sm:$0xf] %vm1641_vm1, %v6385_v35  ;;  %1840 = vst.msk [vmem:[#allocation2 + $0x344] sm:$0xf] %vm1641_vm1, %v8715_v16  ;;  %v8736_v6 = vld [vmem:[%s8219_s10 + $0x120] sm:$0xf]  ;;  %v797_v8 = vsel %vm677_vm0, %v786_v42, %v796_v38 }
  0x68   : > { %1841 = vst.msk [vmem:[#allocation2 + $0x348] sm:$0xf] %vm1641_vm1, %v8720_v21  ;;  %v1200_v29 = vsel %vm8265_vm3, 0, %v804_v54  ;;  %v11287_v55 = vshrl.u32 %v8660_v25, 16  ;;  %1842 = vst.msk [vmem:[#allocation2 + $0x34c] sm:$0xf] %vm1641_vm1, %v8731_v46  ;;  %v6388_v42 = vcombine.low %v797_v8, %v797_v8  ;;  %v6389_v38 = vcombine.high %v797_v8, %v797_v8 }
  0x69   : > { %v8747_v41 = vld [vmem:[%s8219_s10 + $0x124] sm:$0xf]  ;;  %1843 = vst.msk [vmem:[#allocation2 + $0x350] sm:$0xf] %vm1641_vm1, %v8736_v6  ;;  %1670 = vst.msk [vmem:[#allocation2 + $0x80] sm:$0xf] %vm1641_vm1, %v6386_v43  ;;  %v6390_v54 = vcombine.low %v1200_v29, %v1200_v29  ;;  %v8774_v8 = vcombine.low %v8455_v24, %v8469_v48  ;;  %v8794_v24 = vcombine.low %v8479_v57, %v8482_v44 }
  0x6a   : > { %v808_v35 = vrot.slane %v11287_v55, 7  ;;  %1671 = vst.msk [vmem:[#allocation2 + $0x84] sm:$0xf] %vm1641_vm1, %v6387_v18  ;;  %v6391_v55 = vcombine.high %v1200_v29, %v1200_v29  ;;  %1844 = vst.msk [vmem:[#allocation2 + $0x354] sm:$0xf] %vm1641_vm1, %v8747_v41  ;;  %v11288_v51 = vshll.u32 %v8660_v25, 16  ;;  %v8798_v48 = vcombine.low %v8489_v50, %v8492_v1 }
  0x6b   : > { %v8756_v4 = vld [vmem:[%s8219_s10 + $0x128] sm:$0xf]  ;;  %v8759_v12 = vld [vmem:[%s8219_s10 + $0x12c] sm:$0xf]  ;;  %v8762_v11 = vld [vmem:[%s8219_s10 + $0x130] sm:$0xf]  ;;  %v8802_v29 = vcombine.low %v8495_v3, %v8510_v49 }
  0x6c   : > { %v811_v43 = vor.u32 %v11288_v51, %v808_v35  ;;  %v11289_v9 = vshrl.u32 %v8679_v58, 16  ;;  %v8770_v32 = vrot.slane %v817_v28, 1  ;;  %11291 = vst [vmem:[#allocation35_spill] sm:$0xff] %v8774_v8  ;;  %1845 = vst.msk [vmem:[#allocation2 + $0x358] sm:$0xf] %vm1641_vm1, %v8756_v4  ;;  %v8806_v35 = vcombine.low %v8515_v63, %v8540_v36 }
  0x6d   : > { %1846 = vst.msk [vmem:[#allocation2 + $0x35c] sm:$0xf] %vm1641_vm1, %v8759_v12  ;;  %v8781_v51 = vld [vmem:[%s8219_s10 + $0x134] sm:$0xf]  ;;  %1847 = vst.msk [vmem:[#allocation2 + $0x360] sm:$0xf] %vm1641_vm1, %v8762_v11 }
  0x6e   : > { %v8768_v18 = vrot.slane %v11289_v9, 7  ;;  %11290 = vst [vmem:[#allocation34_spill] sm:$0xff] %v8770_v32  ;;  %v8786_v9 = vld [vmem:[%s8219_s10 + $0x138] sm:$0xf]  ;;  %1672 = vst.msk [vmem:[#allocation2 + $0x88] sm:$0xf] %vm1641_vm1, %v6388_v42  ;;  %v812_v50 = vsel %vm677_vm0, %v8656_v34, %v811_v43 }
  0x6f   : > { %1673 = vst.msk [vmem:[#allocation2 + $0x8c] sm:$0xf] %vm1641_vm1, %v6389_v38  ;;  %1674 = vst.msk [vmem:[#allocation2 + $0x90] sm:$0xf] %vm1641_vm1, %v6390_v54  ;;  %v8811_v42 = vld [vmem:[%s8219_s10 + $0x13c] sm:$0xf]  ;;  %v6392_v34 = vcombine.low %v812_v50, %v812_v50 }
  0x70   : > { %1675 = vst.msk [vmem:[#allocation2 + $0x94] sm:$0xf] %vm1641_vm1, %v6391_v55  ;;  %11292 = vst [vmem:[#allocation36_spill] sm:$0xff] %v8794_v24  ;;  %v8816_v44 = vld [vmem:[%s8219_s10 + $0x140] sm:$0xf]  ;;  %v819_v1 = vor.u32 %v817_v28, %v8768_v18  ;;  %v11153_v3 = vshrl.u32 %v8774_v8, 16  ;;  %v6393_v28 = vcombine.high %v812_v50, %v812_v50 }
  0x71   : > { %11293 = vst [vmem:[#allocation37_spill] sm:$0xff] %v8798_v48  ;;  %11294 = vst [vmem:[#allocation38_spill] sm:$0xff] %v8802_v29  ;;  %v8819_v57 = vld [vmem:[%s8219_s10 + $0x144] sm:$0xf]  ;;  %v8833_v63 = vld [vmem:[%s8219_s10 + $0x148] sm:$0xf] }
  0x72   : > { %11295 = vst [vmem:[#allocation39_spill] sm:$0xff] %v8806_v35  ;;  %1848 = vst.msk [vmem:[#allocation2 + $0x364] sm:$0xf] %vm1641_vm1, %v8781_v51  ;;  %v8836_v36 = vld [vmem:[%s8219_s10 + $0x14c] sm:$0xf]  ;;  %v832_v54 = vshll.u32 %v8794_v24, 16 }
  0x73   : > { %1849 = vst.msk [vmem:[#allocation2 + $0x368] sm:$0xf] %vm1641_vm1, %v8786_v9  ;;  %1850 = vst.msk [vmem:[#allocation2 + $0x36c] sm:$0xf] %vm1641_vm1, %v8811_v42  ;;  %v8845_v55 = vld [vmem:[%s8219_s10 + $0x150] sm:$0xf] }
  0x74   : > { %1851 = vst.msk [vmem:[#allocation2 + $0x370] sm:$0xf] %vm1641_vm1, %v8816_v44  ;;  %1852 = vst.msk [vmem:[#allocation2 + $0x374] sm:$0xf] %vm1641_vm1, %v8819_v57  ;;  %v8848_v43 = vld [vmem:[%s8219_s10 + $0x154] sm:$0xf] }
  0x75   : > { %1853 = vst.msk [vmem:[#allocation2 + $0x378] sm:$0xf] %vm1641_vm1, %v8833_v63  ;;  %1854 = vst.msk [vmem:[#allocation2 + $0x37c] sm:$0xf] %vm1641_vm1, %v8836_v36  ;;  %v1201_v49 = vsel %vm8265_vm3, 0, %v819_v1  ;;  %v823_v50 = vrot.slane %v11153_v3, 7 }
  0x76   : > { %1855 = vst.msk [vmem:[#allocation2 + $0x380] sm:$0xf] %vm1641_vm1, %v8845_v55  ;;  %1856 = vst.msk [vmem:[#allocation2 + $0x384] sm:$0xf] %vm1641_vm1, %v8848_v43  ;;  %v8861_v58 = vld [vmem:[%s8219_s10 + $0x158] sm:$0xf]  ;;  %v6394_v1 = vcombine.low %v1201_v49, %v1201_v49  ;;  %v6395_v25 = vcombine.high %v1201_v49, %v1201_v49 }
  0x77   : > { %1676 = vst.msk [vmem:[#allocation2 + $0x98] sm:$0xf] %vm1641_vm1, %v6392_v34  ;;  %1677 = vst.msk [vmem:[#allocation2 + $0x9c] sm:$0xf] %vm1641_vm1, %v6393_v28  ;;  %v11296_v3 = vshrl.u32 %v8794_v24, 16  ;;  %v8867_v61 = vrot.slane %v832_v54, 1  ;;  %v8896_v24 = vcombine.low %v8545_v7, %v8548_v17 }
  0x78   : > { %v8870_v32 = vld [vmem:[%s8219_s10 + $0x15c] sm:$0xf]  ;;  %1857 = vst.msk [vmem:[#allocation2 + $0x388] sm:$0xf] %vm1641_vm1, %v8861_v58  ;;  %v8875_v27 = vld [vmem:[%s8219_s10 + $0x160] sm:$0xf] }
  0x79   : > { %v831_v38 = vrot.slane %v11296_v3, 7  ;;  %11297 = vst [vmem:[#allocation40_spill] sm:$0xff] %v8867_v61  ;;  %v11298_v15 = vshll.u32 %v8774_v8, 16  ;;  %v11299_v28 = vshrl.u32 %v8798_v48, 16  ;;  %v847_v3 = vshll.u32 %v8802_v29, 16  ;;  %11300 = vst [vmem:[#allocation41_spill] sm:$0xff] %v8896_v24 }
  0x7a   : > { %1858 = vst.msk [vmem:[#allocation2 + $0x38c] sm:$0xf] %vm1641_vm1, %v8870_v32  ;;  %v8886_v61 = vld [vmem:[%s8219_s10 + $0x164] sm:$0xf]  ;;  %1859 = vst.msk [vmem:[#allocation2 + $0x390] sm:$0xf] %vm1641_vm1, %v8875_v27 }
  0x7b   : > { %v826_v34 = vor.u32 %v11298_v15, %v823_v50  ;;  %v838_v49 = vrot.slane %v11299_v28, 7  ;;  %1678 = vst.msk [vmem:[#allocation2 + $0xa0] sm:$0xf] %vm1641_vm1, %v6394_v1  ;;  %1679 = vst.msk [vmem:[#allocation2 + $0xa4] sm:$0xf] %vm1641_vm1, %v6395_v25  ;;  %v834_v15 = vor.u32 %v832_v54, %v831_v38  ;;  %v11301_v54 = vshll.u32 %v8798_v48, 16 }
  0x7c   : > { %1860 = vst.msk [vmem:[#allocation2 + $0x394] sm:$0xf] %vm1641_vm1, %v8886_v61  ;;  %v8901_v8 = vld [vmem:[%s8219_s10 + $0x168] sm:$0xf]  ;;  %v8904_v31 = vld [vmem:[%s8219_s10 + $0x16c] sm:$0xf] }
  0x7d   : > { %v827_v25 = vsel %vm677_vm0, %v8768_v18, %v826_v34  ;;  %v841_v1 = vor.u32 %v11301_v54, %v838_v49  ;;  %v11302_v28 = vshrl.u32 %v8802_v29, 16  ;;  %v8912_v7 = vrot.slane %v847_v3, 1  ;;  %1861 = vst.msk [vmem:[#allocation2 + $0x398] sm:$0xf] %vm1641_vm1, %v8901_v8  ;;  %1862 = vst.msk [vmem:[#allocation2 + $0x39c] sm:$0xf] %vm1641_vm1, %v8904_v31 }
  0x7e   : > { %v8919_v17 = vld [vmem:[%s8219_s10 + $0x170] sm:$0xf]  ;;  %v8922_v10 = vld [vmem:[%s8219_s10 + $0x174] sm:$0xf]  ;;  %v6396_v18 = vcombine.low %v827_v25, %v827_v25  ;;  %v6397_v34 = vcombine.high %v827_v25, %v827_v25  ;;  %v1202_v49 = vsel %vm8265_vm3, 0, %v834_v15  ;;  %vm2092_vm5 = vcmask 1047552  }
  0x7f   : > { %v846_v50 = vrot.slane %v11302_v28, 7  ;;  %11303 = vst [vmem:[#allocation42_spill] sm:$0xff] %v8912_v7  ;;  %v11304_v28 = vshrl.u32 %v8806_v35, 16  ;;  %1863 = vst.msk [vmem:[#allocation2 + $0x3a0] sm:$0xf] %vm1641_vm1, %v8919_v17  ;;  %v6398_v48 = vcombine.low %v1202_v49, %v1202_v49  ;;  %v6399_v5 = vcombine.high %v1202_v49, %v1202_v49 }
  0x80   : > { %1864 = vst.msk [vmem:[#allocation2 + $0x3a4] sm:$0xf] %vm1641_vm1, %v8922_v10  ;;  %v8933_v7 = vld [vmem:[%s8219_s10 + $0x178] sm:$0xf]  ;;  %v8936_v29 = vld [vmem:[%s8219_s10 + $0x17c] sm:$0xf]  ;;  %v842_v25 = vsel %vm677_vm0, %v831_v38, %v841_v1 }
  0x81   : > { %v853_v54 = vrot.slane %v11304_v28, 7  ;;  %11305 = vst [vmem:[#allocation43_spill] sm:$0xff] %v8933_v7  ;;  %11306 = vst [vmem:[#allocation44_spill] sm:$0xff] %v8936_v29  ;;  %v849_v19 = vor.u32 %v847_v3, %v846_v50  ;;  %v8944_v15 = vld [vmem:[%s8219_s10 + $0x180] sm:$0xf]  ;;  %v6400_v49 = vcombine.low %v842_v25, %v842_v25  ;;  %v6401_v38 = vcombine.high %v842_v25, %v842_v25 }
  0x82   : > { %1865 = vst.msk [vmem:[#allocation2 + $0x3a8] sm:$0xf] %vm1641_vm1, %v8933_v7  ;;  %1866 = vst.msk [vmem:[#allocation2 + $0x3ac] sm:$0xf] %vm1641_vm1, %v8936_v29  ;;  %v8947_v28 = vld [vmem:[%s8219_s10 + $0x184] sm:$0xf]  ;;  %v8976_v25 = vcombine.low %v8567_v39, %v8570_v40 }
  0x83   : > { %v8950_v2 = vld [vmem:[%s8219_s10 + $0x188] sm:$0xf]  ;;  %1680 = vst.msk [vmem:[#allocation2 + $0xa8] sm:$0xf] %vm1641_vm1, %v6396_v18  ;;  %1681 = vst.msk [vmem:[#allocation2 + $0xac] sm:$0xf] %vm1641_vm1, %v6397_v34 }
  0x84   : > { %v11307_v3 = vshll.u32 %v8806_v35, 16  ;;  %v11172_v7 = vshrl.u32 %v8896_v24, 16  ;;  %1867 = vst.msk [vmem:[#allocation2 + $0x3b0] sm:$0xf] %vm1641_vm1, %v8944_v15  ;;  %1868 = vst.msk [vmem:[#allocation2 + $0x3b4] sm:$0xf] %vm1641_vm1, %v8947_v28 }
  0x85   : > { %v8962_v29 = vld [vmem:[%s8219_s10 + $0x18c] sm:$0xf]  ;;  %1869 = vst.msk [vmem:[#allocation2 + $0x3b8] sm:$0xf] %vm1641_vm1, %v8950_v2  ;;  %v8967_v18 = vld [vmem:[%s8219_s10 + $0x190] sm:$0xf] }
  0x86   : > { %v856_v1 = vor.u32 %v11307_v3, %v853_v54  ;;  %11308 = vst [vmem:[#allocation45_spill] sm:$0xff] %v8967_v18  ;;  %1682 = vst.msk [vmem:[#allocation2 + $0xb0] sm:$0xf] %vm1641_vm1, %v6398_v48  ;;  %v1203_v34 = vsel %vm8265_vm3, 0, %v849_v19  ;;  %v862_v54 = vshll.u32 %v8896_v24, 16  ;;  %v8980_v3 = vcombine.low %v8577_v47, %v8580_v52 }
  0x87   : > { %1683 = vst.msk [vmem:[#allocation2 + $0xb4] sm:$0xf] %vm1641_vm1, %v6399_v5  ;;  %11309 = vst [vmem:[#allocation46_spill] sm:$0xff] %v8976_v25  ;;  %v8985_v48 = vld [vmem:[%s8219_s10 + $0x194] sm:$0xf]  ;;  %v6402_v19 = vcombine.low %v1203_v34, %v1203_v34  ;;  %v6403_v39 = vcombine.high %v1203_v34, %v1203_v34  ;;  %v861_v47 = vrot.slane %v11172_v7, 7  ;;  %v9042_v7 = vcombine.low %v8608_v13, %v8611_v45 }
  0x88   : > { %11310 = vst [vmem:[#allocation47_spill] sm:$0xff] %v8980_v3  ;;  %1870 = vst.msk [vmem:[#allocation2 + $0x3bc] sm:$0xf] %vm1641_vm1, %v8962_v29  ;;  %v8990_v5 = vld [vmem:[%s8219_s10 + $0x198] sm:$0xf]  ;;  %v857_v40 = vsel %vm677_vm0, %v846_v50, %v856_v1  ;;  %v9046_v50 = vcombine.low %v8625_v37, %v8635_v14  ;;  %v9064_v14 = vcombine.low %v8647_v26, %v8650_v20 }
  0x89   : > { %1871 = vst.msk [vmem:[#allocation2 + $0x3c0] sm:$0xf] %vm1641_vm1, %v8967_v18  ;;  %1684 = vst.msk [vmem:[#allocation2 + $0xb8] sm:$0xf] %vm1641_vm1, %v6400_v49  ;;  %v9000_v52 = vld [vmem:[%s8219_s10 + $0x19c] sm:$0xf]  ;;  %v6404_v49 = vcombine.low %v857_v40, %v857_v40 }
  0x8a   : > { %1685 = vst.msk [vmem:[#allocation2 + $0xbc] sm:$0xf] %vm1641_vm1, %v6401_v38  ;;  %1872 = vst.msk [vmem:[#allocation2 + $0x3c4] sm:$0xf] %vm1641_vm1, %v8985_v48  ;;  %v9005_v35 = vld [vmem:[%s8219_s10 + $0x1a0] sm:$0xf]  ;;  %v6405_v38 = vcombine.high %v857_v40, %v857_v40  ;;  %v864_v40 = vor.u32 %v862_v54, %v861_v47 }
  0x8b   : > { %1873 = vst.msk [vmem:[#allocation2 + $0x3c8] sm:$0xf] %vm1641_vm1, %v8990_v5  ;;  %v9007_v18 = vrot.slane %v862_v54, 1  ;;  %1874 = vst.msk [vmem:[#allocation2 + $0x3cc] sm:$0xf] %vm1641_vm1, %v9000_v52  ;;  %v11313_v54 = vshrl.u32 %v8976_v25, 16 }
  0x8c   : > { %v9013_v1 = vld [vmem:[%s8219_s10 + $0x1a4] sm:$0xf]  ;;  %1875 = vst.msk [vmem:[#allocation2 + $0x3d0] sm:$0xf] %vm1641_vm1, %v9005_v35  ;;  %v9018_v34 = vld [vmem:[%s8219_s10 + $0x1a8] sm:$0xf] }
  0x8d   : > { %11311 = vst [vmem:[#allocation48_spill] sm:$0xff] %v9007_v18  ;;  %11312 = vst [vmem:[#allocation49_spill] sm:$0xff] %v9018_v34  ;;  %v877_v18 = vshll.u32 %v8980_v3, 16  ;;  %v9028_v24 = vld [vmem:[%s8219_s10 + $0x1ac] sm:$0xf] }
  0x8e   : > { %1686 = vst.msk [vmem:[#allocation2 + $0xc0] sm:$0xf] %vm1641_vm1, %v6402_v19  ;;  %1687 = vst.msk [vmem:[#allocation2 + $0xc4] sm:$0xf] %vm1641_vm1, %v6403_v39  ;;  %v868_v19 = vrot.slane %v11313_v54, 7  ;;  %v9038_v39 = vcombine.low %v8583_v56, %v8595_v60  ;;  %v1204_v60 = vsel %vm8265_vm3, 0, %v864_v40 }
  0x8f   : > { %1876 = vst.msk [vmem:[#allocation2 + $0x3d4] sm:$0xf] %vm1641_vm1, %v9013_v1  ;;  %1877 = vst.msk [vmem:[#allocation2 + $0x3d8] sm:$0xf] %vm1641_vm1, %v9018_v34  ;;  %v11319_v56 = vshrl.u32 %v8980_v3, 16  ;;  %v9060_v45 = vrot.slane %v877_v18, 1  ;;  %v6406_v54 = vcombine.low %v1204_v60, %v1204_v60  ;;  %v6407_v40 = vcombine.high %v1204_v60, %v1204_v60 }
  0x90   : > { %1688 = vst.msk [vmem:[#allocation2 + $0xc8] sm:$0xf] %vm1641_vm1, %v6404_v49  ;;  %1689 = vst.msk [vmem:[#allocation2 + $0xcc] sm:$0xf] %vm1641_vm1, %v6405_v38  ;;  %v9051_v49 = vld [vmem:[%s8219_s10 + $0x1b0] sm:$0xf] }
  0x91   : > { %11314 = vst [vmem:[#allocation50_spill] sm:$0xff] %v9038_v39  ;;  %11315 = vst [vmem:[#allocation51_spill] sm:$0xff] %v9042_v7  ;;  %v9054_v38 = vld [vmem:[%s8219_s10 + $0x1b4] sm:$0xf]  ;;  %v876_v13 = vrot.slane %v11319_v56, 7  ;;  %v11323_v3 = vshll.u32 %v8976_v25, 16 }
  0x92   : > { %11316 = vst [vmem:[#allocation52_spill] sm:$0xff] %v9046_v50  ;;  %1878 = vst.msk [vmem:[#allocation2 + $0x3dc] sm:$0xf] %vm1641_vm1, %v9028_v24  ;;  %v9071_v37 = vld [vmem:[%s8219_s10 + $0x1b8] sm:$0xf]  ;;  %v892_v60 = vshll.u32 %v9042_v7, 16 }
  0x93   : > { %11317 = vst [vmem:[#allocation53_spill] sm:$0xff] %v9051_v49  ;;  %11318 = vst [vmem:[#allocation54_spill] sm:$0xff] %v9054_v38  ;;  %v871_v56 = vor.u32 %v11323_v3, %v868_v19  ;;  %v9077_v34 = vld [vmem:[%s8219_s10 + $0x1bc] sm:$0xf]  ;;  %v9082_v20 = vld [vmem:[%s8219_s10 + $0x1c0] sm:$0xf]  ;;  %v879_v26 = vor.u32 %v877_v18, %v876_v13 }
  0x94   : > { %11320 = vst [vmem:[#allocation55_spill] sm:$0xff] %v9060_v45  ;;  %11321 = vst [vmem:[#allocation56_spill] sm:$0xff] %v9064_v14  ;;  %v11181_v45 = vshrl.u32 %v9038_v39, 16  ;;  %v9090_v3 = vld [vmem:[%s8219_s10 + $0x1c4] sm:$0xf] }
  0x95   : > { %1879 = vst.msk [vmem:[#allocation2 + $0x3e0] sm:$0xf] %vm1641_vm1, %v9051_v49  ;;  %1880 = vst.msk [vmem:[#allocation2 + $0x3e4] sm:$0xf] %vm1641_vm1, %v9054_v38  ;;  %v872_v18 = vsel %vm677_vm0, %v861_v47, %v871_v56  ;;  %v9104_v25 = vld [vmem:[%s8219_s10 + $0x1c8] sm:$0xf] }
  0x96   : > { %11322 = vst [vmem:[#allocation57_spill] sm:$0xff] %v9071_v37  ;;  %11324 = vst [vmem:[#allocation58_spill] sm:$0xff] %v9077_v34  ;;  %v883_v19 = vrot.slane %v11181_v45, 7  ;;  %v11327_v47 = vshrl.u32 %v9042_v7, 16  ;;  %v9111_v45 = vld [vmem:[%s8219_s10 + $0x1cc] sm:$0xf] }
  0x97   : > { %1881 = vst.msk [vmem:[#allocation2 + $0x3e8] sm:$0xf] %vm1641_vm1, %v9071_v37  ;;  %11325 = vst [vmem:[#allocation59_spill] sm:$0xff] %v9082_v20  ;;  %v9116_v38 = vld [vmem:[%s8219_s10 + $0x1d0] sm:$0xf]  ;;  %v11328_v37 = vshll.u32 %v9038_v39, 16 }
  0x98   : > { %1882 = vst.msk [vmem:[#allocation2 + $0x3ec] sm:$0xf] %vm1641_vm1, %v9077_v34  ;;  %11326 = vst [vmem:[#allocation60_spill] sm:$0xff] %v9090_v3  ;;  %v891_v56 = vrot.slane %v11327_v47, 7  ;;  %v9130_v47 = vld [vmem:[%s8219_s10 + $0x1d8] sm:$0xf] }
  0x99   : > { %1883 = vst.msk [vmem:[#allocation2 + $0x3f0] sm:$0xf] %vm1641_vm1, %v9082_v20  ;;  %1690 = vst.msk [vmem:[#allocation2 + $0xd0] sm:$0xf] %vm1641_vm1, %v6406_v54  ;;  %v6408_v20 = vcombine.low %v872_v18, %v872_v18  ;;  %v6409_v54 = vcombine.high %v872_v18, %v872_v18  ;;  %v886_v34 = vor.u32 %v11328_v37, %v883_v19  ;;  %v9120_v18 = vrot.slane %v892_v60, 1 }
  0x9a   : > { %1691 = vst.msk [vmem:[#allocation2 + $0xd4] sm:$0xf] %vm1641_vm1, %v6407_v40  ;;  %1884 = vst.msk [vmem:[#allocation2 + $0x3f4] sm:$0xf] %vm1641_vm1, %v9090_v3  ;;  %v1205_v40 = vsel %vm8265_vm3, 0, %v879_v26  ;;  %v11330_v37 = vshrl.u32 %v9046_v50, 16 }
  0x9b   : > { %1885 = vst.msk [vmem:[#allocation2 + $0x3f8] sm:$0xf] %vm1641_vm1, %v9104_v25  ;;  %v6410_v49 = vcombine.low %v1205_v40, %v1205_v40  ;;  %v6411_v3 = vcombine.high %v1205_v40, %v1205_v40  ;;  %11329 = vst [vmem:[#allocation61_spill] sm:$0xff] %v9120_v18  ;;  %v9125_v26 = vld [vmem:[%s8219_s10 + $0x1d4] sm:$0xf]  ;;  %v894_v40 = vor.u32 %v892_v60, %v891_v56  ;;  %v907_v7 = vshll.u32 %v9064_v14, 16 }
  0x9c   : > { %1886 = vst.msk [vmem:[#allocation2 + $0x3fc] sm:$0xf] %vm1641_vm1, %v9111_v45  ;;  %1887 = vst.msk [vmem:[#allocation2 + $0x400] sm:$0xf] %vm1641_vm1, %v9116_v38  ;;  %v898_v19 = vrot.slane %v11330_v37, 7  ;;  %v9150_v60 = vcombine.low %v8667_v30, %v8670_v59  ;;  %v9158_v37 = vcombine.low %v8696_v0, %v8699_v22 }
  0x9d   : > { %1692 = vst.msk [vmem:[#allocation2 + $0xd8] sm:$0xf] %vm1641_vm1, %v6408_v20  ;;  %1693 = vst.msk [vmem:[#allocation2 + $0xdc] sm:$0xf] %vm1641_vm1, %v6409_v54  ;;  %v9141_v39 = vld [vmem:[%s8219_s10 + $0x1dc] sm:$0xf]  ;;  %v887_v20 = vsel %vm677_vm0, %v876_v13, %v886_v34  ;;  %v9154_v54 = vcombine.low %v8686_v33, %v8689_v62 }
  0x9e   : > { %1888 = vst.msk [vmem:[#allocation2 + $0x404] sm:$0xf] %vm1641_vm1, %v9125_v26  ;;  %1889 = vst.msk [vmem:[#allocation2 + $0x408] sm:$0xf] %vm1641_vm1, %v9130_v47  ;;  %v9169_v34 = vld [vmem:[%s8219_s10 + $0x1e8] sm:$0xf]  ;;  %v6412_v30 = vcombine.low %v887_v20, %v887_v20  ;;  %v6413_v59 = vcombine.high %v887_v20, %v887_v20 }
  0x9f   : > { %1694 = vst.msk [vmem:[#allocation2 + $0xe0] sm:$0xf] %vm1641_vm1, %v6410_v49  ;;  %1695 = vst.msk [vmem:[#allocation2 + $0xe4] sm:$0xf] %vm1641_vm1, %v6411_v3  ;;  %v9163_v49 = vld [vmem:[%s8219_s10 + $0x1e0] sm:$0xf] }
  0xa0   : > { %11331 = vst [vmem:[#allocation62_spill] sm:$0xff] %v9154_v54  ;;  %1890 = vst.msk [vmem:[#allocation2 + $0x40c] sm:$0xf] %vm1641_vm1, %v9141_v39  ;;  %v9166_v3 = vld [vmem:[%s8219_s10 + $0x1e4] sm:$0xf]  ;;  %v1206_v33 = vsel %vm8265_vm3, 0, %v894_v40 }
  0xa1   : > { %11332 = vst [vmem:[#allocation63_spill] sm:$0xff] %v9163_v49  ;;  %11333 = vst [vmem:[#allocation64_spill] sm:$0xff] %v9169_v34  ;;  %v11334_v62 = vshll.u32 %v9046_v50, 16  ;;  %v9180_v22 = vld [vmem:[%s8219_s10 + $0x1ec] sm:$0xf]  ;;  %v6414_v20 = vcombine.low %v1206_v33, %v1206_v33  ;;  %v6415_v18 = vcombine.high %v1206_v33, %v1206_v33  ;;  %v11336_v40 = vshrl.u32 %v9064_v14, 16 }
  0xa2   : > { %1891 = vst.msk [vmem:[#allocation2 + $0x410] sm:$0xf] %vm1641_vm1, %v9163_v49  ;;  %1892 = vst.msk [vmem:[#allocation2 + $0x414] sm:$0xf] %vm1641_vm1, %v9166_v3  ;;  %v9185_v13 = vld [vmem:[%s8219_s10 + $0x1f0] sm:$0xf] }
  0xa3   : > { %v901_v0 = vor.u32 %v11334_v62, %v898_v19  ;;  %1893 = vst.msk [vmem:[#allocation2 + $0x418] sm:$0xf] %vm1641_vm1, %v9169_v34  ;;  %11335 = vst [vmem:[#allocation65_spill] sm:$0xff] %v9185_v13  ;;  %v906_v50 = vrot.slane %v11336_v40, 7  ;;  %v9189_v19 = vrot.slane %v907_v7, 1  ;;  %v11196_v40 = vshrl.u32 %v9150_v60, 16 }
  0xa4   : > { %1894 = vst.msk [vmem:[#allocation2 + $0x41c] sm:$0xf] %vm1641_vm1, %v9180_v22  ;;  %v9194_v62 = vld [vmem:[%s8219_s10 + $0x1f4] sm:$0xf]  ;;  %1895 = vst.msk [vmem:[#allocation2 + $0x420] sm:$0xf] %vm1641_vm1, %v9185_v13 }
  0xa5   : > { %11337 = vst [vmem:[#allocation66_spill] sm:$0xff] %v9189_v19  ;;  %v9199_v49 = vld [vmem:[%s8219_s10 + $0x1f8] sm:$0xf]  ;;  %1696 = vst.msk [vmem:[#allocation2 + $0xe8] sm:$0xf] %vm1641_vm1, %v6412_v30  ;;  %v902_v33 = vsel %vm677_vm0, %v891_v56, %v901_v0  ;;  %v11195_v14 = vshrl.u32 %v9154_v54, 16 }
  0xa6   : > { %11338 = vst [vmem:[#allocation67_spill] sm:$0xff] %v9199_v49  ;;  %1697 = vst.msk [vmem:[#allocation2 + $0xec] sm:$0xf] %vm1641_vm1, %v6413_v59  ;;  %v9210_v34 = vld [vmem:[%s8219_s10 + $0x1fc] sm:$0xf]  ;;  %v6416_v30 = vcombine.low %v902_v33, %v902_v33  ;;  %v6417_v56 = vcombine.high %v902_v33, %v902_v33  ;;  %v909_v59 = vor.u32 %v907_v7, %v906_v50  ;;  %v922_v0 = vshll.u32 %v9154_v54, 16 }
  0xa7   : > { %1896 = vst.msk [vmem:[#allocation2 + $0x424] sm:$0xf] %vm1641_vm1, %v9194_v62  ;;  %11339 = vst [vmem:[#allocation68_spill] sm:$0xff] %v9210_v34  ;;  %v913_v19 = vrot.slane %v11196_v40, 7  ;;  %v921_v13 = vrot.slane %v11195_v14, 7  ;;  %v9233_v33 = vcombine.low %v8702_v53, %v8715_v16  ;;  %v9237_v14 = vcombine.low %v8720_v21, %v8731_v46 }
  0xa8   : > { %1897 = vst.msk [vmem:[#allocation2 + $0x428] sm:$0xf] %vm1641_vm1, %v9199_v49  ;;  %1698 = vst.msk [vmem:[#allocation2 + $0xf0] sm:$0xf] %vm1641_vm1, %v6414_v20  ;;  %v1207_v7 = vsel %vm8265_vm3, 0, %v909_v59  ;;  %v11341_v20 = vshll.u32 %v9150_v60, 16 }
  0xa9   : > { %1699 = vst.msk [vmem:[#allocation2 + $0xf4] sm:$0xf] %vm1641_vm1, %v6415_v18  ;;  %1898 = vst.msk [vmem:[#allocation2 + $0x42c] sm:$0xf] %vm1641_vm1, %v9210_v34  ;;  %v9229_v18 = vrot.slane %v922_v0, 1  ;;  %v6418_v40 = vcombine.low %v1207_v7, %v1207_v7  ;;  %v6419_v49 = vcombine.high %v1207_v7, %v1207_v7  ;;  %v924_v54 = vor.u32 %v922_v0, %v921_v13 }
  0xaa   : > { %1700 = vst.msk [vmem:[#allocation2 + $0xf8] sm:$0xf] %vm1641_vm1, %v6416_v30  ;;  %1701 = vst.msk [vmem:[#allocation2 + $0xfc] sm:$0xf] %vm1641_vm1, %v6417_v56  ;;  %v916_v30 = vor.u32 %v11341_v20, %v913_v19  ;;  %v11342_v56 = vshrl.u32 %v9158_v37, 16  ;;  %v11227_v59 = vshrl.u32 %v9233_v33, 16  ;;  %v9254_v19 = vcombine.low %v8736_v6, %v8747_v41 }
  0xab   : > { %11340 = vst [vmem:[#allocation69_spill] sm:$0xff] %v9229_v18  ;;  %v937_v18 = vshll.u32 %v9233_v33, 16  ;;  %1702 = vst.msk [vmem:[#allocation2 + $0x100] sm:$0xf] %vm1641_vm1, %v6418_v40  ;;  %v1208_v53 = vsel %vm8265_vm3, 0, %v924_v54  ;;  %v11222_v21 = vshll.u32 %v9237_v14, 16 }
  0xac   : > { %v928_v34 = vrot.slane %v11342_v56, 7  ;;  %1703 = vst.msk [vmem:[#allocation2 + $0x104] sm:$0xf] %vm1641_vm1, %v6419_v49  ;;  %v917_v46 = vsel %vm677_vm0, %v906_v50, %v916_v30  ;;  %v6422_v7 = vcombine.low %v1208_v53, %v1208_v53  ;;  %v6423_v56 = vcombine.high %v1208_v53, %v1208_v53 }
  0xad   : > { %v6420_v0 = vcombine.low %v917_v46, %v917_v46  ;;  %v6421_v20 = vcombine.high %v917_v46, %v917_v46  ;;  %v11343_v16 = vshll.u32 %v9158_v37, 16  ;;  %v936_v49 = vrot.slane %v11227_v59, 7 }
  0xae   : > { %v9260_v50 = vrot.slane %v937_v18, 1  ;;  %v11344_v54 = vshrl.u32 %v9237_v14, 16  ;;  %1706 = vst.msk [vmem:[#allocation2 + $0x110] sm:$0xf] %vm1641_vm1, %v6422_v7  ;;  %1707 = vst.msk [vmem:[#allocation2 + $0x114] sm:$0xf] %vm1641_vm1, %v6423_v56 }
  0xaf   : > { %v931_v40 = vor.u32 %v11343_v16, %v928_v34  ;;  %1704 = vst.msk [vmem:[#allocation2 + $0x108] sm:$0xf] %vm1641_vm1, %v6420_v0  ;;  %1705 = vst.msk [vmem:[#allocation2 + $0x10c] sm:$0xf] %vm1641_vm1, %v6421_v20  ;;  %v11205_v41 = vshrl.u32 %v9254_v19, 16  ;;  %v952_v6 = vshll.u32 %v9254_v19, 16  ;;  %v9272_v34 = vcombine.low %v8756_v4, %v8759_v12 }
  0xb0   : > { %v943_v30 = vrot.slane %v11344_v54, 7  ;;  %v9276_v16 = vcombine.low %v8762_v11, %v8781_v51  ;;  %v939_v53 = vor.u32 %v937_v18, %v936_v49  ;;  %v9283_v20 = vcombine.low %v8786_v9, %v8811_v42 }
  0xb1   : > { %v932_v46 = vsel %vm677_vm0, %v921_v13, %v931_v40  ;;  %v951_v12 = vrot.slane %v11205_v41, 7  ;;  %v9287_v4 = vrot.slane %v952_v6, 1  ;;  %v11199_v13 = vshrl.u32 %v9272_v34, 16 }
  0xb2   : > { %v946_v0 = vor.u32 %v11222_v21, %v943_v30  ;;  %v6424_v7 = vcombine.low %v932_v46, %v932_v46  ;;  %v6425_v56 = vcombine.high %v932_v46, %v932_v46  ;;  %v1209_v11 = vsel %vm8265_vm3, 0, %v939_v53 }
  0xb3   : > { %v11204_v18 = vshll.u32 %v9272_v34, 16  ;;  %v6426_v9 = vcombine.low %v1209_v11, %v1209_v11  ;;  %v6427_v42 = vcombine.high %v1209_v11, %v1209_v11  ;;  %v954_v30 = vor.u32 %v952_v6, %v951_v12 }
  0xb4   : > { %v947_v51 = vsel %vm677_vm0, %v936_v49, %v946_v0  ;;  %1708 = vst.msk [vmem:[#allocation2 + $0x118] sm:$0xf] %vm1641_vm1, %v6424_v7  ;;  %1709 = vst.msk [vmem:[#allocation2 + $0x11c] sm:$0xf] %vm1641_vm1, %v6425_v56  ;;  %v958_v46 = vrot.slane %v11199_v13, 7  ;;  %v11200_v53 = vshrl.u32 %v9276_v16, 16  ;;  %v9308_v6 = vcombine.low %v8816_v44, %v8819_v57 }
  0xb5   : > { %v6428_v40 = vcombine.low %v947_v51, %v947_v51  ;;  %v6429_v54 = vcombine.high %v947_v51, %v947_v51  ;;  %v967_v49 = vshll.u32 %v9276_v16, 16  ;;  %1710 = vst.msk [vmem:[#allocation2 + $0x120] sm:$0xf] %vm1641_vm1, %v6426_v9  ;;  %1711 = vst.msk [vmem:[#allocation2 + $0x124] sm:$0xf] %vm1641_vm1, %v6427_v42  ;;  %v11201_v0 = vshrl.u32 %v9283_v20, 16 }
  0xb6   : > { %v11202_v7 = vshll.u32 %v9283_v20, 16  ;;  %v9312_v56 = vcombine.low %v8833_v63, %v8836_v36  ;;  %v1210_v11 = vsel %vm8265_vm3, 0, %v954_v30  ;;  %v961_v51 = vor.u32 %v11204_v18, %v958_v46 }
  0xb7   : > { %1712 = vst.msk [vmem:[#allocation2 + $0x128] sm:$0xf] %vm1641_vm1, %v6428_v40  ;;  %1713 = vst.msk [vmem:[#allocation2 + $0x12c] sm:$0xf] %vm1641_vm1, %v6429_v54  ;;  %v966_v9 = vrot.slane %v11200_v53, 7  ;;  %v9320_v42 = vrot.slane %v967_v49, 1  ;;  %v6430_v40 = vcombine.low %v1210_v11, %v1210_v11  ;;  %v6431_v54 = vcombine.high %v1210_v11, %v1210_v11 }
  0xb8   : > { %v973_v44 = vrot.slane %v11201_v0, 7  ;;  %v11203_v57 = vshrl.u32 %v9308_v6, 16  ;;  %v962_v63 = vsel %vm677_vm0, %v951_v12, %v961_v51  ;;  %v982_v30 = vshll.u32 %v9308_v6, 16 }
  0xb9   : > { %v969_v36 = vor.u32 %v967_v49, %v966_v9  ;;  %v11216_v13 = vshrl.u32 %v9312_v56, 16  ;;  %1714 = vst.msk [vmem:[#allocation2 + $0x130] sm:$0xf] %vm1641_vm1, %v6430_v40  ;;  %1715 = vst.msk [vmem:[#allocation2 + $0x134] sm:$0xf] %vm1641_vm1, %v6431_v54  ;;  %v6432_v46 = vcombine.low %v962_v63, %v962_v63  ;;  %v6433_v53 = vcombine.high %v962_v63, %v962_v63 }
  0xba   : > { %v976_v11 = vor.u32 %v11202_v7, %v973_v44  ;;  %v981_v0 = vrot.slane %v11203_v57, 7  ;;  %v9336_v49 = vrot.slane %v982_v30, 1  ;;  %v11221_v40 = vshll.u32 %v9312_v56, 16 }
  0xbb   : > { %v1211_v12 = vsel %vm8265_vm3, 0, %v969_v36  ;;  %v988_v51 = vrot.slane %v11216_v13, 7  ;;  %1716 = vst.msk [vmem:[#allocation2 + $0x138] sm:$0xf] %vm1641_vm1, %v6432_v46  ;;  %1717 = vst.msk [vmem:[#allocation2 + $0x13c] sm:$0xf] %vm1641_vm1, %v6433_v53  ;;  %v9348_v41 = vcombine.low %v8845_v55, %v8848_v43  ;;  %v9364_v46 = vcombine.low %v8901_v8, %v8904_v31 }
  0xbc   : > { %v6434_v54 = vcombine.low %v1211_v12, %v1211_v12  ;;  %v6435_v63 = vcombine.high %v1211_v12, %v1211_v12  ;;  %v977_v44 = vsel %vm677_vm0, %v966_v9, %v976_v11  ;;  %v984_v7 = vor.u32 %v982_v30, %v981_v0 }
  0xbd   : > { %v6436_v57 = vcombine.low %v977_v44, %v977_v44  ;;  %v6437_v18 = vcombine.high %v977_v44, %v977_v44  ;;  %v991_v36 = vor.u32 %v11221_v40, %v988_v51  ;;  %v9356_v9 = vcombine.low %v8861_v58, %v8870_v32 }
  0xbe   : > { %1718 = vst.msk [vmem:[#allocation2 + $0x140] sm:$0xf] %vm1641_vm1, %v6434_v54  ;;  %1719 = vst.msk [vmem:[#allocation2 + $0x144] sm:$0xf] %vm1641_vm1, %v6435_v63  ;;  %v1212_v53 = vsel %vm8265_vm3, 0, %v984_v7  ;;  %v9360_v30 = vcombine.low %v8875_v27, %v8886_v61  ;;  %v11210_v11 = vshrl.u32 %v9348_v41, 16 }
  0xbf   : > { %1720 = vst.msk [vmem:[#allocation2 + $0x148] sm:$0xf] %vm1641_vm1, %v6436_v57  ;;  %1721 = vst.msk [vmem:[#allocation2 + $0x14c] sm:$0xf] %vm1641_vm1, %v6437_v18  ;;  %v6438_v55 = vcombine.low %v1212_v53, %v1212_v53  ;;  %v6439_v43 = vcombine.high %v1212_v53, %v1212_v53  ;;  %v992_v7 = vsel %vm677_vm0, %v981_v0, %v991_v36  ;;  %v997_v12 = vshll.u32 %v9348_v41, 16 }
  0xc0   : > { %v6440_v32 = vcombine.low %v992_v7, %v992_v7  ;;  %v6441_v58 = vcombine.high %v992_v7, %v992_v7  ;;  %v11206_v27 = vshrl.u32 %v9356_v9, 16  ;;  %v996_v31 = vrot.slane %v11210_v11, 7  ;;  %v11345_v7 = vld [vmem:[#allocation44_spill] sm:$0xff] }
  0xc1   : > { %1722 = vst.msk [vmem:[#allocation2 + $0x150] sm:$0xf] %vm1641_vm1, %v6438_v55  ;;  %1723 = vst.msk [vmem:[#allocation2 + $0x154] sm:$0xf] %vm1641_vm1, %v6439_v43  ;;  %v11208_v61 = vshll.u32 %v9356_v9, 16  ;;  %v11207_v8 = vshrl.u32 %v9360_v30, 16  ;;  %v9393_v53 = vcombine.low %v8919_v17, %v8922_v10 }
  0xc2   : > { %v1012_v18 = vshll.u32 %v9360_v30, 16  ;;  %1724 = vst.msk [vmem:[#allocation2 + $0x158] sm:$0xf] %vm1641_vm1, %v6440_v32  ;;  %1725 = vst.msk [vmem:[#allocation2 + $0x15c] sm:$0xf] %vm1641_vm1, %v6441_v58  ;;  %v9381_v0 = vrot.slane %v997_v12, 1  ;;  %v999_v63 = vor.u32 %v997_v12, %v996_v31  ;;  %v9405_v12 = vcombine.low %v8944_v15, %v8947_v28 }
  0xc3   : > { %v1003_v57 = vrot.slane %v11206_v27, 7  ;;  %v11209_v51 = vshrl.u32 %v9364_v46, 16  ;;  %v11215_v54 = vshll.u32 %v9364_v46, 16  ;;  %v1011_v44 = vrot.slane %v11207_v8, 7  ;;  %v11346_v32 = vld [vmem:[#allocation43_spill] sm:$0xff] }
  0xc4   : > { %v9389_v36 = vrot.slane %v1012_v18, 1  ;;  %v9401_v58 = vcombine.low %v11346_v32, %v11345_v7  ;;  %v1213_v27 = vsel %vm8265_vm3, 0, %v999_v63  ;;  %v11214_v10 = vshrl.u32 %v9393_v53, 16 }
  0xc5   : > { %v1006_v55 = vor.u32 %v11208_v61, %v1003_v57  ;;  %v1018_v43 = vrot.slane %v11209_v51, 7  ;;  %v1014_v8 = vor.u32 %v1012_v18, %v1011_v44  ;;  %v1027_v17 = vshll.u32 %v9393_v53, 16 }
  0xc6   : > { %v6442_v57 = vcombine.low %v1213_v27, %v1213_v27  ;;  %v6443_v61 = vcombine.high %v1213_v27, %v1213_v27  ;;  %v1026_v28 = vrot.slane %v11214_v10, 7  ;;  %vm1899_vm4 = vsmask.f32 7424 }
  0xc7   : > { %v1007_v51 = vsel %vm677_vm0, %v996_v31, %v1006_v55  ;;  %v1021_v7 = vor.u32 %v11215_v54, %v1018_v43  ;;  %v1214_v15 = vsel %vm8265_vm3, 0, %v1014_v8  ;;  %v9421_v31 = vrot.slane %v1027_v17, 1  ;;  %vm9669_vm6 = vmand %vm2092_vm5, %vm1899_vm4 }
  0xc8   : > { %v6444_v32 = vcombine.low %v1007_v51, %v1007_v51  ;;  %v6445_v11 = vcombine.high %v1007_v51, %v1007_v51  ;;  %1726 = vst.msk [vmem:[#allocation2 + $0x160] sm:$0xf] %vm1641_vm1, %v6442_v57  ;;  %1727 = vst.msk [vmem:[#allocation2 + $0x164] sm:$0xf] %vm1641_vm1, %v6443_v61  ;;  %v6446_v18 = vcombine.low %v1214_v15, %v1214_v15  ;;  %v11211_v43 = vshrl.u32 %v9401_v58, 16 }
  0xc9   : > { %v6447_v63 = vcombine.high %v1214_v15, %v1214_v15  ;;  %v1022_v27 = vsel %vm677_vm0, %v1011_v44, %v1021_v7  ;;  %v1029_v8 = vor.u32 %v1027_v17, %v1026_v28  ;;  %v11213_v61 = vshll.u32 %v9401_v58, 16 }
  0xca   : > { %1728 = vst.msk [vmem:[#allocation2 + $0x168] sm:$0xf] %vm1641_vm1, %v6444_v32  ;;  %1729 = vst.msk [vmem:[#allocation2 + $0x16c] sm:$0xf] %vm1641_vm1, %v6445_v11  ;;  %v6448_v51 = vcombine.low %v1022_v27, %v1022_v27  ;;  %v6449_v55 = vcombine.high %v1022_v27, %v1022_v27  ;;  %v11212_v57 = vshrl.u32 %v9405_v12, 16  ;;  %v1042_v44 = vshll.u32 %v9405_v12, 16 }
  0xcb   : > { %1730 = vst.msk [vmem:[#allocation2 + $0x170] sm:$0xf] %vm1641_vm1, %v6446_v18  ;;  %1731 = vst.msk [vmem:[#allocation2 + $0x174] sm:$0xf] %vm1641_vm1, %v6447_v63  ;;  %v9433_v7 = vcombine.low %v8950_v2, %v8962_v29  ;;  %v1215_v11 = vsel %vm8265_vm3, 0, %v1029_v8  ;;  %v1033_v17 = vrot.slane %v11211_v43, 7  ;;  %v9447_v18 = vcombine.low %v8990_v5, %v9000_v52 }
  0xcc   : > { %1732 = vst.msk [vmem:[#allocation2 + $0x178] sm:$0xf] %vm1641_vm1, %v6448_v51  ;;  %1733 = vst.msk [vmem:[#allocation2 + $0x17c] sm:$0xf] %vm1641_vm1, %v6449_v55  ;;  %v11347_v32 = vld [vmem:[#allocation45_spill] sm:$0xff]  ;;  %v6450_v2 = vcombine.low %v1215_v11, %v1215_v11  ;;  %v6451_v29 = vcombine.high %v1215_v11, %v1215_v11  ;;  %v1041_v63 = vrot.slane %v11212_v57, 7 }
  0xcd   : > { %v9443_v15 = vcombine.low %v11347_v32, %v8985_v48  ;;  %v9451_v27 = vrot.slane %v1042_v44, 1  ;;  %v1036_v51 = vor.u32 %v11213_v61, %v1033_v17  ;;  %v11217_v55 = vshrl.u32 %v9433_v7, 16 }
  0xce   : > { %v11220_v8 = vshll.u32 %v9433_v7, 16  ;;  %1734 = vst.msk [vmem:[#allocation2 + $0x180] sm:$0xf] %vm1641_vm1, %v6450_v2  ;;  %1735 = vst.msk [vmem:[#allocation2 + $0x184] sm:$0xf] %vm1641_vm1, %v6451_v29  ;;  %v1044_v5 = vor.u32 %v1042_v44, %v1041_v63  ;;  %v11218_v11 = vshrl.u32 %v9447_v18, 16  ;;  %v9470_v2 = vcombine.low %v9005_v35, %v9013_v1 }
  0xcf   : > { %v11219_v48 = vshrl.u32 %v9443_v15, 16  ;;  %v1057_v52 = vshll.u32 %v9443_v15, 16  ;;  %v11224_v32 = vshll.u32 %v9447_v18, 16  ;;  %v1037_v43 = vsel %vm677_vm0, %v1026_v28, %v1036_v51 }
  0xd0   : > { %v1048_v17 = vrot.slane %v11217_v55, 7  ;;  %v6452_v29 = vcombine.low %v1037_v43, %v1037_v43  ;;  %v6453_v44 = vcombine.high %v1037_v43, %v1037_v43  ;;  %v1216_v61 = vsel %vm8265_vm3, 0, %v1044_v5  ;;  %v11348_v5 = vld [vmem:[#allocation49_spill] sm:$0xff] }
  0xd1   : > { %v1056_v57 = vrot.slane %v11219_v48, 7  ;;  %v9474_v10 = vrot.slane %v1057_v52, 1  ;;  %v6454_v54 = vcombine.low %v1216_v61, %v1216_v61  ;;  %v6455_v13 = vcombine.high %v1216_v61, %v1216_v61  ;;  %v11352_v48 = vld [vmem:[#allocation57_spill] sm:$0xff] }
  0xd2   : > { %v1051_v28 = vor.u32 %v11220_v8, %v1048_v17  ;;  %1736 = vst.msk [vmem:[#allocation2 + $0x188] sm:$0xf] %vm1641_vm1, %v6452_v29  ;;  %1737 = vst.msk [vmem:[#allocation2 + $0x18c] sm:$0xf] %vm1641_vm1, %v6453_v44  ;;  %v1063_v35 = vrot.slane %v11218_v11, 7  ;;  %v11223_v1 = vshrl.u32 %v9470_v2, 16  ;;  %v9486_v55 = vcombine.low %v11348_v5, %v9028_v24 }
  0xd3   : > { %v1059_v51 = vor.u32 %v1057_v52, %v1056_v57  ;;  %v1072_v43 = vshll.u32 %v9470_v2, 16  ;;  %1738 = vst.msk [vmem:[#allocation2 + $0x190] sm:$0xf] %vm1641_vm1, %v6454_v54  ;;  %1739 = vst.msk [vmem:[#allocation2 + $0x194] sm:$0xf] %vm1641_vm1, %v6455_v13  ;;  %v11349_v17 = vld [vmem:[#allocation54_spill] sm:$0xff] }
  0xd4   : > { %v1052_v61 = vsel %vm677_vm0, %v1041_v63, %v1051_v28  ;;  %v11350_v29 = vld [vmem:[#allocation53_spill] sm:$0xff]  ;;  %v11351_v11 = vld [vmem:[#allocation58_spill] sm:$0xff]  ;;  %v1066_v13 = vor.u32 %v11224_v32, %v1063_v35  ;;  %v1071_v54 = vrot.slane %v11223_v1, 7  ;;  %v11225_v28 = vshrl.u32 %v9486_v55, 16 }
  0xd5   : > { %v1217_v52 = vsel %vm8265_vm3, 0, %v1059_v51  ;;  %v9495_v44 = vcombine.low %v11350_v29, %v11349_v17  ;;  %v9499_v8 = vcombine.low %v11352_v48, %v11351_v11  ;;  %v6456_v40 = vcombine.low %v1052_v61, %v1052_v61 }
  0xd6   : > { %v6457_v24 = vcombine.high %v1052_v61, %v1052_v61  ;;  %v6458_v5 = vcombine.low %v1217_v52, %v1217_v52  ;;  %v6459_v21 = vcombine.high %v1217_v52, %v1217_v52  ;;  %v9505_v63 = vrot.slane %v1072_v43, 1 }
  0xd7   : > { %1740 = vst.msk [vmem:[#allocation2 + $0x198] sm:$0xf] %vm1641_vm1, %v6456_v40  ;;  %v11229_v48 = vshll.u32 %v9486_v55, 16  ;;  %v11226_v11 = vshrl.u32 %v9495_v44, 16  ;;  %v1087_v51 = vshll.u32 %v9495_v44, 16  ;;  %v11228_v35 = vshrl.u32 %v9499_v8, 16 }
  0xd8   : > { %1741 = vst.msk [vmem:[#allocation2 + $0x19c] sm:$0xf] %vm1641_vm1, %v6457_v24  ;;  %1742 = vst.msk [vmem:[#allocation2 + $0x1a0] sm:$0xf] %vm1641_vm1, %v6458_v5  ;;  %v1067_v61 = vsel %vm677_vm0, %v1056_v57, %v1066_v13  ;;  %v1074_v52 = vor.u32 %v1072_v43, %v1071_v54  ;;  %v1078_v40 = vrot.slane %v11225_v28, 7  ;;  %v11236_v17 = vshll.u32 %v9499_v8, 16 }
  0xd9   : > { %1743 = vst.msk [vmem:[#allocation2 + $0x1a4] sm:$0xf] %vm1641_vm1, %v6459_v21  ;;  %v6460_v29 = vcombine.low %v1067_v61, %v1067_v61  ;;  %v6461_v24 = vcombine.high %v1067_v61, %v1067_v61  ;;  %v1086_v21 = vrot.slane %v11226_v11, 7  ;;  %v9522_v5 = vrot.slane %v1087_v51, 1  ;;  %v11353_v43 = vld [vmem:[#allocation60_spill] sm:$0xff]  ;;  %v11354_v13 = vld [vmem:[#allocation59_spill] sm:$0xff] }
  0xda   : > { %v1218_v1 = vsel %vm8265_vm3, 0, %v1074_v52  ;;  %v1081_v32 = vor.u32 %v11229_v48, %v1078_v40  ;;  %v1093_v57 = vrot.slane %v11228_v35, 7  ;;  %v9532_v28 = vcombine.low %v11354_v13, %v11353_v43 }
  0xdb   : > { %1744 = vst.msk [vmem:[#allocation2 + $0x1a8] sm:$0xf] %vm1641_vm1, %v6460_v29  ;;  %1745 = vst.msk [vmem:[#allocation2 + $0x1ac] sm:$0xf] %vm1641_vm1, %v6461_v24  ;;  %v6462_v61 = vcombine.low %v1218_v1, %v1218_v1  ;;  %v6463_v11 = vcombine.high %v1218_v1, %v1218_v1  ;;  %v1089_v59 = vor.u32 %v1087_v51, %v1086_v21 }
  0xdc   : > { %v9538_v52 = vcombine.low %v9104_v25, %v9111_v45  ;;  %v1082_v40 = vsel %vm677_vm0, %v1071_v54, %v1081_v32  ;;  %v1096_v35 = vor.u32 %v11236_v17, %v1093_v57  ;;  %v11235_v48 = vshrl.u32 %v9532_v28, 16 }
  0xdd   : > { %v1102_v43 = vshll.u32 %v9532_v28, 16  ;;  %1746 = vst.msk [vmem:[#allocation2 + $0x1b0] sm:$0xf] %vm1641_vm1, %v6462_v61  ;;  %1747 = vst.msk [vmem:[#allocation2 + $0x1b4] sm:$0xf] %vm1641_vm1, %v6463_v11  ;;  %v6464_v29 = vcombine.low %v1082_v40, %v1082_v40  ;;  %v6465_v1 = vcombine.high %v1082_v40, %v1082_v40  ;;  %v1219_v51 = vsel %vm8265_vm3, 0, %v1089_v59 }
  0xde   : > { %11355 = vst [vmem:[#allocation44_spill] sm:$0xff] %v9538_v52  ;;  %v11230_v25 = vshrl.u32 %v9538_v52, 16  ;;  %v6466_v45 = vcombine.low %v1219_v51, %v1219_v51  ;;  %v6467_v32 = vcombine.high %v1219_v51, %v1219_v51  ;;  %v1097_v54 = vsel %vm677_vm0, %v1086_v21, %v1096_v35 }
  0xdf   : > { %v1101_v24 = vrot.slane %v11235_v48, 7  ;;  %1748 = vst.msk [vmem:[#allocation2 + $0x1b8] sm:$0xf] %vm1641_vm1, %v6464_v29  ;;  %1749 = vst.msk [vmem:[#allocation2 + $0x1bc] sm:$0xf] %vm1641_vm1, %v6465_v1  ;;  %v6468_v57 = vcombine.low %v1097_v54, %v1097_v54  ;;  %v6469_v11 = vcombine.high %v1097_v54, %v1097_v54  ;;  %v9555_v13 = vrot.slane %v1102_v43, 1 }
  0xe0   : > { %v1108_v59 = vrot.slane %v11230_v25, 7  ;;  %1750 = vst.msk [vmem:[#allocation2 + $0x1c0] sm:$0xf] %vm1641_vm1, %v6466_v45  ;;  %1751 = vst.msk [vmem:[#allocation2 + $0x1c4] sm:$0xf] %vm1641_vm1, %v6467_v32  ;;  %v11231_v35 = vshll.u32 %v9538_v52, 16  ;;  %v9564_v21 = vcombine.low %v9116_v38, %v9125_v26  ;;  %v9568_v40 = vcombine.low %v9130_v47, %v9141_v39 }
  0xe1   : > { %v1104_v61 = vor.u32 %v1102_v43, %v1101_v24  ;;  %1752 = vst.msk [vmem:[#allocation2 + $0x1c8] sm:$0xf] %vm1641_vm1, %v6468_v57  ;;  %1753 = vst.msk [vmem:[#allocation2 + $0x1cc] sm:$0xf] %vm1641_vm1, %v6469_v11  ;;  %v11358_v29 = vld [vmem:[#allocation63_spill] sm:$0xff]  ;;  %v11360_v43 = vld [vmem:[#allocation64_spill] sm:$0xff] }
  0xe2   : > { %11356 = vst [vmem:[#allocation43_spill] sm:$0xff] %v9564_v21  ;;  %11357 = vst [vmem:[#allocation45_spill] sm:$0xff] %v9568_v40  ;;  %v9574_v1 = vcombine.low %v11358_v29, %v9166_v3  ;;  %v9578_v51 = vcombine.low %v11360_v43, %v9180_v22  ;;  %v11362_v45 = vld [vmem:[#allocation65_spill] sm:$0xff]  ;;  %v11364_v26 = vld [vmem:[#allocation68_spill] sm:$0xff]  ;;  %v1111_v54 = vor.u32 %v11231_v35, %v1108_v59  ;;  %v11232_v3 = vshrl.u32 %v9564_v21, 16 }
  0xe3   : > { %v9582_v38 = vcombine.low %v11362_v45, %v9194_v62  ;;  %v11365_v32 = vld [vmem:[#allocation67_spill] sm:$0xff]  ;;  %v1220_v47 = vsel %vm8265_vm3, 0, %v1104_v61  ;;  %v1117_v57 = vshll.u32 %v9564_v21, 16  ;;  %v11233_v29 = vshrl.u32 %v9568_v40, 16 }
  0xe4   : > { %11359 = vst [vmem:[#allocation49_spill] sm:$0xff] %v9574_v1  ;;  %11361 = vst [vmem:[#allocation54_spill] sm:$0xff] %v9578_v51  ;;  %v9586_v39 = vcombine.low %v11365_v32, %v11364_v26  ;;  %v6470_v22 = vcombine.low %v1220_v47, %v1220_v47  ;;  %v6471_v11 = vcombine.high %v1220_v47, %v1220_v47  ;;  %v11237_v62 = vshll.u32 %v9568_v40, 16 }
  0xe5   : > { %11363 = vst [vmem:[#allocation53_spill] sm:$0xff] %v9582_v38  ;;  %v1112_v43 = vsel %vm677_vm0, %v1101_v24, %v1111_v54  ;;  %v1116_v45 = vrot.slane %v11232_v3, 7  ;;  %v9599_v26 = vrot.slane %v1117_v57, 1  ;;  %v11234_v61 = vshrl.u32 %v9574_v1, 16 }
  0xe6   : > { %11366 = vst [vmem:[#allocation58_spill] sm:$0xff] %v9586_v39  ;;  %1754 = vst.msk [vmem:[#allocation2 + $0x1d0] sm:$0xf] %vm1641_vm1, %v6470_v22  ;;  %v6472_v59 = vcombine.low %v1112_v43, %v1112_v43  ;;  %v6473_v32 = vcombine.high %v1112_v43, %v1112_v43  ;;  %v1123_v47 = vrot.slane %v11233_v29, 7  ;;  %v1132_v25 = vshll.u32 %v9574_v1, 16 }
  0xe7   : > { %11367 = vst [vmem:[#allocation57_spill] sm:$0xff] %v9599_v26  ;;  %1755 = vst.msk [vmem:[#allocation2 + $0x1d4] sm:$0xf] %vm1641_vm1, %v6471_v11  ;;  %v1119_v35 = vor.u32 %v1117_v57, %v1116_v45  ;;  %v1131_v24 = vrot.slane %v11234_v61, 7  ;;  %v11239_v54 = vshrl.u32 %v9578_v51, 16  ;;  %v11242_v43 = vshrl.u32 %v9582_v38, 16 }
  0xe8   : > { %1756 = vst.msk [vmem:[#allocation2 + $0x1d8] sm:$0xf] %vm1641_vm1, %v6472_v59  ;;  %1757 = vst.msk [vmem:[#allocation2 + $0x1dc] sm:$0xf] %vm1641_vm1, %v6473_v32  ;;  %v1126_v22 = vor.u32 %v11237_v62, %v1123_v47  ;;  %v9615_v11 = vrot.slane %v1132_v25, 1  ;;  %v1147_v57 = vshll.u32 %v9582_v38, 16 }
  0xe9   : > { %v1221_v29 = vsel %vm8265_vm3, 0, %v1119_v35  ;;  %v1134_v61 = vor.u32 %v1132_v25, %v1131_v24  ;;  %v1138_v48 = vrot.slane %v11239_v54, 7  ;;  %v1146_v47 = vrot.slane %v11242_v43, 7  ;;  %v11384_v38 = vld [vmem:[#allocation14_spill] sm:$0xff] }
  0xea   : > { %11368 = vst [vmem:[#allocation60_spill] sm:$0xff] %v9615_v11  ;;  %v6474_v17 = vcombine.low %v1221_v29, %v1221_v29  ;;  %v6475_v32 = vcombine.high %v1221_v29, %v1221_v29  ;;  %v1127_v3 = vsel %vm677_vm0, %v1116_v45, %v1126_v22  ;;  %v11369_v35 = vshll.u32 %v9578_v51, 16 }
  0xeb   : > { %v6476_v62 = vcombine.low %v1127_v3, %v1127_v3  ;;  %v6477_v11 = vcombine.high %v1127_v3, %v1127_v3  ;;  %v1222_v1 = vsel %vm8265_vm3, 0, %v1134_v61  ;;  %v1149_v29 = vor.u32 %v1147_v57, %v1146_v47 }
  0xec   : > { %v1141_v25 = vor.u32 %v11369_v35, %v1138_v48  ;;  %1758 = vst.msk [vmem:[#allocation2 + $0x1e0] sm:$0xf] %vm1641_vm1, %v6474_v17  ;;  %1759 = vst.msk [vmem:[#allocation2 + $0x1e4] sm:$0xf] %vm1641_vm1, %v6475_v32  ;;  %v6478_v54 = vcombine.low %v1222_v1, %v1222_v1  ;;  %v6479_v59 = vcombine.high %v1222_v1, %v1222_v1  ;;  %v9633_v40 = vrot.slane %v1147_v57, 1 }
  0xed   : > { %1760 = vst.msk [vmem:[#allocation2 + $0x1e8] sm:$0xf] %vm1641_vm1, %v6476_v62  ;;  %1761 = vst.msk [vmem:[#allocation2 + $0x1ec] sm:$0xf] %vm1641_vm1, %v6477_v11  ;;  %v11371_v45 = vshrl.u32 %v9586_v39, 16  ;;  %v11246_v48 = vshll.u32 %v9586_v39, 16 }
  0xee   : > { %11370 = vst [vmem:[#allocation59_spill] sm:$0xff] %v9633_v40  ;;  %v1142_v3 = vsel %vm677_vm0, %v1131_v24, %v1141_v25  ;;  %1762 = vst.msk [vmem:[#allocation2 + $0x1f0] sm:$0xf] %vm1641_vm1, %v6478_v54  ;;  %v1223_v22 = vsel %vm8265_vm3, 0, %v1149_v29  ;;  %v11372_v62 = vld [vmem:[#allocation6_spill] sm:$0xff]  ;;  %v11377_v54 = vld [vmem:[#allocation8_spill] sm:$0xff] }
  0xef   : > { %v1153_v61 = vrot.slane %v11371_v45, 7  ;;  %1763 = vst.msk [vmem:[#allocation2 + $0x1f4] sm:$0xf] %vm1641_vm1, %v6479_v59  ;;  %v6480_v17 = vcombine.low %v1142_v3, %v1142_v3  ;;  %v6481_v1 = vcombine.high %v1142_v3, %v1142_v3  ;;  %v11373_v57 = vshrl.u32 %v11372_v62, 16  ;;  %v11374_v11 = vld [vmem:[#allocation10_spill] sm:$0xff]  ;;  %v11375_v45 = vld [vmem:[#allocation7_spill] sm:$0xff] }
  0xf0   : > { %v6482_v24 = vcombine.low %v1223_v22, %v1223_v22  ;;  %v6483_v35 = vcombine.high %v1223_v22, %v1223_v22  ;;  %v11376_v43 = vshll.u32 %v11375_v45, 16  ;;  %v11378_v23 = vshrl.u32 %v11377_v54, 16  ;;  %v11379_v59 = vld [vmem:[#allocation12_spill] sm:$0xff]  ;;  %v11380_v3 = vld [vmem:[#allocation9_spill] sm:$0xff] }
  0xf1   : > { %v1901_v32 = vor.u32 %v11374_v11, %v11373_v57  ;;  %v1156_v25 = vor.u32 %v11246_v48, %v1153_v61  ;;  %1764 = vst.msk [vmem:[#allocation2 + $0x1f8] sm:$0xf] %vm1641_vm1, %v6480_v17  ;;  %1765 = vst.msk [vmem:[#allocation2 + $0x1fc] sm:$0xf] %vm1641_vm1, %v6481_v1  ;;  %v11381_v62 = vshll.u32 %v11380_v3, 16  ;;  %v11382_v11 = vld [vmem:[#allocation11_spill] sm:$0xff] }
  0xf2   : > { %v1902_v40 = vrot.slane %v11376_v43, 1  ;;  %v1906_v29 = vor.u32 %v11379_v59, %v11378_v23  ;;  %v11383_v22 = vshrl.u32 %v11382_v11, 16  ;;  %1766 = vst.msk [vmem:[#allocation2 + $0x200] sm:$0xf] %vm1641_vm1, %v6482_v24  ;;  %1767 = vst.msk [vmem:[#allocation2 + $0x204] sm:$0xf] %vm1641_vm1, %v6483_v35 }
  0xf3   : > { %v1907_v57 = vrot.slane %v11381_v62, 1  ;;  %v1157_v43 = vsel %vm677_vm0, %v1146_v47, %v1156_v25  ;;  %v11385_v17 = vshrl.u32 %v11375_v45, 16  ;;  %v11388_v23 = vld [vmem:[#allocation13_spill] sm:$0xff]  ;;  %v11390_v35 = vshrl.u32 %v11380_v3, 16 }
  0xf4   : > { %v1911_v39 = vor.u32 %v11384_v38, %v11383_v22  ;;  %v1903_v61 = vsel %vm1899_vm4, %v1901_v32, %v1902_v40  ;;  %v11389_v59 = vshll.u32 %v11388_v23, 16  ;;  %v6484_v38 = vcombine.low %v1157_v43, %v1157_v43 }
  0xf5   : > { %v1904_v1 = vor.u32 %v1902_v40, %v11385_v17  ;;  %v6485_v11 = vcombine.high %v1157_v43, %v1157_v43  ;;  %v6486_v24 = vcombine.low %v1903_v61, %v1903_v61  ;;  %v6487_v22 = vcombine.high %v1903_v61, %v1903_v61 }
  0xf6   : > { %v1912_v62 = vrot.slane %v11389_v59, 1  ;;  %v1908_v32 = vsel %vm1899_vm4, %v1906_v29, %v1907_v57  ;;  %v1909_v40 = vor.u32 %v1907_v57, %v11390_v35  ;;  %1768 = vst.msk [vmem:[#allocation2 + $0x208] sm:$0xf] %vm1641_vm1, %v6484_v38  ;;  %v11391_v57 = vshrl.u32 %v11388_v23, 16 }
  0xf7   : > { %v2094_v47 = vsel %vm9669_vm6, %v1904_v1, 0  ;;  %1769 = vst.msk [vmem:[#allocation2 + $0x20c] sm:$0xf] %vm1641_vm1, %v6485_v11  ;;  %2543 = vst.msk [vmem:[#allocation2 + $0x450] sm:$0xf] %vm1641_vm1, %v6486_v24  ;;  %v6490_v61 = vcombine.low %v1908_v32, %v1908_v32  ;;  %v6491_v17 = vcombine.high %v1908_v32, %v1908_v32  ;;  %v11392_v11 = vld [vmem:[#allocation15_spill] sm:$0xff] }
  0xf8   : > { %v1913_v25 = vsel %vm1899_vm4, %v1911_v39, %v1912_v62  ;;  %2544 = vst.msk [vmem:[#allocation2 + $0x454] sm:$0xf] %vm1641_vm1, %v6487_v22  ;;  %v6488_v45 = vcombine.low %v2094_v47, %v2094_v47  ;;  %v6489_v43 = vcombine.high %v2094_v47, %v2094_v47  ;;  %v2095_v29 = vsel %vm9669_vm6, %v1909_v40, 0  ;;  %v11394_v22 = vld [vmem:[#allocation21_spill] sm:$0xff]  ;;  %v11395_v32 = vld [vmem:[#allocation16_spill] sm:$0xff] }
  0xf9   : > { %v6494_v1 = vcombine.low %v1913_v25, %v1913_v25  ;;  %v6495_v3 = vcombine.high %v1913_v25, %v1913_v25  ;;  %v1914_v39 = vor.u32 %v1912_v62, %v11391_v57  ;;  %2547 = vst.msk [vmem:[#allocation2 + $0x460] sm:$0xf] %vm1641_vm1, %v6490_v61  ;;  %2548 = vst.msk [vmem:[#allocation2 + $0x464] sm:$0xf] %vm1641_vm1, %v6491_v17  ;;  %v11393_v24 = vshrl.u32 %v11392_v11, 16  ;;  %v11397_v62 = vld [vmem:[#allocation17_spill] sm:$0xff] }
  0xfa   : > { %2545 = vst.msk [vmem:[#allocation2 + $0x458] sm:$0xf] %vm1641_vm1, %v6488_v45  ;;  %2546 = vst.msk [vmem:[#allocation2 + $0x45c] sm:$0xf] %vm1641_vm1, %v6489_v43  ;;  %v6492_v59 = vcombine.low %v2095_v29, %v2095_v29  ;;  %v6493_v38 = vcombine.high %v2095_v29, %v2095_v29  ;;  %v11396_v35 = vshll.u32 %v11395_v32, 16  ;;  %v11398_v25 = vshrl.u32 %v11397_v62, 16 }
  0xfb   : > { %v1916_v47 = vor.u32 %v11394_v22, %v11393_v24  ;;  %2551 = vst.msk [vmem:[#allocation2 + $0x470] sm:$0xf] %vm1641_vm1, %v6494_v1  ;;  %2552 = vst.msk [vmem:[#allocation2 + $0x474] sm:$0xf] %vm1641_vm1, %v6495_v3  ;;  %v2096_v23 = vsel %vm9669_vm6, %v1914_v39, 0  ;;  %v11399_v45 = vld [vmem:[#allocation22_spill] sm:$0xff] }
  0xfc   : > { %v1917_v40 = vrot.slane %v11396_v35, 1  ;;  %v1921_v43 = vor.u32 %v11399_v45, %v11398_v25  ;;  %v11400_v61 = vld [vmem:[#allocation18_spill] sm:$0xff]  ;;  %v11402_v57 = vld [vmem:[#allocation19_spill] sm:$0xff]  ;;  %2549 = vst.msk [vmem:[#allocation2 + $0x468] sm:$0xf] %vm1641_vm1, %v6492_v59  ;;  %v6496_v1 = vcombine.low %v2096_v23, %v2096_v23  ;;  %v6497_v3 = vcombine.high %v2096_v23, %v2096_v23 }
  0xfd   : > { %v11401_v17 = vshll.u32 %v11400_v61, 16  ;;  %v11403_v11 = vshrl.u32 %v11402_v57, 16  ;;  %v11404_v24 = vld [vmem:[#allocation23_spill] sm:$0xff]  ;;  %2550 = vst.msk [vmem:[#allocation2 + $0x46c] sm:$0xf] %vm1641_vm1, %v6493_v38  ;;  %v11405_v39 = vshrl.u32 %v11395_v32, 16 }
  0xfe   : > { %v1918_v35 = vsel %vm1899_vm4, %v1916_v47, %v1917_v40  ;;  %2553 = vst.msk [vmem:[#allocation2 + $0x478] sm:$0xf] %vm1641_vm1, %v6496_v1  ;;  %2554 = vst.msk [vmem:[#allocation2 + $0x47c] sm:$0xf] %vm1641_vm1, %v6497_v3  ;;  %v11407_v47 = vld [vmem:[#allocation20_spill] sm:$0xff]  ;;  %v11411_v1 = vld [vmem:[#allocation29_spill] sm:$0xff] }
  0xff   : > { %v1922_v29 = vrot.slane %v11401_v17, 1  ;;  %v1926_v22 = vor.u32 %v11404_v24, %v11403_v11  ;;  %v1919_v62 = vor.u32 %v1917_v40, %v11405_v39  ;;  %v6498_v48 = vcombine.low %v1918_v35, %v1918_v35 }
 0x100   : > { %v6499_v25 = vcombine.high %v1918_v35, %v1918_v35  ;;  %v11406_v17 = vshrl.u32 %v11400_v61, 16  ;;  %v11408_v11 = vshll.u32 %v11407_v47, 16 }
 0x101   : > { %v1923_v45 = vsel %vm1899_vm4, %v1921_v43, %v1922_v29  ;;  %v2097_v59 = vsel %vm9669_vm6, %v1919_v62, 0  ;;  %2555 = vst.msk [vmem:[#allocation2 + $0x480] sm:$0xf] %vm1641_vm1, %v6498_v48  ;;  %v11412_v48 = vshrl.u32 %v11407_v47, 16  ;;  %v11418_v47 = vld [vmem:[#allocation27_spill] sm:$0xff] }
 0x102   : > { %v1924_v57 = vor.u32 %v1922_v29, %v11406_v17  ;;  %v6502_v38 = vcombine.low %v1923_v45, %v1923_v45  ;;  %v6503_v23 = vcombine.high %v1923_v45, %v1923_v45  ;;  %v1927_v32 = vrot.slane %v11408_v11, 1  ;;  %2556 = vst.msk [vmem:[#allocation2 + $0x484] sm:$0xf] %vm1641_vm1, %v6499_v25  ;;  %v11409_v29 = vld [vmem:[#allocation24_spill] sm:$0xff] }
 0x103   : > { %v6500_v40 = vcombine.low %v2097_v59, %v2097_v59  ;;  %v6501_v43 = vcombine.high %v2097_v59, %v2097_v59  ;;  %v11410_v24 = vshrl.u32 %v11409_v29, 16  ;;  %v11415_v29 = vld [vmem:[#allocation26_spill] sm:$0xff] }
 0x104   : > { %v2098_v61 = vsel %vm9669_vm6, %v1924_v57, 0  ;;  %2559 = vst.msk [vmem:[#allocation2 + $0x490] sm:$0xf] %vm1641_vm1, %v6502_v38  ;;  %2560 = vst.msk [vmem:[#allocation2 + $0x494] sm:$0xf] %vm1641_vm1, %v6503_v23  ;;  %v1928_v62 = vsel %vm1899_vm4, %v1926_v22, %v1927_v32  ;;  %v1929_v25 = vor.u32 %v1927_v32, %v11412_v48  ;;  %v11413_v57 = vld [vmem:[#allocation25_spill] sm:$0xff] }
 0x105   : > { %v1931_v3 = vor.u32 %v11411_v1, %v11410_v24  ;;  %v6504_v35 = vcombine.low %v2098_v61, %v2098_v61  ;;  %v6505_v39 = vcombine.high %v2098_v61, %v2098_v61  ;;  %2557 = vst.msk [vmem:[#allocation2 + $0x488] sm:$0xf] %vm1641_vm1, %v6500_v40  ;;  %2558 = vst.msk [vmem:[#allocation2 + $0x48c] sm:$0xf] %vm1641_vm1, %v6501_v43  ;;  %v11414_v59 = vshll.u32 %v11413_v57, 16  ;;  %v11417_v24 = vld [vmem:[#allocation30_spill] sm:$0xff] }
 0x106   : > { %v6506_v45 = vcombine.low %v1928_v62, %v1928_v62  ;;  %v6507_v17 = vcombine.high %v1928_v62, %v1928_v62  ;;  %v11416_v38 = vshrl.u32 %v11415_v29, 16  ;;  %v2099_v22 = vsel %vm9669_vm6, %v1929_v25, 0  ;;  %v11420_v43 = vld [vmem:[#allocation28_spill] sm:$0xff]  ;;  %v11423_v48 = vld [vmem:[#allocation31_spill] sm:$0xff] }
 0x107   : > { %v1932_v11 = vrot.slane %v11414_v59, 1  ;;  %2561 = vst.msk [vmem:[#allocation2 + $0x498] sm:$0xf] %vm1641_vm1, %v6504_v35  ;;  %2562 = vst.msk [vmem:[#allocation2 + $0x49c] sm:$0xf] %vm1641_vm1, %v6505_v39  ;;  %v11419_v32 = vshll.u32 %v11418_v47, 16  ;;  %v6508_v35 = vcombine.low %v2099_v22, %v2099_v22  ;;  %v6509_v29 = vcombine.high %v2099_v22, %v2099_v22 }
 0x108   : > { %v1936_v23 = vor.u32 %v11417_v24, %v11416_v38  ;;  %v11421_v61 = vshrl.u32 %v11420_v43, 16  ;;  %v11422_v1 = vld [vmem:[#allocation32_spill] sm:$0xff]  ;;  %v11424_v59 = vshll.u32 %v11423_v48, 16  ;;  %2563 = vst.msk [vmem:[#allocation2 + $0x4a0] sm:$0xf] %vm1641_vm1, %v6506_v45  ;;  %v11425_v25 = vshrl.u32 %v11413_v57, 16 }
 0x109   : > { %v1937_v40 = vrot.slane %v11419_v32, 1  ;;  %2564 = vst.msk [vmem:[#allocation2 + $0x4a4] sm:$0xf] %vm1641_vm1, %v6507_v17  ;;  %v1933_v39 = vsel %vm1899_vm4, %v1931_v3, %v1932_v11  ;;  %2565 = vst.msk [vmem:[#allocation2 + $0x4a8] sm:$0xf] %vm1641_vm1, %v6508_v35 }
 0x10a   : > { %v1941_v62 = vor.u32 %v11422_v1, %v11421_v61  ;;  %v1942_v51 = vrot.slane %v11424_v59, 1  ;;  %v1934_v38 = vor.u32 %v1932_v11, %v11425_v25  ;;  %v6510_v24 = vcombine.low %v1933_v39, %v1933_v39  ;;  %2566 = vst.msk [vmem:[#allocation2 + $0x4ac] sm:$0xf] %vm1641_vm1, %v6509_v29 }
 0x10b   : > { %v6511_v32 = vcombine.high %v1933_v39, %v1933_v39  ;;  %v1938_v43 = vsel %vm1899_vm4, %v1936_v23, %v1937_v40  ;;  %v11426_v61 = vshrl.u32 %v11418_v47, 16  ;;  %v11427_v29 = vshrl.u32 %v11423_v48, 16  ;;  %v11428_v39 = vld [vmem:[#allocation33_spill] sm:$0xff] }
 0x10c   : > { %v2100_v45 = vsel %vm9669_vm6, %v1934_v38, 0  ;;  %v6514_v17 = vcombine.low %v1938_v43, %v1938_v43  ;;  %v6515_v22 = vcombine.high %v1938_v43, %v1938_v43  ;;  %v1943_v3 = vsel %vm1899_vm4, %v1941_v62, %v1942_v51  ;;  %2567 = vst.msk [vmem:[#allocation2 + $0x4b0] sm:$0xf] %vm1641_vm1, %v6510_v24  ;;  %v11430_v38 = vld [vmem:[#allocation34_spill] sm:$0xff] }
 0x10d   : > { %v1939_v1 = vor.u32 %v1937_v40, %v11426_v61  ;;  %2568 = vst.msk [vmem:[#allocation2 + $0x4b4] sm:$0xf] %vm1641_vm1, %v6511_v32  ;;  %v6512_v57 = vcombine.low %v2100_v45, %v2100_v45  ;;  %v6513_v11 = vcombine.high %v2100_v45, %v2100_v45  ;;  %v6518_v47 = vcombine.low %v1943_v3, %v1943_v3  ;;  %v11431_v32 = vld [vmem:[#allocation35_spill] sm:$0xff] }
 0x10e   : > { %2571 = vst.msk [vmem:[#allocation2 + $0x4c0] sm:$0xf] %vm1641_vm1, %v6514_v17  ;;  %2572 = vst.msk [vmem:[#allocation2 + $0x4c4] sm:$0xf] %vm1641_vm1, %v6515_v22  ;;  %v6519_v35 = vcombine.high %v1943_v3, %v1943_v3  ;;  %v1944_v62 = vor.u32 %v1942_v51, %v11427_v29  ;;  %v11429_v25 = vshrl.u32 %v11428_v39, 16  ;;  %v11432_v43 = vshll.u32 %v11431_v32, 16 }
 0x10f   : > { %v2101_v23 = vsel %vm9669_vm6, %v1939_v1, 0  ;;  %2569 = vst.msk [vmem:[#allocation2 + $0x4b8] sm:$0xf] %vm1641_vm1, %v6512_v57  ;;  %2570 = vst.msk [vmem:[#allocation2 + $0x4bc] sm:$0xf] %vm1641_vm1, %v6513_v11  ;;  %v11433_v1 = vld [vmem:[#allocation36_spill] sm:$0xff] }
 0x110   : > { %v6516_v40 = vcombine.low %v2101_v23, %v2101_v23  ;;  %v6517_v59 = vcombine.high %v2101_v23, %v2101_v23  ;;  %2575 = vst.msk [vmem:[#allocation2 + $0x4d0] sm:$0xf] %vm1641_vm1, %v6518_v47  ;;  %v1946_v24 = vor.u32 %v11430_v38, %v11429_v25  ;;  %v1947_v61 = vrot.slane %v11432_v43, 1  ;;  %v11435_v17 = vld [vmem:[#allocation40_spill] sm:$0xff]  ;;  %v11436_v3 = vld [vmem:[#allocation37_spill] sm:$0xff]  ;;  %v11438_v11 = vld [vmem:[#allocation38_spill] sm:$0xff] }
 0x111   : > { %v11434_v45 = vshrl.u32 %v11433_v1, 16  ;;  %v11437_v48 = vshll.u32 %v11436_v3, 16  ;;  %2576 = vst.msk [vmem:[#allocation2 + $0x4d4] sm:$0xf] %vm1641_vm1, %v6519_v35  ;;  %v2102_v57 = vsel %vm9669_vm6, %v1944_v62, 0  ;;  %v11439_v23 = vshrl.u32 %v11438_v11, 16 }
 0x112   : > { %2573 = vst.msk [vmem:[#allocation2 + $0x4c8] sm:$0xf] %vm1641_vm1, %v6516_v40  ;;  %2574 = vst.msk [vmem:[#allocation2 + $0x4cc] sm:$0xf] %vm1641_vm1, %v6517_v59  ;;  %v11440_v47 = vld [vmem:[#allocation42_spill] sm:$0xff]  ;;  %v11441_v39 = vld [vmem:[#allocation39_spill] sm:$0xff]  ;;  %v6521_v40 = vcombine.high %v2102_v57, %v2102_v57  ;;  %v1948_v59 = vsel %vm1899_vm4, %v1946_v24, %v1947_v61 }
 0x113   : > { %v1951_v22 = vor.u32 %v11435_v17, %v11434_v45  ;;  %v1952_v51 = vrot.slane %v11437_v48, 1  ;;  %v1956_v29 = vor.u32 %v11440_v47, %v11439_v23  ;;  %v11442_v25 = vshll.u32 %v11441_v39, 16  ;;  %v11443_v43 = vld [vmem:[#allocation41_spill] sm:$0xff]  ;;  %v11445_v45 = vld [vmem:[#allocation48_spill] sm:$0xff] }
 0x114   : > { %v11444_v1 = vshrl.u32 %v11443_v43, 16  ;;  %v6520_v48 = vcombine.low %v2102_v57, %v2102_v57  ;;  %v11446_v35 = vshrl.u32 %v11431_v32, 16  ;;  %v6522_v21 = vcombine.low %v1948_v59, %v1948_v59  ;;  %2578 = vst.msk [vmem:[#allocation2 + $0x4dc] sm:$0xf] %vm1641_vm1, %v6521_v40 }
 0x115   : > { %v1957_v38 = vrot.slane %v11442_v25, 1  ;;  %v6523_v62 = vcombine.high %v1948_v59, %v1948_v59  ;;  %v1953_v11 = vsel %vm1899_vm4, %v1951_v22, %v1952_v51  ;;  %v11447_v23 = vshrl.u32 %v11436_v3, 16  ;;  %v11451_v59 = vld [vmem:[#allocation47_spill] sm:$0xff] }
 0x116   : > { %v1961_v17 = vor.u32 %v11445_v45, %v11444_v1  ;;  %v1949_v26 = vor.u32 %v1947_v61, %v11446_v35  ;;  %2577 = vst.msk [vmem:[#allocation2 + $0x4d8] sm:$0xf] %vm1641_vm1, %v6520_v48  ;;  %v6526_v57 = vcombine.low %v1953_v11, %v1953_v11  ;;  %v6527_v43 = vcombine.high %v1953_v11, %v1953_v11 }
 0x117   : > { %v1954_v47 = vor.u32 %v1952_v51, %v11447_v23  ;;  %v1958_v24 = vsel %vm1899_vm4, %v1956_v29, %v1957_v38  ;;  %2579 = vst.msk [vmem:[#allocation2 + $0x4e0] sm:$0xf] %vm1641_vm1, %v6522_v21  ;;  %2580 = vst.msk [vmem:[#allocation2 + $0x4e4] sm:$0xf] %vm1641_vm1, %v6523_v62  ;;  %v11448_v45 = vshrl.u32 %v11441_v39, 16  ;;  %v11449_v21 = vld [vmem:[#allocation46_spill] sm:$0xff] }
 0x118   : > { %v2103_v25 = vsel %vm9669_vm6, %v1949_v26, 0  ;;  %v6530_v3 = vcombine.low %v1958_v24, %v1958_v24  ;;  %2583 = vst.msk [vmem:[#allocation2 + $0x4f0] sm:$0xf] %vm1641_vm1, %v6526_v57  ;;  %2584 = vst.msk [vmem:[#allocation2 + $0x4f4] sm:$0xf] %vm1641_vm1, %v6527_v43  ;;  %v6531_v1 = vcombine.high %v1958_v24, %v1958_v24  ;;  %v11450_v48 = vshll.u32 %v11449_v21, 16 }
 0x119   : > { %v6524_v32 = vcombine.low %v2103_v25, %v2103_v25  ;;  %v6525_v61 = vcombine.high %v2103_v25, %v2103_v25  ;;  %v2104_v22 = vsel %vm9669_vm6, %v1954_v47, 0  ;;  %v1959_v29 = vor.u32 %v1957_v38, %v11448_v45  ;;  %v11453_v62 = vld [vmem:[#allocation55_spill] sm:$0xff]  ;;  %v11454_v23 = vld [vmem:[#allocation50_spill] sm:$0xff]  ;;  %v11458_v39 = vld [vmem:[#allocation61_spill] sm:$0xff] }
 0x11a   : > { %v6528_v51 = vcombine.low %v2104_v22, %v2104_v22  ;;  %v6529_v26 = vcombine.high %v2104_v22, %v2104_v22  ;;  %2587 = vst.msk [vmem:[#allocation2 + $0x500] sm:$0xf] %vm1641_vm1, %v6530_v3  ;;  %v1962_v40 = vrot.slane %v11450_v48, 1  ;;  %v11452_v35 = vshrl.u32 %v11451_v59, 16  ;;  %v11456_v57 = vld [vmem:[#allocation51_spill] sm:$0xff]  ;;  %v11461_v3 = vld [vmem:[#allocation56_spill] sm:$0xff] }
 0x11b   : > { %2581 = vst.msk [vmem:[#allocation2 + $0x4e8] sm:$0xf] %vm1641_vm1, %v6524_v32  ;;  %2582 = vst.msk [vmem:[#allocation2 + $0x4ec] sm:$0xf] %vm1641_vm1, %v6525_v61  ;;  %v11455_v47 = vshll.u32 %v11454_v23, 16  ;;  %v11457_v43 = vshrl.u32 %v11456_v57, 16 }
 0x11c   : > { %v1966_v11 = vor.u32 %v11453_v62, %v11452_v35  ;;  %2585 = vst.msk [vmem:[#allocation2 + $0x4f8] sm:$0xf] %vm1641_vm1, %v6528_v51  ;;  %2586 = vst.msk [vmem:[#allocation2 + $0x4fc] sm:$0xf] %vm1641_vm1, %v6529_v26  ;;  %v2105_v24 = vsel %vm9669_vm6, %v1959_v29, 0  ;;  %v11459_v32 = vld [vmem:[#allocation52_spill] sm:$0xff]  ;;  %v1963_v51 = vsel %vm1899_vm4, %v1961_v17, %v1962_v40 }
 0x11d   : > { %v1967_v25 = vrot.slane %v11455_v47, 1  ;;  %v1971_v38 = vor.u32 %v11458_v39, %v11457_v43  ;;  %2588 = vst.msk [vmem:[#allocation2 + $0x504] sm:$0xf] %vm1641_vm1, %v6531_v1  ;;  %v11460_v61 = vshll.u32 %v11459_v32, 16  ;;  %v11462_v45 = vshrl.u32 %v11461_v3, 16  ;;  %v11463_v48 = vld [vmem:[#allocation66_spill] sm:$0xff] }
 0x11e   : > { %v11464_v35 = vshll.u32 %v9150_v60, 16  ;;  %v6532_v47 = vcombine.low %v2105_v24, %v2105_v24  ;;  %v6533_v57 = vcombine.high %v2105_v24, %v2105_v24  ;;  %v11465_v26 = vshrl.u32 %v11449_v21, 16 }
 0x11f   : > { %v1972_v22 = vrot.slane %v11460_v61, 1  ;;  %v1976_v59 = vor.u32 %v11463_v48, %v11462_v45  ;;  %v6534_v43 = vcombine.low %v1963_v51, %v1963_v51  ;;  %v6535_v39 = vcombine.high %v1963_v51, %v1963_v51 }
 0x120   : > { %v1977_v62 = vrot.slane %v11464_v35, 1  ;;  %v1964_v1 = vor.u32 %v1962_v40, %v11465_v26  ;;  %v1968_v29 = vsel %vm1899_vm4, %v1966_v11, %v1967_v25  ;;  %v11466_v61 = vshrl.u32 %v11454_v23, 16  ;;  %2589 = vst.msk [vmem:[#allocation2 + $0x508] sm:$0xf] %vm1641_vm1, %v6532_v47  ;;  %2590 = vst.msk [vmem:[#allocation2 + $0x50c] sm:$0xf] %vm1641_vm1, %v6533_v57 }
 0x121   : > { %v6538_v24 = vcombine.low %v1968_v29, %v1968_v29  ;;  %v6539_v45 = vcombine.high %v1968_v29, %v1968_v29  ;;  %v1973_v17 = vsel %vm1899_vm4, %v1971_v38, %v1972_v22  ;;  %2591 = vst.msk [vmem:[#allocation2 + $0x510] sm:$0xf] %vm1641_vm1, %v6534_v43  ;;  %2592 = vst.msk [vmem:[#allocation2 + $0x514] sm:$0xf] %vm1641_vm1, %v6535_v39  ;;  %v11467_v47 = vshrl.u32 %v11459_v32, 16  ;;  %v11469_v26 = vld [vmem:[#allocation62_spill] sm:$0xff] }
 0x122   : > { %v1969_v52 = vor.u32 %v1967_v25, %v11466_v61  ;;  %v2106_v3 = vsel %vm9669_vm6, %v1964_v1, 0  ;;  %v6542_v23 = vcombine.low %v1973_v17, %v1973_v17  ;;  %v6543_v35 = vcombine.high %v1973_v17, %v1973_v17  ;;  %v11471_v43 = vld [vmem:[#allocation69_spill] sm:$0xff] }
 0x123   : > { %v6536_v21 = vcombine.low %v2106_v3, %v2106_v3  ;;  %v6537_v40 = vcombine.high %v2106_v3, %v2106_v3  ;;  %2595 = vst.msk [vmem:[#allocation2 + $0x520] sm:$0xf] %vm1641_vm1, %v6538_v24  ;;  %2596 = vst.msk [vmem:[#allocation2 + $0x524] sm:$0xf] %vm1641_vm1, %v6539_v45  ;;  %v1974_v38 = vor.u32 %v1972_v22, %v11467_v47  ;;  %v11470_v1 = vshrl.u32 %v11469_v26, 16 }
 0x124   : > { %v2107_v11 = vsel %vm9669_vm6, %v1969_v52, 0  ;;  %2599 = vst.msk [vmem:[#allocation2 + $0x530] sm:$0xf] %vm1641_vm1, %v6542_v23  ;;  %v1978_v57 = vsel %vm1899_vm4, %v1976_v59, %v1977_v62  ;;  %v11468_v52 = vshrl.u32 %v9150_v60, 16  ;;  %v11472_v29 = vshll.u32 %v9158_v37, 16 }
 0x125   : > { %v6540_v25 = vcombine.low %v2107_v11, %v2107_v11  ;;  %v6541_v48 = vcombine.high %v2107_v11, %v2107_v11  ;;  %2593 = vst.msk [vmem:[#allocation2 + $0x518] sm:$0xf] %vm1641_vm1, %v6536_v21  ;;  %2594 = vst.msk [vmem:[#allocation2 + $0x51c] sm:$0xf] %vm1641_vm1, %v6537_v40  ;;  %v1981_v39 = vor.u32 %v11471_v43, %v11470_v1  ;;  %v2108_v32 = vsel %vm9669_vm6, %v1974_v38, 0 }
 0x126   : > { %v1979_v51 = vor.u32 %v1977_v62, %v11468_v52  ;;  %v1982_v61 = vrot.slane %v11472_v29, 1  ;;  %2600 = vst.msk [vmem:[#allocation2 + $0x534] sm:$0xf] %vm1641_vm1, %v6543_v35  ;;  %v6546_v22 = vcombine.low %v1978_v57, %v1978_v57  ;;  %v6547_v59 = vcombine.high %v1978_v57, %v1978_v57 }
 0x127   : > { %2597 = vst.msk [vmem:[#allocation2 + $0x528] sm:$0xf] %vm1641_vm1, %v6540_v25  ;;  %2598 = vst.msk [vmem:[#allocation2 + $0x52c] sm:$0xf] %vm1641_vm1, %v6541_v48  ;;  %v11473_v60 = vshrl.u32 %v9233_v33, 16  ;;  %v6544_v3 = vcombine.low %v2108_v32, %v2108_v32  ;;  %v6545_v24 = vcombine.high %v2108_v32, %v2108_v32  ;;  %v11474_v33 = vshrl.u32 %v9158_v37, 16 }
 0x128   : > { %v2109_v45 = vsel %vm9669_vm6, %v1979_v51, 0  ;;  %v1983_v17 = vsel %vm1899_vm4, %v1981_v39, %v1982_v61  ;;  %2603 = vst.msk [vmem:[#allocation2 + $0x540] sm:$0xf] %vm1641_vm1, %v6546_v22  ;;  %2604 = vst.msk [vmem:[#allocation2 + $0x544] sm:$0xf] %vm1641_vm1, %v6547_v59  ;;  %v11475_v25 = vshll.u32 %v9237_v14, 16 }
 0x129   : > { %v1986_v62 = vor.u32 %v9260_v50, %v11473_v60  ;;  %v6548_v21 = vcombine.low %v2109_v45, %v2109_v45  ;;  %v6549_v40 = vcombine.high %v2109_v45, %v2109_v45  ;;  %v6550_v11 = vcombine.low %v1983_v17, %v1983_v17  ;;  %2601 = vst.msk [vmem:[#allocation2 + $0x538] sm:$0xf] %vm1641_vm1, %v6544_v3 }
 0x12a   : > { %v6551_v23 = vcombine.high %v1983_v17, %v1983_v17  ;;  %2602 = vst.msk [vmem:[#allocation2 + $0x53c] sm:$0xf] %vm1641_vm1, %v6545_v24  ;;  %v1984_v50 = vor.u32 %v1982_v61, %v11474_v33  ;;  %v1987_v48 = vrot.slane %v11475_v25, 1  ;;  %v11476_v35 = vshrl.u32 %v9254_v19, 16 }
 0x12b   : > { %v11477_v38 = vshll.u32 %v9272_v34, 16  ;;  %2605 = vst.msk [vmem:[#allocation2 + $0x548] sm:$0xf] %vm1641_vm1, %v6548_v21  ;;  %2606 = vst.msk [vmem:[#allocation2 + $0x54c] sm:$0xf] %vm1641_vm1, %v6549_v40  ;;  %v11478_v37 = vshrl.u32 %v9276_v16, 16 }
 0x12c   : > { %v1991_v47 = vor.u32 %v9287_v4, %v11476_v35  ;;  %2607 = vst.msk [vmem:[#allocation2 + $0x550] sm:$0xf] %vm1641_vm1, %v6550_v11  ;;  %2608 = vst.msk [vmem:[#allocation2 + $0x554] sm:$0xf] %vm1641_vm1, %v6551_v23  ;;  %v11479_v51 = vshll.u32 %v9283_v20, 16  ;;  %v11480_v4 = vshrl.u32 %v9308_v6, 16  ;;  %v1988_v29 = vsel %vm1899_vm4, %v1986_v62, %v1987_v48 }
 0x12d   : > { %v1992_v57 = vrot.slane %v11477_v38, 1  ;;  %v1996_v52 = vor.u32 %v9320_v42, %v11478_v37  ;;  %v11481_v1 = vshll.u32 %v9312_v56, 16  ;;  %v2110_v39 = vsel %vm9669_vm6, %v1984_v50, 0 }
 0x12e   : > { %v1997_v19 = vrot.slane %v11479_v51, 1  ;;  %v2001_v26 = vor.u32 %v9336_v49, %v11480_v4  ;;  %v11482_v61 = vshrl.u32 %v9237_v14, 16  ;;  %v6552_v32 = vcombine.low %v2110_v39, %v2110_v39 }
 0x12f   : > { %v2002_v43 = vrot.slane %v11481_v1, 1  ;;  %v1993_v42 = vsel %vm1899_vm4, %v1991_v47, %v1992_v57  ;;  %v6553_v22 = vcombine.high %v2110_v39, %v2110_v39  ;;  %v6554_v59 = vcombine.low %v1988_v29, %v1988_v29 }
 0x130   : > { %v1989_v16 = vor.u32 %v1987_v48, %v11482_v61  ;;  %v6555_v60 = vcombine.high %v1988_v29, %v1988_v29  ;;  %v6558_v49 = vcombine.low %v1993_v42, %v1993_v42  ;;  %v6559_v3 = vcombine.high %v1993_v42, %v1993_v42  ;;  %2609 = vst.msk [vmem:[#allocation2 + $0x558] sm:$0xf] %vm1641_vm1, %v6552_v32 }
 0x131   : > { %v11483_v24 = vshrl.u32 %v9272_v34, 16  ;;  %2610 = vst.msk [vmem:[#allocation2 + $0x55c] sm:$0xf] %vm1641_vm1, %v6553_v22  ;;  %2611 = vst.msk [vmem:[#allocation2 + $0x560] sm:$0xf] %vm1641_vm1, %v6554_v59  ;;  %v1998_v17 = vsel %vm1899_vm4, %v1996_v52, %v1997_v19  ;;  %v11484_v21 = vshrl.u32 %v9283_v20, 16  ;;  %v2003_v33 = vsel %vm1899_vm4, %v2001_v26, %v2002_v43 }
 0x132   : > { %v2111_v6 = vsel %vm9669_vm6, %v1989_v16, 0  ;;  %2612 = vst.msk [vmem:[#allocation2 + $0x564] sm:$0xf] %vm1641_vm1, %v6555_v60  ;;  %2615 = vst.msk [vmem:[#allocation2 + $0x570] sm:$0xf] %vm1641_vm1, %v6558_v49  ;;  %v6562_v11 = vcombine.low %v1998_v17, %v1998_v17  ;;  %v6563_v23 = vcombine.high %v1998_v17, %v1998_v17  ;;  %v6566_v48 = vcombine.low %v2003_v33, %v2003_v33 }
 0x133   : > { %v1994_v45 = vor.u32 %v1992_v57, %v11483_v24  ;;  %v6556_v14 = vcombine.low %v2111_v6, %v2111_v6  ;;  %v6557_v62 = vcombine.high %v2111_v6, %v2111_v6  ;;  %v1999_v40 = vor.u32 %v1997_v19, %v11484_v21  ;;  %2616 = vst.msk [vmem:[#allocation2 + $0x574] sm:$0xf] %vm1641_vm1, %v6559_v3 }
 0x134   : > { %2619 = vst.msk [vmem:[#allocation2 + $0x580] sm:$0xf] %vm1641_vm1, %v6562_v11  ;;  %2620 = vst.msk [vmem:[#allocation2 + $0x584] sm:$0xf] %vm1641_vm1, %v6563_v23  ;;  %v6567_v38 = vcombine.high %v2003_v33, %v2003_v33  ;;  %v11485_v57 = vshrl.u32 %v9312_v56, 16  ;;  %v11486_v52 = vshrl.u32 %v9348_v41, 16 }
 0x135   : > { %v2112_v34 = vsel %vm9669_vm6, %v1994_v45, 0  ;;  %2613 = vst.msk [vmem:[#allocation2 + $0x568] sm:$0xf] %vm1641_vm1, %v6556_v14  ;;  %2614 = vst.msk [vmem:[#allocation2 + $0x56c] sm:$0xf] %vm1641_vm1, %v6557_v62  ;;  %v2113_v20 = vsel %vm9669_vm6, %v1999_v40, 0 }
 0x136   : > { %v6560_v50 = vcombine.low %v2112_v34, %v2112_v34  ;;  %v6561_v25 = vcombine.high %v2112_v34, %v2112_v34  ;;  %v6564_v35 = vcombine.low %v2113_v20, %v2113_v20  ;;  %v6565_v47 = vcombine.high %v2113_v20, %v2113_v20  ;;  %2623 = vst.msk [vmem:[#allocation2 + $0x590] sm:$0xf] %vm1641_vm1, %v6566_v48 }
 0x137   : > { %v2004_v37 = vor.u32 %v2002_v43, %v11485_v57  ;;  %v2006_v51 = vor.u32 %v9381_v0, %v11486_v52  ;;  %v11487_v19 = vshll.u32 %v9356_v9, 16  ;;  %v11488_v26 = vshrl.u32 %v9360_v30, 16  ;;  %2624 = vst.msk [vmem:[#allocation2 + $0x594] sm:$0xf] %vm1641_vm1, %v6567_v38 }
 0x138   : > { %2617 = vst.msk [vmem:[#allocation2 + $0x578] sm:$0xf] %vm1641_vm1, %v6560_v50  ;;  %2618 = vst.msk [vmem:[#allocation2 + $0x57c] sm:$0xf] %vm1641_vm1, %v6561_v25  ;;  %v11489_v56 = vshll.u32 %v9364_v46, 16  ;;  %v11490_v0 = vshrl.u32 %v9393_v53, 16 }
 0x139   : > { %v2007_v4 = vrot.slane %v11487_v19, 1  ;;  %v2011_v1 = vor.u32 %v9389_v36, %v11488_v26  ;;  %2621 = vst.msk [vmem:[#allocation2 + $0x588] sm:$0xf] %vm1641_vm1, %v6564_v35  ;;  %2622 = vst.msk [vmem:[#allocation2 + $0x58c] sm:$0xf] %vm1641_vm1, %v6565_v47  ;;  %v2114_v41 = vsel %vm9669_vm6, %v2004_v37, 0 }
 0x13a   : > { %v2012_v43 = vrot.slane %v11489_v56, 1  ;;  %v2016_v39 = vor.u32 %v9421_v31, %v11490_v0  ;;  %v11491_v30 = vshll.u32 %v9401_v58, 16  ;;  %v11492_v36 = vshrl.u32 %v9405_v12, 16 }
 0x13b   : > { %v6568_v16 = vcombine.low %v2114_v41, %v2114_v41  ;;  %v6569_v42 = vcombine.high %v2114_v41, %v2114_v41  ;;  %v2008_v32 = vsel %vm1899_vm4, %v2006_v51, %v2007_v4  ;;  %v11493_v22 = vshrl.u32 %v9356_v9, 16 }
 0x13c   : > { %v2017_v29 = vrot.slane %v11491_v30, 1  ;;  %v2021_v61 = vor.u32 %v9451_v27, %v11492_v36  ;;  %v6570_v60 = vcombine.low %v2008_v32, %v2008_v32  ;;  %v6571_v6 = vcombine.high %v2008_v32, %v2008_v32 }
 0x13d   : > { %v2009_v59 = vor.u32 %v2007_v4, %v11493_v22  ;;  %v2013_v53 = vsel %vm1899_vm4, %v2011_v1, %v2012_v43  ;;  %v11494_v31 = vshrl.u32 %v9364_v46, 16  ;;  %2625 = vst.msk [vmem:[#allocation2 + $0x598] sm:$0xf] %vm1641_vm1, %v6568_v16  ;;  %2626 = vst.msk [vmem:[#allocation2 + $0x59c] sm:$0xf] %vm1641_vm1, %v6569_v42  ;;  %v11495_v40 = vshrl.u32 %v9401_v58, 16 }
 0x13e   : > { %v6574_v27 = vcombine.low %v2013_v53, %v2013_v53  ;;  %v6575_v3 = vcombine.high %v2013_v53, %v2013_v53  ;;  %v2018_v24 = vsel %vm1899_vm4, %v2016_v39, %v2017_v29  ;;  %2627 = vst.msk [vmem:[#allocation2 + $0x5a0] sm:$0xf] %vm1641_vm1, %v6570_v60  ;;  %2628 = vst.msk [vmem:[#allocation2 + $0x5a4] sm:$0xf] %vm1641_vm1, %v6571_v6  ;;  %v11496_v11 = vshll.u32 %v9433_v7, 16  ;;  %v11508_v53 = vld [vmem:[#allocation44_spill] sm:$0xff] }
 0x13f   : > { %v2014_v49 = vor.u32 %v2012_v43, %v11494_v31  ;;  %v2115_v12 = vsel %vm9669_vm6, %v2009_v59, 0  ;;  %v6578_v14 = vcombine.low %v2018_v24, %v2018_v24  ;;  %v6579_v21 = vcombine.high %v2018_v24, %v2018_v24  ;;  %v11512_v24 = vld [vmem:[#allocation57_spill] sm:$0xff] }
 0x140   : > { %v6572_v9 = vcombine.low %v2115_v12, %v2115_v12  ;;  %v6573_v45 = vcombine.high %v2115_v12, %v2115_v12  ;;  %2631 = vst.msk [vmem:[#allocation2 + $0x5b0] sm:$0xf] %vm1641_vm1, %v6574_v27  ;;  %2632 = vst.msk [vmem:[#allocation2 + $0x5b4] sm:$0xf] %vm1641_vm1, %v6575_v3  ;;  %v2019_v34 = vor.u32 %v2017_v29, %v11495_v40  ;;  %v2022_v23 = vrot.slane %v11496_v11, 1  ;;  %v11514_v11 = vld [vmem:[#allocation45_spill] sm:$0xff] }
 0x141   : > { %v2116_v46 = vsel %vm9669_vm6, %v2014_v49, 0  ;;  %2635 = vst.msk [vmem:[#allocation2 + $0x5c0] sm:$0xf] %vm1641_vm1, %v6578_v14  ;;  %v11497_v33 = vshrl.u32 %v9443_v15, 16  ;;  %v11498_v25 = vshll.u32 %v9447_v18, 16  ;;  %v11499_v48 = vshrl.u32 %v9470_v2, 16 }
 0x142   : > { %v6576_v62 = vcombine.low %v2116_v46, %v2116_v46  ;;  %v6577_v17 = vcombine.high %v2116_v46, %v2116_v46  ;;  %2629 = vst.msk [vmem:[#allocation2 + $0x5a8] sm:$0xf] %vm1641_vm1, %v6572_v9  ;;  %2630 = vst.msk [vmem:[#allocation2 + $0x5ac] sm:$0xf] %vm1641_vm1, %v6573_v45  ;;  %v2117_v35 = vsel %vm9669_vm6, %v2019_v34, 0  ;;  %v11500_v15 = vshll.u32 %v9486_v55, 16 }
 0x143   : > { %v2026_v50 = vor.u32 %v9474_v10, %v11497_v33  ;;  %v2027_v20 = vrot.slane %v11498_v25, 1  ;;  %v2031_v58 = vor.u32 %v9505_v63, %v11499_v48  ;;  %2636 = vst.msk [vmem:[#allocation2 + $0x5c4] sm:$0xf] %vm1641_vm1, %v6579_v21  ;;  %v11501_v10 = vshrl.u32 %v9495_v44, 16 }
 0x144   : > { %2633 = vst.msk [vmem:[#allocation2 + $0x5b8] sm:$0xf] %vm1641_vm1, %v6576_v62  ;;  %2634 = vst.msk [vmem:[#allocation2 + $0x5bc] sm:$0xf] %vm1641_vm1, %v6577_v17  ;;  %v2032_v47 = vrot.slane %v11500_v15, 1  ;;  %v11502_v2 = vshll.u32 %v9499_v8, 16  ;;  %v6580_v63 = vcombine.low %v2117_v35, %v2117_v35  ;;  %v6581_v37 = vcombine.high %v2117_v35, %v2117_v35 }
 0x145   : > { %v2036_v38 = vor.u32 %v9522_v5, %v11501_v10  ;;  %v2023_v52 = vsel %vm1899_vm4, %v2021_v61, %v2022_v23  ;;  %v11503_v51 = vshrl.u32 %v9433_v7, 16  ;;  %v2028_v1 = vsel %vm1899_vm4, %v2026_v50, %v2027_v20  ;;  %v11516_v50 = vld [vmem:[#allocation49_spill] sm:$0xff] }
 0x146   : > { %v2037_v57 = vrot.slane %v11502_v2, 1  ;;  %v6582_v4 = vcombine.low %v2023_v52, %v2023_v52  ;;  %v6583_v26 = vcombine.high %v2023_v52, %v2023_v52  ;;  %v11504_v56 = vshrl.u32 %v9447_v18, 16  ;;  %2637 = vst.msk [vmem:[#allocation2 + $0x5c8] sm:$0xf] %vm1641_vm1, %v6580_v63  ;;  %2638 = vst.msk [vmem:[#allocation2 + $0x5cc] sm:$0xf] %vm1641_vm1, %v6581_v37 }
 0x147   : > { %v2024_v19 = vor.u32 %v2022_v23, %v11503_v51  ;;  %v6586_v5 = vcombine.low %v2028_v1, %v2028_v1  ;;  %v6587_v41 = vcombine.high %v2028_v1, %v2028_v1  ;;  %v2033_v0 = vsel %vm1899_vm4, %v2031_v58, %v2032_v47  ;;  %v11519_v58 = vld [vmem:[#allocation54_spill] sm:$0xff] }
 0x148   : > { %v2029_v43 = vor.u32 %v2027_v20, %v11504_v56  ;;  %2639 = vst.msk [vmem:[#allocation2 + $0x5d0] sm:$0xf] %vm1641_vm1, %v6582_v4  ;;  %2640 = vst.msk [vmem:[#allocation2 + $0x5d4] sm:$0xf] %vm1641_vm1, %v6583_v26  ;;  %v6590_v30 = vcombine.low %v2033_v0, %v2033_v0  ;;  %v6591_v61 = vcombine.high %v2033_v0, %v2033_v0  ;;  %v11505_v16 = vshrl.u32 %v9486_v55, 16  ;;  %v11518_v20 = vld [vmem:[#allocation60_spill] sm:$0xff] }
 0x149   : > { %v2118_v44 = vsel %vm9669_vm6, %v2024_v19, 0  ;;  %2643 = vst.msk [vmem:[#allocation2 + $0x5e0] sm:$0xf] %vm1641_vm1, %v6586_v5  ;;  %2644 = vst.msk [vmem:[#allocation2 + $0x5e4] sm:$0xf] %vm1641_vm1, %v6587_v41  ;;  %v2038_v32 = vsel %vm1899_vm4, %v2036_v38, %v2037_v57  ;;  %v11506_v22 = vshrl.u32 %v9499_v8, 16 }
 0x14a   : > { %v6584_v7 = vcombine.low %v2118_v44, %v2118_v44  ;;  %v6585_v39 = vcombine.high %v2118_v44, %v2118_v44  ;;  %v2119_v18 = vsel %vm9669_vm6, %v2029_v43, 0  ;;  %v2034_v42 = vor.u32 %v2032_v47, %v11505_v16  ;;  %2647 = vst.msk [vmem:[#allocation2 + $0x5f0] sm:$0xf] %vm1641_vm1, %v6590_v30  ;;  %2648 = vst.msk [vmem:[#allocation2 + $0x5f4] sm:$0xf] %vm1641_vm1, %v6591_v61  ;;  %v11510_v8 = vld [vmem:[#allocation43_spill] sm:$0xff] }
 0x14b   : > { %v6588_v29 = vcombine.low %v2119_v18, %v2119_v18  ;;  %v6589_v36 = vcombine.high %v2119_v18, %v2119_v18  ;;  %v2039_v59 = vor.u32 %v2037_v57, %v11506_v22  ;;  %v11507_v60 = vshrl.u32 %v9532_v28, 16  ;;  %v11521_v47 = vld [vmem:[#allocation53_spill] sm:$0xff]  ;;  %v11523_v38 = vld [vmem:[#allocation59_spill] sm:$0xff]  ;;  %v11524_v57 = vld [vmem:[#allocation58_spill] sm:$0xff] }
 0x14c   : > { %2641 = vst.msk [vmem:[#allocation2 + $0x5d8] sm:$0xf] %vm1641_vm1, %v6584_v7  ;;  %2642 = vst.msk [vmem:[#allocation2 + $0x5dc] sm:$0xf] %vm1641_vm1, %v6585_v39  ;;  %v11509_v31 = vshll.u32 %v11508_v53, 16  ;;  %v2120_v55 = vsel %vm9669_vm6, %v2034_v42, 0  ;;  %v6594_v12 = vcombine.low %v2038_v32, %v2038_v32  ;;  %v6595_v27 = vcombine.high %v2038_v32, %v2038_v32 }
 0x14d   : > { %v2041_v6 = vor.u32 %v9555_v13, %v11507_v60  ;;  %2645 = vst.msk [vmem:[#allocation2 + $0x5e8] sm:$0xf] %vm1641_vm1, %v6588_v29  ;;  %2646 = vst.msk [vmem:[#allocation2 + $0x5ec] sm:$0xf] %vm1641_vm1, %v6589_v36  ;;  %v11511_v3 = vshrl.u32 %v11510_v8, 16  ;;  %v6592_v9 = vcombine.low %v2120_v55, %v2120_v55  ;;  %v6593_v13 = vcombine.high %v2120_v55, %v2120_v55 }
 0x14e   : > { %v2042_v49 = vrot.slane %v11509_v31, 1  ;;  %v2121_v45 = vsel %vm9669_vm6, %v2039_v59, 0  ;;  %2651 = vst.msk [vmem:[#allocation2 + $0x600] sm:$0xf] %vm1641_vm1, %v6594_v12  ;;  %2652 = vst.msk [vmem:[#allocation2 + $0x604] sm:$0xf] %vm1641_vm1, %v6595_v27 }
 0x14f   : > { %v2046_v28 = vor.u32 %v11512_v24, %v11511_v3  ;;  %v6596_v14 = vcombine.low %v2121_v45, %v2121_v45  ;;  %v6597_v62 = vcombine.high %v2121_v45, %v2121_v45  ;;  %2649 = vst.msk [vmem:[#allocation2 + $0x5f8] sm:$0xf] %vm1641_vm1, %v6592_v9  ;;  %2650 = vst.msk [vmem:[#allocation2 + $0x5fc] sm:$0xf] %vm1641_vm1, %v6593_v13  ;;  %v11513_v40 = vshrl.u32 %v11508_v53, 16 }
 0x150   : > { %v2043_v46 = vsel %vm1899_vm4, %v2041_v6, %v2042_v49  ;;  %v11515_v23 = vshll.u32 %v11514_v11, 16  ;;  %v11517_v25 = vshrl.u32 %v11516_v50, 16  ;;  %v11520_v35 = vshll.u32 %v11519_v58, 16 }
 0x151   : > { %v6598_v17 = vcombine.low %v2043_v46, %v2043_v46  ;;  %v6599_v21 = vcombine.high %v2043_v46, %v2043_v46  ;;  %v2044_v34 = vor.u32 %v2042_v49, %v11513_v40  ;;  %2653 = vst.msk [vmem:[#allocation2 + $0x608] sm:$0xf] %vm1641_vm1, %v6596_v14  ;;  %2654 = vst.msk [vmem:[#allocation2 + $0x60c] sm:$0xf] %vm1641_vm1, %v6597_v62  ;;  %v11522_v10 = vshrl.u32 %v11521_v47, 16 }
 0x152   : > { %v2047_v33 = vrot.slane %v11515_v23, 1  ;;  %v2051_v48 = vor.u32 %v11518_v20, %v11517_v25  ;;  %v2052_v15 = vrot.slane %v11520_v35, 1  ;;  %v11525_v63 = vshll.u32 %v11524_v57, 16 }
 0x153   : > { %2655 = vst.msk [vmem:[#allocation2 + $0x610] sm:$0xf] %vm1641_vm1, %v6598_v17  ;;  %2656 = vst.msk [vmem:[#allocation2 + $0x614] sm:$0xf] %vm1641_vm1, %v6599_v21  ;;  %v2056_v2 = vor.u32 %v11523_v38, %v11522_v10  ;;  %v2122_v52 = vsel %vm9669_vm6, %v2044_v34, 0  ;;  %v11526_v19 = vshrl.u32 %v11514_v11, 16 }
 0x154   : > { %v2057_v37 = vrot.slane %v11525_v63, 1  ;;  %v2048_v51 = vsel %vm1899_vm4, %v2046_v28, %v2047_v33  ;;  %v2053_v26 = vsel %vm1899_vm4, %v2051_v48, %v2052_v15  ;;  %v8115_v1 = vmov 0  }
 0x155   : > { %v2049_v4 = vor.u32 %v2047_v33, %v11526_v19  ;;  %2671 = vst.msk [vmem:[#allocation2] sm:$0xf] %vm1641_vm1, %v8115_v1  ;;  %2672 = vst.msk [vmem:[#allocation2 + $0x4] sm:$0xf] %vm1641_vm1, %v8115_v1  ;;  %v6600_v56 = vcombine.low %v2122_v52, %v2122_v52  ;;  %v6601_v43 = vcombine.high %v2122_v52, %v2122_v52  ;;  %v11527_v39 = vshrl.u32 %v11519_v58, 16 }
 0x156   : > { %2673 = vst.msk [vmem:[#allocation2 + $0x8] sm:$0xf] %vm1641_vm1, %v8115_v1  ;;  %2674 = vst.msk [vmem:[#allocation2 + $0xc] sm:$0xf] %vm1641_vm1, %v8115_v1  ;;  %v6602_v44 = vcombine.low %v2048_v51, %v2048_v51  ;;  %v6603_v5 = vcombine.high %v2048_v51, %v2048_v51  ;;  %v6606_v0 = vcombine.low %v2053_v26, %v2053_v26  ;;  %v11528_v61 = vshrl.u32 %v11524_v57, 16 }
 0x157   : > { %2675 = vst.msk [vmem:[#allocation2 + $0x220] sm:$0xf] %vm1641_vm1, %v8115_v1  ;;  %2676 = vst.msk [vmem:[#allocation2 + $0x224] sm:$0xf] %vm1641_vm1, %v8115_v1  ;;  %v2123_v41 = vsel %vm9669_vm6, %v2049_v4, 0  ;;  %v6607_v7 = vcombine.high %v2053_v26, %v2053_v26  ;;  %v2054_v18 = vor.u32 %v2052_v15, %v11527_v39  ;;  %v2058_v36 = vsel %vm1899_vm4, %v2056_v2, %v2057_v37 }
 0x158   : > { %2677 = vst.msk [vmem:[#allocation2 + $0x228] sm:$0xf] %vm1641_vm1, %v8115_v1  ;;  %2678 = vst.msk [vmem:[#allocation2 + $0x22c] sm:$0xf] %vm1641_vm1, %v8115_v1  ;;  %v6604_v30 = vcombine.low %v2123_v41, %v2123_v41  ;;  %v6605_v29 = vcombine.high %v2123_v41, %v2123_v41  ;;  %v2059_v16 = vor.u32 %v2057_v37, %v11528_v61 }
 0x159   : > { %2679 = vst.msk [vmem:[#allocation2 + $0x440] sm:$0xf] %vm1641_vm1, %v8115_v1  ;;  %2680 = vst.msk [vmem:[#allocation2 + $0x444] sm:$0xf] %vm1641_vm1, %v8115_v1  ;;  %v2124_v42 = vsel %vm9669_vm6, %v2054_v18, 0  ;;  %v6610_v32 = vcombine.low %v2058_v36, %v2058_v36  ;;  %v6611_v22 = vcombine.high %v2058_v36, %v2058_v36 }
 0x15a   : > { %2681 = vst.msk [vmem:[#allocation2 + $0x448] sm:$0xf] %vm1641_vm1, %v8115_v1  ;;  %2682 = vst.msk [vmem:[#allocation2 + $0x44c] sm:$0xf] %vm1641_vm1, %v8115_v1  ;;  %v6608_v59 = vcombine.low %v2124_v42, %v2124_v42  ;;  %v6609_v60 = vcombine.high %v2124_v42, %v2124_v42  ;;  %v2125_v6 = vsel %vm9669_vm6, %v2059_v16, 0 }
 0x15b   : > { %2684 = vst.msk [vmem:[#allocation2 + $0x210] sm:$0xf] %vm1641_vm1, %v8115_v1  ;;  %2685 = vst.msk [vmem:[#allocation2 + $0x214] sm:$0xf] %vm1641_vm1, %v8115_v1  ;;  %v6612_v53 = vcombine.low %v2125_v6, %v2125_v6  ;;  %v6613_v31 = vcombine.high %v2125_v6, %v2125_v6 }
 0x15c   : > { %2686 = vst.msk [vmem:[#allocation2 + $0x218] sm:$0xf] %vm1641_vm1, %v8115_v1  ;;  %2687 = vst.msk [vmem:[#allocation2 + $0x21c] sm:$0xf] %vm1641_vm1, %v8115_v1 }
 0x15d   : > { %2688 = vst.msk [vmem:[#allocation2 + $0x430] sm:$0xf] %vm1641_vm1, %v8115_v1  ;;  %2689 = vst.msk [vmem:[#allocation2 + $0x434] sm:$0xf] %vm1641_vm1, %v8115_v1 }
 0x15e   : > { %2690 = vst.msk [vmem:[#allocation2 + $0x438] sm:$0xf] %vm1641_vm1, %v8115_v1  ;;  %2691 = vst.msk [vmem:[#allocation2 + $0x43c] sm:$0xf] %vm1641_vm1, %v8115_v1 }
 0x15f   : > { %2692 = vst.msk [vmem:[#allocation2 + $0x650] sm:$0xf] %vm1641_vm1, %v8115_v1  ;;  %2693 = vst.msk [vmem:[#allocation2 + $0x654] sm:$0xf] %vm1641_vm1, %v8115_v1 }
 0x160   : > { %2694 = vst.msk [vmem:[#allocation2 + $0x658] sm:$0xf] %vm1641_vm1, %v8115_v1  ;;  %2695 = vst.msk [vmem:[#allocation2 + $0x65c] sm:$0xf] %vm1641_vm1, %v8115_v1 }
 0x161   : > { %2657 = vst.msk [vmem:[#allocation2 + $0x618] sm:$0xf] %vm1641_vm1, %v6600_v56  ;;  %2658 = vst.msk [vmem:[#allocation2 + $0x61c] sm:$0xf] %vm1641_vm1, %v6601_v43 }
 0x162   : > { %2659 = vst.msk [vmem:[#allocation2 + $0x620] sm:$0xf] %vm1641_vm1, %v6602_v44  ;;  %2660 = vst.msk [vmem:[#allocation2 + $0x624] sm:$0xf] %vm1641_vm1, %v6603_v5 }
 0x163   : > { %2663 = vst.msk [vmem:[#allocation2 + $0x630] sm:$0xf] %vm1641_vm1, %v6606_v0  ;;  %2664 = vst.msk [vmem:[#allocation2 + $0x634] sm:$0xf] %vm1641_vm1, %v6607_v7 }
 0x164   : > { %2661 = vst.msk [vmem:[#allocation2 + $0x628] sm:$0xf] %vm1641_vm1, %v6604_v30  ;;  %2662 = vst.msk [vmem:[#allocation2 + $0x62c] sm:$0xf] %vm1641_vm1, %v6605_v29 }
 0x165   : > { %2667 = vst.msk [vmem:[#allocation2 + $0x640] sm:$0xf] %vm1641_vm1, %v6610_v32  ;;  %2668 = vst.msk [vmem:[#allocation2 + $0x644] sm:$0xf] %vm1641_vm1, %v6611_v22 }
 0x166   : > { %2665 = vst.msk [vmem:[#allocation2 + $0x638] sm:$0xf] %vm1641_vm1, %v6608_v59  ;;  %2666 = vst.msk [vmem:[#allocation2 + $0x63c] sm:$0xf] %vm1641_vm1, %v6609_v60 }
 0x167   : > { %2669 = vst.msk [vmem:[#allocation2 + $0x648] sm:$0xf] %vm1641_vm1, %v6612_v53  ;;  %2670 = vst.msk [vmem:[#allocation2 + $0x64c] sm:$0xf] %vm1641_vm1, %v6613_v31 }
 0x168 PF: > { %v6651_v54 = vld [vmem:[%s11107_s1 + $0x2] sm:$0x3]  ;;  %vm2899_vm7 = vcmask 1040384   ;;  %vm2900_vm8 = vcmask 1041408   ;;  %s7231_s24 = sshll.u32 %s8097_s15, 7  ;;  %v8116_v49 = vmov 65535  }
 0x169   : > { %v2901_v55 = vsel %vm2899_vm7, 4294967295, %v8116_v49  ;;  %vm2850_vm9 = vcmask 23552   ;;  %v2732_v12 = vld [vmem:[%s11107_s1] sm:$0x3]  ;;  %s10140_s29 = scalar_lea.vmem [#allocation2], %s7231_s24  ;;  %vm6087_vm10 = vcmask 519168  }
 0x16a   : > { %v10138_v27 = vsel %vm2900_vm8, %v2901_v55, 0  ;;  %v6750_v45 = vld [vmem:[%s11107_s1 + $0x4] sm:$0x3]  ;;  %v6817_v25 = vld [vmem:[%s11107_s1 + $0x6] sm:$0x3]  ;;  %s7276_s9 = sshll.u32 %s8097_s15, 5 }
 0x16b   : > { %v2904_v3 = vand.u32 %v6651_v54, %v10138_v27  ;;  %v3196_v28 = vand.u32 %v10138_v27, %v2732_v12  ;;  %v3525_v46 = vand.u32 %v6750_v45, %v10138_v27  ;;  %v6885_v20 = vld [vmem:[%s11107_s1 + $0x8] sm:$0x3]  ;;  %v3887_v48 = vand.u32 %v6817_v25, %v10138_v27  ;;  %v6953_v43 = vld [vmem:[%s11107_s1 + $0xa] sm:$0x3]  ;;  %v7020_v44 = vld [vmem:[%s11107_s1 + $0xc] sm:$0x3] }
 0x16c   : > { %v4248_v58 = vand.u32 %v6885_v20, %v10138_v27  ;;  %v4609_v5 = vand.u32 %v6953_v43, %v10138_v27  ;;  %v4971_v41 = vand.u32 %v7020_v44, %v10138_v27  ;;  %s7225_s10 = sshll.u32 %s8101_s16, 7  ;;  %s6138_s16 = sshll.u32 %s8221_s11, 4  ;;  %s11047_s16 = int_to_ptr.vmem [resolvable:$true] %s6138_s16 }
 0x16d   : > { %7430 = vmatprep.subr.bf16.mxu0 %v2904_v3  ;;  %7736 = vmatprep.subr.bf16.mxu1 %v2904_v3  ;;  %s6135_s20 = sadd.s32 %s7276_s9, %s7225_s10  ;;  %s11055_s28 = scalar_lea.sflag [#allocation4], %s208_s4 }
 0x16e   : > { %v7877_v8 = vld [vmem:[%s10140_s29 + $0x220] sm:$0xff]   ;;  %v7879_v9 = vld [vmem:[%s10140_s29 + $0x228] sm:$0xff]   ;;  %7431 = vmatpush3.bf16.msra.mxu0 %v2904_v3  ;;  %7737 = vmatpush3.bf16.msra.mxu1 %v2904_v3  ;;  %v7881_v14 = vld [vmem:[%s10140_s29 + $0x230] sm:$0xff]   ;;  %s7226_s15 = sshll.u32 %s6135_s20, 6  ;;  %s8021_s5 = scalar_lea.vmem %s11047_s16, 2048 }
 0x16f   : > { %v7878_v24 = vld [vmem:[%s10140_s29 + $0x260] sm:$0xff]   ;;  %7432 = vmatprep.mubr.msk.bf16.mxu0 %vm2850_vm9, %v7877_v8  ;;  %v7880_v13 = vld [vmem:[%s10140_s29 + $0x268] sm:$0xff]   ;;  %7464 = vmatprep.subr.bf16.mxu1 %v3196_v28  ;;  %v7882_v62 = vld [vmem:[%s10140_s29 + $0x270] sm:$0xff]   ;;  %s11045_s27 = scalar_lea.hbm %s11109_s3, %s7226_s15  ;;  %p8022_p0 = scmp.ne.s32.totalorder %s11047_s16, %s8021_s5 }
 0x170   : > { %7448 = vmatprep.mubr.msk.bf16.mxu1 %vm2850_vm9, %v7878_v24  ;;  %7498 = vmatprep.subr.bf16.mxu0 %v3525_v46  ;;  %v7883_v17 = vld [vmem:[%s10140_s29 + $0x238] sm:$0xff]   ;;  %v7885_v40 = vld [vmem:[%s10140_s29 + $0x240] sm:$0xff]   ;;  %v7887_v11 = vld [vmem:[%s10140_s29 + $0x248] sm:$0xff]   ;;  %s8117_s6 = smov [#allocation3]  }
 0x171   : > { %7433 = vmatmul.mubr.msk.bf16.vlgmr.msra.gmra.mxu0 %vm2850_vm9, %v7879_v9  ;;  %7449 = vmatmul.mubr.msk.bf16.vlgmr.msra.gmra.mxu1 %vm2850_vm9, %v7880_v13  ;;  %v7884_v21 = vld [vmem:[%s10140_s29 + $0x278] sm:$0xff]   ;;  %v7886_v34 = vld [vmem:[%s10140_s29 + $0x280] sm:$0xff]   ;;  %v7888_v23 = vld [vmem:[%s10140_s29 + $0x288] sm:$0xff]   ;;  %p8023_p1 = pnand %p8022_p0, %p8191_p3  ;;  %s8025_s7 = sshll.u32 %s8117_s6, 4  ;;  %s8026_s7 = int_to_ptr.vmem [resolvable:$false] %s8025_s7 }
 0x172   : > { %7465 = vmatpush3.bf16.msra.mxu1 %v3196_v28  ;;  %7499 = vmatpush3.bf16.msra.mxu0 %v3525_v46  ;;  %v7889_v33 = vld [vmem:[%s10140_s29 + $0x250] sm:$0xff]   ;;  %v7891_v35 = vld [vmem:[%s10140_s29 + $0x258] sm:$0xff]   ;;  %v7893_v47 = vld [vmem:[%s10140_s29] sm:$0xff]   ;;  %p8028_p4 = scmp.lt.s32.totalorder %s11047_s16, %s8026_s7 }
 0x173   : > { %7436 = vmatprep.mubr.msk.bf16.mxu0 %vm2850_vm9, %v7881_v14  ;;  %7452 = vmatprep.mubr.msk.bf16.mxu1 %vm2850_vm9, %v7882_v62  ;;  %v7890_v50 = vld [vmem:[%s10140_s29 + $0x290] sm:$0xff]   ;;  %v7892_v15 = vld [vmem:[%s10140_s29 + $0x298] sm:$0xff]   ;;  %v7894_v10 = vld [vmem:[%s10140_s29 + $0x440] sm:$0xff]   ;;  %p8024_p2 = pneg %p8023_p1 }
 0x174   : > { %7532 = vmatprep.subr.bf16.mxu1 %v3887_v48  ;;  %7566 = vmatprep.subr.bf16.mxu0 %v4248_v58  ;;  %v7895_v38 = vld [vmem:[%s10140_s29 + $0x8] sm:$0xff]   ;;  %v7897_v57 = vld [vmem:[%s10140_s29 + $0x10] sm:$0xff]   ;;  %v7899_v37 = vld [vmem:[%s10140_s29 + $0x18] sm:$0xff]  }
 0x175   : > { %v7896_v2 = vld [vmem:[%s10140_s29 + $0x448] sm:$0xff]   ;;  %v7898_v63 = vld [vmem:[%s10140_s29 + $0x450] sm:$0xff]   ;;  %v7900_v52 = vld [vmem:[%s10140_s29 + $0x458] sm:$0xff]  }
 0x176   : > { %v7901_v51 = vld [vmem:[%s10140_s29 + $0x20] sm:$0xff]   ;;  %v7903_v4 = vld [vmem:[%s10140_s29 + $0x28] sm:$0xff]   ;;  %v7905_v1 = vld [vmem:[%s10140_s29 + $0x30] sm:$0xff]  }
 0x177   : > { %v7902_v19 = vld [vmem:[%s10140_s29 + $0x460] sm:$0xff]   ;;  %v7904_v26 = vld [vmem:[%s10140_s29 + $0x468] sm:$0xff]   ;;  %v7906_v56 = vld [vmem:[%s10140_s29 + $0x470] sm:$0xff]  }
 0x178   : > { %v7907_v0 = vld [vmem:[%s10140_s29 + $0x38] sm:$0xff]   ;;  %v7909_v39 = vld [vmem:[%s10140_s29 + $0x40] sm:$0xff]   ;;  %v7911_v30 = vld [vmem:[%s10140_s29 + $0x48] sm:$0xff]  }
 0x179   : > { %7437 = vmatmul.mubr.msk.bf16.gmra.mxu0 %vm2850_vm9, %v7883_v17  ;;  %7453 = vmatmul.mubr.msk.bf16.gmra.mxu1 %vm2850_vm9, %v7884_v21  ;;  %v7908_v7 = vld [vmem:[%s10140_s29 + $0x478] sm:$0xff]   ;;  %v7910_v18 = vld [vmem:[%s10140_s29 + $0x480] sm:$0xff]   ;;  %v7912_v29 = vld [vmem:[%s10140_s29 + $0x488] sm:$0xff]  }
 0x17a   : > { %7440 = vmatprep.mubr.msk.bf16.mxu0 %vm2850_vm9, %v7885_v40  ;;  %7456 = vmatprep.mubr.msk.bf16.mxu1 %vm2850_vm9, %v7886_v34  ;;  %v7913_v36 = vld [vmem:[%s10140_s29 + $0x50] sm:$0xff]   ;;  %v7915_v16 = vld [vmem:[%s10140_s29 + $0x58] sm:$0xff]   ;;  %v7917_v32 = vld [vmem:[%s10140_s29 + $0x60] sm:$0xff]  }
 0x17b   : > { %v7914_v61 = vld [vmem:[%s10140_s29 + $0x490] sm:$0xff]   ;;  %v7916_v42 = vld [vmem:[%s10140_s29 + $0x498] sm:$0xff]   ;;  %v7918_v22 = vld [vmem:[%s10140_s29 + $0x4a0] sm:$0xff]  }
 0x17c   : > { %v7919_v59 = vld [vmem:[%s10140_s29 + $0x68] sm:$0xff]   ;;  %v7921_v6 = vld [vmem:[%s10140_s29 + $0x70] sm:$0xff]   ;;  %v7923_v31 = vld [vmem:[%s10140_s29 + $0x78] sm:$0xff]  }
 0x17d   : > { %v7920_v60 = vld [vmem:[%s10140_s29 + $0x4a8] sm:$0xff]   ;;  %v7922_v53 = vld [vmem:[%s10140_s29 + $0x4b0] sm:$0xff]   ;;  %v7924_v54 = vld [vmem:[%s10140_s29 + $0x4b8] sm:$0xff]  }
 0x17e   : > { %v7925_v49 = vld [vmem:[%s10140_s29 + $0x10] sm:$0xff]   ;;  %v7927_v12 = vld [vmem:[%s10140_s29 + $0x18] sm:$0xff]   ;;  %v7088_v3 = vld [vmem:[%s11107_s1 + $0xe] sm:$0x3] }
 0x17f   : > { %v7926_v55 = vld [vmem:[%s10140_s29 + $0x230] sm:$0xff]   ;;  %v7928_v8 = vld [vmem:[%s10140_s29 + $0x238] sm:$0xff]   ;;  %v7929_v28 = vld [vmem:[%s10140_s29 + $0x20] sm:$0xff]   ;;  %v10275_v13 = vand.u32 %v7088_v3, %v10138_v27 }
 0x180   : > { %v7156_v24 = vld [vmem:[%s11107_s1 + $0x10] sm:$0x3]  ;;  %v7930_v9 = vld [vmem:[%s10140_s29 + $0x240] sm:$0xff]   ;;  %v7931_v46 = vld [vmem:[%s10140_s29 + $0x28] sm:$0xff]  }
 0x181   : > { %7441 = vmatmul.mubr.msk.bf16.gmra.mxu0 %vm2850_vm9, %v7887_v11  ;;  %7457 = vmatmul.mubr.msk.bf16.gmra.mxu1 %vm2850_vm9, %v7888_v23  ;;  %v10278_v45 = vand.u32 %v7156_v24, %v10138_v27  ;;  %v7932_v14 = vld [vmem:[%s10140_s29 + $0x248] sm:$0xff]   ;;  %v7933_v27 = vld [vmem:[%s10140_s29 + $0x30] sm:$0xff]   ;;  %v7935_v17 = vld [vmem:[%s10140_s29 + $0x38] sm:$0xff]  }
 0x182   : > { %7444 = vmatprep.mubr.msk.bf16.mxu0 %vm2850_vm9, %v7889_v33  ;;  %7460 = vmatprep.mubr.msk.bf16.mxu1 %vm2850_vm9, %v7890_v50  ;;  %v7934_v62 = vld [vmem:[%s10140_s29 + $0x250] sm:$0xff]   ;;  %v7936_v21 = vld [vmem:[%s10140_s29 + $0x258] sm:$0xff]   ;;  %v7937_v40 = vld [vmem:[%s10140_s29 + $0x40] sm:$0xff]  }
 0x183   : > { %v7938_v34 = vld [vmem:[%s10140_s29 + $0x260] sm:$0xff]   ;;  %v7939_v11 = vld [vmem:[%s10140_s29 + $0x48] sm:$0xff]   ;;  %v7941_v33 = vld [vmem:[%s10140_s29 + $0x50] sm:$0xff]  }
 0x184   : > { %v7940_v23 = vld [vmem:[%s10140_s29 + $0x268] sm:$0xff]   ;;  %v7942_v50 = vld [vmem:[%s10140_s29 + $0x270] sm:$0xff]   ;;  %v7943_v25 = vld [vmem:[%s10140_s29 + $0x58] sm:$0xff]  }
 0x185   : > { %v7944_v20 = vld [vmem:[%s10140_s29 + $0x278] sm:$0xff]   ;;  %v7963_v43 = vld [vmem:[%s10140_s29 + $0x468] sm:$0xff]  }
 0x186   : > { %v7964_v44 = vld [vmem:[%s10140_s29 + $0x38] sm:$0xff]  }
 0x189   : > { %7445 = vmatmul.mubr.msk.bf16.gmra.mxu0 %vm2850_vm9, %v7891_v35  ;;  %7461 = vmatmul.mubr.msk.bf16.gmra.mxu1 %vm2850_vm9, %v7892_v15  ;;  %v7947_v35 = vld [vmem:[%s10140_s29 + $0x68] sm:$0xff]  }
 0x18a   : > { %7466 = vmatprep.mubr.msk.bf16.mxu1 %vm2850_vm9, %v7893_v47  ;;  %7500 = vmatprep.mubr.msk.bf16.mxu0 %vm2850_vm9, %v7894_v10  ;;  %v7948_v15 = vld [vmem:[%s10140_s29 + $0x288] sm:$0xff]   ;;  %v7949_v47 = vld [vmem:[%s10140_s29 + $0x70] sm:$0xff]  }
 0x18b   : > { %v7950_v10 = vld [vmem:[%s10140_s29 + $0x290] sm:$0xff]  }
 0x191   : > { %7467 = vmatmul.mubr.msk.bf16.vlgmr.msra.gmra.mxu1 %vm2850_vm9, %v7895_v38  ;;  %7501 = vmatmul.mubr.msk.bf16.vlgmr.msra.gmra.mxu0 %vm2850_vm9, %v7896_v2  ;;  %v7951_v38 = vld [vmem:[%s10140_s29 + $0x78] sm:$0xff]  }
 0x192   : > { %7533 = vmatpush3.bf16.msra.mxu1 %v3887_v48  ;;  %7567 = vmatpush3.bf16.msra.mxu0 %v4248_v58  ;;  %v7945_v48 = vld [vmem:[%s10140_s29 + $0x60] sm:$0xff]   ;;  %v7952_v2 = vld [vmem:[%s10140_s29 + $0x298] sm:$0xff]  }
 0x193   : > { %7470 = vmatprep.mubr.msk.bf16.mxu1 %vm2850_vm9, %v7897_v57  ;;  %7504 = vmatprep.mubr.msk.bf16.mxu0 %vm2850_vm9, %v7898_v63  ;;  %v7946_v58 = vld [vmem:[%s10140_s29 + $0x280] sm:$0xff]  }
 0x194   : > { %7600 = vmatprep.subr.bf16.mxu1 %v4609_v5  ;;  %7634 = vmatprep.subr.bf16.mxu0 %v4971_v41  ;;  %v7953_v57 = vld [vmem:[%s10140_s29 + $0x80] sm:$0xff]  }
 0x195   : > { %v7954_v63 = vld [vmem:[%s10140_s29 + $0x2a0] sm:$0xff]  }
 0x199   : > { %7471 = vmatmul.mubr.msk.bf16.gmra.mxu1 %vm2850_vm9, %v7899_v37  ;;  %7505 = vmatmul.mubr.msk.bf16.gmra.mxu0 %vm2850_vm9, %v7900_v52  ;;  %v7955_v37 = vld [vmem:[%s10140_s29 + $0x88] sm:$0xff]  }
 0x19a   : > { %7474 = vmatprep.mubr.msk.bf16.mxu1 %vm2850_vm9, %v7901_v51  ;;  %7508 = vmatprep.mubr.msk.bf16.mxu0 %vm2850_vm9, %v7902_v19  ;;  %v7956_v52 = vld [vmem:[%s10140_s29 + $0x2a8] sm:$0xff]   ;;  %v7957_v51 = vld [vmem:[%s10140_s29 + $0x450] sm:$0xff]   ;;  %v7958_v19 = vld [vmem:[%s10140_s29 + $0x20] sm:$0xff]  }
 0x1a1   : > { %7475 = vmatmul.mubr.msk.bf16.gmra.mxu1 %vm2850_vm9, %v7903_v4  ;;  %7509 = vmatmul.mubr.msk.bf16.gmra.mxu0 %vm2850_vm9, %v7904_v26  ;;  %v7959_v4 = vld [vmem:[%s10140_s29 + $0x458] sm:$0xff]   ;;  %v7960_v26 = vld [vmem:[%s10140_s29 + $0x28] sm:$0xff]  }
 0x1a2   : > { %7478 = vmatprep.mubr.msk.bf16.mxu1 %vm2850_vm9, %v7905_v1  ;;  %7512 = vmatprep.mubr.msk.bf16.mxu0 %vm2850_vm9, %v7906_v56  ;;  %v7961_v1 = vld [vmem:[%s10140_s29 + $0x460] sm:$0xff]   ;;  %v7962_v56 = vld [vmem:[%s10140_s29 + $0x30] sm:$0xff]  }
 0x1a9   : > { %7479 = vmatmul.mubr.msk.bf16.gmra.mxu1 %vm2850_vm9, %v7907_v0  ;;  %7513 = vmatmul.mubr.msk.bf16.gmra.mxu0 %vm2850_vm9, %v7908_v7  ;;  %v7967_v0 = vld [vmem:[%s10140_s29 + $0x478] sm:$0xff]   ;;  %v7968_v7 = vld [vmem:[%s10140_s29 + $0x48] sm:$0xff]  }
 0x1aa   : > { %7482 = vmatprep.mubr.msk.bf16.mxu1 %vm2850_vm9, %v7909_v39  ;;  %7516 = vmatprep.mubr.msk.bf16.mxu0 %vm2850_vm9, %v7910_v18  ;;  %v7969_v39 = vld [vmem:[%s10140_s29 + $0x480] sm:$0xff]   ;;  %v7970_v18 = vld [vmem:[%s10140_s29 + $0x50] sm:$0xff]  }
 0x1b1   : > { %7483 = vmatmul.mubr.msk.bf16.gmra.mxu1 %vm2850_vm9, %v7911_v30  ;;  %7517 = vmatmul.mubr.msk.bf16.gmra.mxu0 %vm2850_vm9, %v7912_v29  ;;  %v7971_v30 = vld [vmem:[%s10140_s29 + $0x488] sm:$0xff]   ;;  %v7972_v29 = vld [vmem:[%s10140_s29 + $0x58] sm:$0xff]  }
 0x1b2   : > { %7486 = vmatprep.mubr.msk.bf16.mxu1 %vm2850_vm9, %v7913_v36  ;;  %7520 = vmatprep.mubr.msk.bf16.mxu0 %vm2850_vm9, %v7914_v61  ;;  %v7973_v36 = vld [vmem:[%s10140_s29 + $0x490] sm:$0xff]   ;;  %v7974_v61 = vld [vmem:[%s10140_s29 + $0x60] sm:$0xff]  }
 0x1b9   : > { %7487 = vmatmul.mubr.msk.bf16.gmra.mxu1 %vm2850_vm9, %v7915_v16  ;;  %7521 = vmatmul.mubr.msk.bf16.gmra.mxu0 %vm2850_vm9, %v7916_v42  ;;  %v7975_v16 = vld [vmem:[%s10140_s29 + $0x498] sm:$0xff]   ;;  %v7976_v42 = vld [vmem:[%s10140_s29 + $0x68] sm:$0xff]  }
 0x1ba   : > { %7490 = vmatprep.mubr.msk.bf16.mxu1 %vm2850_vm9, %v7917_v32  ;;  %7524 = vmatprep.mubr.msk.bf16.mxu0 %vm2850_vm9, %v7918_v22  ;;  %v7977_v32 = vld [vmem:[%s10140_s29 + $0x4a0] sm:$0xff]   ;;  %v7978_v22 = vld [vmem:[%s10140_s29 + $0x70] sm:$0xff]  }
 0x1c1   : > { %7491 = vmatmul.mubr.msk.bf16.gmra.mxu1 %vm2850_vm9, %v7919_v59  ;;  %7525 = vmatmul.mubr.msk.bf16.gmra.mxu0 %vm2850_vm9, %v7920_v60 }
 0x1c2   : > { %7494 = vmatprep.mubr.msk.bf16.mxu1 %vm2850_vm9, %v7921_v6  ;;  %7528 = vmatprep.mubr.msk.bf16.mxu0 %vm2850_vm9, %v7922_v53 }
 0x1c9   : > { %7495 = vmatmul.mubr.msk.bf16.gmra.mxu1 %vm2850_vm9, %v7923_v31  ;;  %7529 = vmatmul.mubr.msk.bf16.gmra.mxu0 %vm2850_vm9, %v7924_v54 }
 0x1ca   : > { %7534 = vmatprep.mubr.msk.bf16.mxu1 %vm2850_vm9, %v7925_v49  ;;  %7568 = vmatprep.mubr.msk.bf16.mxu0 %vm2850_vm9, %v7926_v55  ;;  %v7979_v49 = vld [vmem:[%s10140_s29 + $0x4a8] sm:$0xff]   ;;  %v7980_v55 = vld [vmem:[%s10140_s29 + $0x78] sm:$0xff]  }
 0x1d1   : > { %7535 = vmatmul.mubr.msk.bf16.vlgmr.msra.gmra.mxu1 %vm2850_vm9, %v7927_v12  ;;  %7569 = vmatmul.mubr.msk.bf16.vlgmr.msra.gmra.mxu0 %vm2850_vm9, %v7928_v8  ;;  %v7981_v12 = vld [vmem:[%s10140_s29 + $0x4b0] sm:$0xff]   ;;  %v7982_v8 = vld [vmem:[%s10140_s29 + $0x80] sm:$0xff]  }
 0x1d2   : > { %7601 = vmatpush3.bf16.msra.mxu1 %v4609_v5  ;;  %7635 = vmatpush3.bf16.msra.mxu0 %v4971_v41  ;;  %v7965_v5 = vld [vmem:[%s10140_s29 + $0x470] sm:$0xff]   ;;  %v7966_v41 = vld [vmem:[%s10140_s29 + $0x40] sm:$0xff]  }
 0x1d3   : > { %7538 = vmatprep.mubr.msk.bf16.mxu1 %vm2850_vm9, %v7929_v28  ;;  %7572 = vmatprep.mubr.msk.bf16.mxu0 %vm2850_vm9, %v7930_v9 }
 0x1d4   : > { %7668 = vmatprep.subr.bf16.mxu1 %v10275_v13  ;;  %7702 = vmatprep.subr.bf16.mxu0 %v10278_v45 }
 0x1d9   : > { %7539 = vmatmul.mubr.msk.bf16.gmra.mxu1 %vm2850_vm9, %v7931_v46  ;;  %7573 = vmatmul.mubr.msk.bf16.gmra.mxu0 %vm2850_vm9, %v7932_v14 }
 0x1da   : > { %7542 = vmatprep.mubr.msk.bf16.mxu1 %vm2850_vm9, %v7933_v27  ;;  %7576 = vmatprep.mubr.msk.bf16.mxu0 %vm2850_vm9, %v7934_v62  ;;  %v7983_v27 = vld [vmem:[%s10140_s29 + $0x4b8] sm:$0xff]   ;;  %v7984_v62 = vld [vmem:[%s10140_s29 + $0x88] sm:$0xff]  }
 0x1e1   : > { %7543 = vmatmul.mubr.msk.bf16.gmra.mxu1 %vm2850_vm9, %v7935_v17  ;;  %7577 = vmatmul.mubr.msk.bf16.gmra.mxu0 %vm2850_vm9, %v7936_v21  ;;  %v7985_v17 = vld [vmem:[%s10140_s29 + $0x4c0] sm:$0xff]   ;;  %v7986_v21 = vld [vmem:[%s10140_s29 + $0x90] sm:$0xff]  }
 0x1e2   : > { %7546 = vmatprep.mubr.msk.bf16.mxu1 %vm2850_vm9, %v7937_v40  ;;  %7580 = vmatprep.mubr.msk.bf16.mxu0 %vm2850_vm9, %v7938_v34 }
 0x1e9   : > { %7547 = vmatmul.mubr.msk.bf16.gmra.mxu1 %vm2850_vm9, %v7939_v11  ;;  %7581 = vmatmul.mubr.msk.bf16.gmra.mxu0 %vm2850_vm9, %v7940_v23 }
 0x1ea   : > { %7550 = vmatprep.mubr.msk.bf16.mxu1 %vm2850_vm9, %v7941_v33  ;;  %7584 = vmatprep.mubr.msk.bf16.mxu0 %vm2850_vm9, %v7942_v50 }
 0x1f1   : > { %7551 = vmatmul.mubr.msk.bf16.gmra.mxu1 %vm2850_vm9, %v7943_v25  ;;  %7585 = vmatmul.mubr.msk.bf16.gmra.mxu0 %vm2850_vm9, %v7944_v20 }
 0x1f2   : > { %7554 = vmatprep.mubr.msk.bf16.mxu1 %vm2850_vm9, %v7945_v48  ;;  %7588 = vmatprep.mubr.msk.bf16.mxu0 %vm2850_vm9, %v7946_v58  ;;  %v7987_v48 = vld [vmem:[%s10140_s29 + $0x4c8] sm:$0xff]   ;;  %v7988_v58 = vld [vmem:[%s10140_s29 + $0x98] sm:$0xff]  }
 0x1f9   : > { %7555 = vmatmul.mubr.msk.bf16.gmra.mxu1 %vm2850_vm9, %v7947_v35  ;;  %7589 = vmatmul.mubr.msk.bf16.gmra.mxu0 %vm2850_vm9, %v7948_v15  ;;  %v7989_v35 = vld [vmem:[%s10140_s29 + $0x240] sm:$0xff]  }
 0x1fa   : > { %7558 = vmatprep.mubr.msk.bf16.mxu1 %vm2850_vm9, %v7949_v47  ;;  %7592 = vmatprep.mubr.msk.bf16.mxu0 %vm2850_vm9, %v7950_v10  ;;  %v7990_v15 = vld [vmem:[%s10140_s29 + $0x460] sm:$0xff]  }
 0x201   : > { %7559 = vmatmul.mubr.msk.bf16.gmra.mxu1 %vm2850_vm9, %v7951_v38  ;;  %7593 = vmatmul.mubr.msk.bf16.gmra.mxu0 %vm2850_vm9, %v7952_v2 }
 0x202   : > { %7562 = vmatprep.mubr.msk.bf16.mxu1 %vm2850_vm9, %v7953_v57  ;;  %7596 = vmatprep.mubr.msk.bf16.mxu0 %vm2850_vm9, %v7954_v63 }
 0x209   : > { %7563 = vmatmul.mubr.msk.bf16.gmra.mxu1 %vm2850_vm9, %v7955_v37  ;;  %7597 = vmatmul.mubr.msk.bf16.gmra.mxu0 %vm2850_vm9, %v7956_v52 }
 0x20a   : > { %7602 = vmatprep.mubr.msk.bf16.mxu1 %vm2850_vm9, %v7957_v51  ;;  %7636 = vmatprep.mubr.msk.bf16.mxu0 %vm2850_vm9, %v7958_v19  ;;  %v7991_v51 = vld [vmem:[%s10140_s29 + $0x248] sm:$0xff]  }
 0x20b   : > { %v7992_v19 = vld [vmem:[%s10140_s29 + $0x468] sm:$0xff]  }
 0x211   : > { %7603 = vmatmul.mubr.msk.bf16.vlgmr.msra.gmra.mxu1 %vm2850_vm9, %v7959_v4  ;;  %7637 = vmatmul.mubr.msk.bf16.vlgmr.msra.gmra.mxu0 %vm2850_vm9, %v7960_v26  ;;  %v7993_v4 = vld [vmem:[%s10140_s29 + $0x250] sm:$0xff]  }
 0x212   : > { %7669 = vmatpush3.bf16.msra.mxu1 %v10275_v13  ;;  %7703 = vmatpush3.bf16.msra.mxu0 %v10278_v45  ;;  %v7994_v26 = vld [vmem:[%s10140_s29 + $0x470] sm:$0xff]  }
 0x213   : > { %7606 = vmatprep.mubr.msk.bf16.mxu1 %vm2850_vm9, %v7961_v1  ;;  %7640 = vmatprep.mubr.msk.bf16.mxu0 %vm2850_vm9, %v7962_v56 }
 0x219   : > { %7607 = vmatmul.mubr.msk.bf16.gmra.mxu1 %vm2850_vm9, %v7963_v43  ;;  %7641 = vmatmul.mubr.msk.bf16.gmra.mxu0 %vm2850_vm9, %v7964_v44 }
 0x21a   : > { %7610 = vmatprep.mubr.msk.bf16.mxu1 %vm2850_vm9, %v7965_v5  ;;  %7644 = vmatprep.mubr.msk.bf16.mxu0 %vm2850_vm9, %v7966_v41 }
 0x221   : > { %7611 = vmatmul.mubr.msk.bf16.gmra.mxu1 %vm2850_vm9, %v7967_v0  ;;  %7645 = vmatmul.mubr.msk.bf16.gmra.mxu0 %vm2850_vm9, %v7968_v7 }
 0x222   : > { %7614 = vmatprep.mubr.msk.bf16.mxu1 %vm2850_vm9, %v7969_v39  ;;  %7648 = vmatprep.mubr.msk.bf16.mxu0 %vm2850_vm9, %v7970_v18 }
 0x229   : > { %7615 = vmatmul.mubr.msk.bf16.gmra.mxu1 %vm2850_vm9, %v7971_v30  ;;  %7649 = vmatmul.mubr.msk.bf16.gmra.mxu0 %vm2850_vm9, %v7972_v29  ;;  %v7995_v29 = vld [vmem:[%s10140_s29 + $0x258] sm:$0xff]  }
 0x22a   : > { %7618 = vmatprep.mubr.msk.bf16.mxu1 %vm2850_vm9, %v7973_v36  ;;  %7652 = vmatprep.mubr.msk.bf16.mxu0 %vm2850_vm9, %v7974_v61  ;;  %v7996_v36 = vld [vmem:[%s10140_s29 + $0x478] sm:$0xff]  }
 0x231   : > { %v10380_v59 = vpop.f32.mrf.mxu0  ;;  %v10382_v60 = vpop.f32.mrf.mxu1  ;;  %7619 = vmatmul.mubr.msk.bf16.gmra.mxu1 %vm2850_vm9, %v7975_v16  ;;  %7653 = vmatmul.mubr.msk.bf16.gmra.mxu0 %vm2850_vm9, %v7976_v42  ;;  %v7997_v42 = vld [vmem:[%s10140_s29 + $0x260] sm:$0xff]  }
 0x232   : > { %7622 = vmatprep.mubr.msk.bf16.mxu1 %vm2850_vm9, %v7977_v32  ;;  %7656 = vmatprep.mubr.msk.bf16.mxu0 %vm2850_vm9, %v7978_v22  ;;  %v7998_v32 = vld [vmem:[%s10140_s29 + $0x480] sm:$0xff]  }
 0x233   : > { %v10388_v6 = vpop.f32.mrf.mxu0  ;;  %v10390_v53 = vpop.f32.mrf.mxu1 }
 0x235   : > { %v10392_v31 = vpop.f32.mrf.mxu0  ;;  %v10394_v54 = vpop.f32.mrf.mxu1 }
 0x237   : > { %v10400_v3 = vpop.f32.mrf.mxu0  ;;  %v10402_v24 = vpop.f32.mrf.mxu1 }
 0x239   : > { %v10404_v28 = vpop.f32.mrf.mxu0  ;;  %v10406_v9 = vpop.f32.mrf.mxu1  ;;  %7623 = vmatmul.mubr.msk.bf16.gmra.mxu1 %vm2850_vm9, %v7979_v49  ;;  %7657 = vmatmul.mubr.msk.bf16.gmra.mxu0 %vm2850_vm9, %v7980_v55 }
 0x23a   : > { %7626 = vmatprep.mubr.msk.bf16.mxu1 %vm2850_vm9, %v7981_v12  ;;  %7660 = vmatprep.mubr.msk.bf16.mxu0 %vm2850_vm9, %v7982_v8 }
 0x23b   : > { %v10412_v13 = vpop.f32.mrf.mxu0  ;;  %v10414_v45 = vpop.f32.mrf.mxu1 }
 0x23d   : > { %v10416_v46 = vpop.f32.mrf.mxu0  ;;  %v10418_v14 = vpop.f32.mrf.mxu1 }
 0x23f   : > { %v10424_v40 = vpop.f32.mrf.mxu0  ;;  %v10426_v34 = vpop.f32.mrf.mxu1 }
 0x241   : > { %v10428_v11 = vpop.f32.mrf.mxu0  ;;  %v10430_v23 = vpop.f32.mrf.mxu1  ;;  %7627 = vmatmul.mubr.msk.bf16.gmra.mxu1 %vm2850_vm9, %v7983_v27  ;;  %7661 = vmatmul.mubr.msk.bf16.gmra.mxu0 %vm2850_vm9, %v7984_v62 }
 0x242   : > { %7630 = vmatprep.mubr.msk.bf16.mxu1 %vm2850_vm9, %v7985_v17  ;;  %7664 = vmatprep.mubr.msk.bf16.mxu0 %vm2850_vm9, %v7986_v21 }
 0x243   : > { %v10436_v33 = vpop.f32.mrf.mxu0  ;;  %v10438_v50 = vpop.f32.mrf.mxu1 }
 0x245   : > { %v10440_v25 = vpop.f32.mrf.mxu0  ;;  %v10442_v20 = vpop.f32.mrf.mxu1 }
 0x247   : > { %v10448_v47 = vpop.f32.mrf.mxu0  ;;  %v10450_v10 = vpop.f32.mrf.mxu1 }
 0x249   : > { %v10452_v38 = vpop.f32.mrf.mxu0  ;;  %v10454_v2 = vpop.f32.mrf.mxu1  ;;  %7631 = vmatmul.mubr.msk.bf16.gmra.mxu1 %vm2850_vm9, %v7987_v48  ;;  %7665 = vmatmul.mubr.msk.bf16.gmra.mxu0 %vm2850_vm9, %v7988_v58  ;;  %v7999_v58 = vld [vmem:[%s10140_s29 + $0x268] sm:$0xff]  }
 0x24a   : > { %7670 = vmatprep.mubr.msk.bf16.mxu1 %vm2850_vm9, %v7989_v35  ;;  %7704 = vmatprep.mubr.msk.bf16.mxu0 %vm2850_vm9, %v7990_v15  ;;  %v8000_v35 = vld [vmem:[%s10140_s29 + $0x488] sm:$0xff]  }
 0x24b   : > { %v10460_v57 = vpop.f32.mrf.mxu0  ;;  %v10462_v63 = vpop.f32.mrf.mxu1 }
 0x24d   : > { %v10464_v37 = vpop.f32.mrf.mxu0  ;;  %v10466_v52 = vpop.f32.mrf.mxu1 }
 0x24f   : > { %v10472_v1 = vpop.f32.mrf.mxu0  ;;  %v10474_v56 = vpop.f32.mrf.mxu1 }
 0x251   : > { %v7468_v43 = vpop.f32.mrf.mxu1  ;;  %v7502_v44 = vpop.f32.mrf.mxu0  ;;  %7671 = vmatmul.mubr.msk.bf16.vlgmr.msra.gmra.mxu1 %vm2850_vm9, %v7991_v51  ;;  %7705 = vmatmul.mubr.msk.bf16.vlgmr.msra.gmra.mxu0 %vm2850_vm9, %v7992_v19  ;;  %v8001_v19 = vld [vmem:[%s10140_s29 + $0x270] sm:$0xff]  }
 0x252   : > { %v3241_v5 = vadd.f32 %v7468_v43, %v10380_v59  ;;  %7674 = vmatprep.mubr.msk.bf16.mxu1 %vm2850_vm9, %v7993_v4  ;;  %7708 = vmatprep.mubr.msk.bf16.mxu0 %vm2850_vm9, %v7994_v26 }
 0x253   : > { %v3232_v41 = vpop.f32.mrf.mxu1  ;;  %v3561_v0 = vpop.f32.mrf.mxu0 }
 0x254   : > { %v10481_v7 = vadd.f32 %v7502_v44, %v3241_v5  ;;  %v3233_v39 = vadd.f32 %v3232_v41, %v10388_v6 }
 0x255   : > { %v7469_v18 = vpop.f32.mrf.mxu1  ;;  %v7503_v30 = vpop.f32.mrf.mxu0 }
 0x256   : > { %v10486_v61 = vadd.f32 %v3561_v0, %v3233_v39  ;;  %v3244_v16 = vadd.f32 %v7469_v18, %v10392_v31 }
 0x257   : > { %v3235_v22 = vpop.f32.mrf.mxu1  ;;  %v3564_v59 = vpop.f32.mrf.mxu0 }
 0x258   : > { %v10491_v49 = vadd.f32 %v7503_v30, %v3244_v16  ;;  %v3236_v55 = vadd.f32 %v3235_v22, %v10400_v3  ;;  %v8004_v16 = vld [vmem:[%s10140_s29 + $0x498] sm:$0xff]   ;;  %v8005_v22 = vld [vmem:[%s10140_s29 + $0x280] sm:$0xff]  }
 0x259   : > { %v7472_v12 = vpop.f32.mrf.mxu1  ;;  %v7506_v6 = vpop.f32.mrf.mxu0  ;;  %7675 = vmatmul.mubr.msk.bf16.gmra.mxu1 %vm2850_vm9, %v7995_v29  ;;  %7709 = vmatmul.mubr.msk.bf16.gmra.mxu0 %vm2850_vm9, %v7996_v36  ;;  %v8003_v36 = vld [vmem:[%s10140_s29 + $0x278] sm:$0xff]  }
 0x25a   : > { %v10496_v8 = vadd.f32 %v3564_v59, %v3236_v55  ;;  %v3257_v31 = vadd.f32 %v7472_v12, %v10404_v28  ;;  %7678 = vmatprep.mubr.msk.bf16.mxu1 %vm2850_vm9, %v7997_v42  ;;  %7712 = vmatprep.mubr.msk.bf16.mxu0 %vm2850_vm9, %v7998_v32  ;;  %v8002_v28 = vld [vmem:[%s10140_s29 + $0x490] sm:$0xff]  }
 0x25b   : > { %v3248_v27 = vpop.f32.mrf.mxu1  ;;  %v3577_v62 = vpop.f32.mrf.mxu0 }
 0x25c   : > { %v10501_v3 = vadd.f32 %v7506_v6, %v3257_v31  ;;  %v3249_v17 = vadd.f32 %v3248_v27, %v10412_v13 }
 0x25d   : > { %v7473_v21 = vpop.f32.mrf.mxu1  ;;  %v7507_v48 = vpop.f32.mrf.mxu0 }
 0x25e   : > { %v10506_v15 = vadd.f32 %v3577_v62, %v3249_v17  ;;  %v3260_v51 = vadd.f32 %v7473_v21, %v10416_v46 }
 0x25f   : > { %v3251_v4 = vpop.f32.mrf.mxu1  ;;  %v3580_v26 = vpop.f32.mrf.mxu0 }
 0x260   : > { %v10511_v43 = vadd.f32 %v7507_v48, %v3260_v51  ;;  %v3252_v44 = vadd.f32 %v3251_v4, %v10424_v40  ;;  %v8008_v51 = vld [vmem:[%s10140_s29 + $0x4a8] sm:$0xff]   ;;  %v8009_v4 = vld [vmem:[%s10140_s29 + $0x290] sm:$0xff]  }
 0x261   : > { %v7476_v5 = vpop.f32.mrf.mxu1  ;;  %v7510_v13 = vpop.f32.mrf.mxu0  ;;  %7679 = vmatmul.mubr.msk.bf16.gmra.mxu1 %vm2850_vm9, %v7999_v58  ;;  %7713 = vmatmul.mubr.msk.bf16.gmra.mxu0 %vm2850_vm9, %v8000_v35  ;;  %v8007_v35 = vld [vmem:[%s10140_s29 + $0x288] sm:$0xff]  }
 0x262   : > { %v10516_v41 = vadd.f32 %v3580_v26, %v3252_v44  ;;  %v3273_v46 = vadd.f32 %v7476_v5, %v10428_v11  ;;  %7682 = vmatprep.mubr.msk.bf16.mxu1 %vm2850_vm9, %v8001_v19  ;;  %7716 = vmatprep.mubr.msk.bf16.mxu0 %vm2850_vm9, %v8002_v28  ;;  %v8006_v11 = vld [vmem:[%s10140_s29 + $0x4a0] sm:$0xff]  }
 0x263   : > { %v3264_v0 = vpop.f32.mrf.mxu1  ;;  %v3593_v39 = vpop.f32.mrf.mxu0 }
 0x264   : > { %v10521_v40 = vadd.f32 %v7510_v13, %v3273_v46  ;;  %v3265_v18 = vadd.f32 %v3264_v0, %v10436_v33 }
 0x265   : > { %v7477_v30 = vpop.f32.mrf.mxu1  ;;  %v7511_v29 = vpop.f32.mrf.mxu0 }
 0x266   : > { %v10526_v42 = vadd.f32 %v3593_v39, %v3265_v18  ;;  %v3276_v32 = vadd.f32 %v7477_v30, %v10440_v25 }
 0x267   : > { %v3267_v59 = vpop.f32.mrf.mxu1  ;;  %v3596_v55 = vpop.f32.mrf.mxu0 }
 0x268   : > { %v10531_v12 = vadd.f32 %v7511_v29, %v3276_v32  ;;  %v3268_v6 = vadd.f32 %v3267_v59, %v10448_v47  ;;  %v8012_v32 = vld [vmem:[%s10140_s29 + $0x4b8] sm:$0xff]   ;;  %v8013_v59 = vld [vmem:[%s10140_s29 + $0x2a0] sm:$0xff]  }
 0x269   : > { %v7480_v31 = vpop.f32.mrf.mxu1  ;;  %v7514_v33 = vpop.f32.mrf.mxu0  ;;  %7683 = vmatmul.mubr.msk.bf16.gmra.mxu1 %vm2850_vm9, %v8003_v36  ;;  %7717 = vmatmul.mubr.msk.bf16.gmra.mxu0 %vm2850_vm9, %v8004_v16  ;;  %v8011_v16 = vld [vmem:[%s10140_s29 + $0x298] sm:$0xff]  }
 0x26a   : > { %v10536_v27 = vadd.f32 %v3596_v55, %v3268_v6  ;;  %v3289_v25 = vadd.f32 %v7480_v31, %v10452_v38  ;;  %7686 = vmatprep.mubr.msk.bf16.mxu1 %vm2850_vm9, %v8005_v22  ;;  %7720 = vmatprep.mubr.msk.bf16.mxu0 %vm2850_vm9, %v8006_v11  ;;  %v8010_v38 = vld [vmem:[%s10140_s29 + $0x4b0] sm:$0xff]  }
 0x26b   : > { %v3280_v62 = vpop.f32.mrf.mxu1  ;;  %v3609_v17 = vpop.f32.mrf.mxu0 }
 0x26c   : > { %v10541_v47 = vadd.f32 %v7514_v33, %v3289_v25  ;;  %v3281_v21 = vadd.f32 %v3280_v62, %v10460_v57 }
 0x26d   : > { %v7481_v48 = vpop.f32.mrf.mxu1  ;;  %v7515_v58 = vpop.f32.mrf.mxu0 }
 0x26e   : > { %v10546_v19 = vadd.f32 %v3609_v17, %v3281_v21  ;;  %v3292_v28 = vadd.f32 %v7481_v48, %v10464_v37 }
 0x26f   : > { %v3283_v26 = vpop.f32.mrf.mxu1  ;;  %v3612_v44 = vpop.f32.mrf.mxu0 }
 0x270   : > { %v10551_v5 = vadd.f32 %v7515_v58, %v3292_v28  ;;  %v3284_v13 = vadd.f32 %v3283_v26, %v10472_v1  ;;  %v8016_v28 = vld [vmem:[%s10140_s29 + $0x4c8] sm:$0xff]   ;;  %v8017_v26 = vld [vmem:[%s10140_s29 + $0x2b0] sm:$0xff]  }
 0x271   : > { %v7484_v46 = vpop.f32.mrf.mxu1  ;;  %v7518_v57 = vpop.f32.mrf.mxu0  ;;  %7687 = vmatmul.mubr.msk.bf16.gmra.mxu1 %vm2850_vm9, %v8007_v35  ;;  %7721 = vmatmul.mubr.msk.bf16.gmra.mxu0 %vm2850_vm9, %v8008_v51  ;;  %v8015_v51 = vld [vmem:[%s10140_s29 + $0x2a8] sm:$0xff]  }
 0x272   : > { %v10556_v0 = vadd.f32 %v3612_v44, %v3284_v13  ;;  %v3305_v37 = vadd.f32 %v7484_v46, %v10382_v60  ;;  %7690 = vmatprep.mubr.msk.bf16.mxu1 %vm2850_vm9, %v8009_v4  ;;  %7724 = vmatprep.mubr.msk.bf16.mxu0 %vm2850_vm9, %v8010_v38  ;;  %v8014_v60 = vld [vmem:[%s10140_s29 + $0x4c0] sm:$0xff]  }
 0x273   : > { %v3296_v39 = vpop.f32.mrf.mxu1  ;;  %v3625_v18 = vpop.f32.mrf.mxu0 }
 0x274   : > { %v10561_v1 = vadd.f32 %v7518_v57, %v3305_v37  ;;  %v3297_v30 = vadd.f32 %v3296_v39, %v10390_v53 }
 0x275   : > { %v7485_v29 = vpop.f32.mrf.mxu1  ;;  %v7519_v36 = vpop.f32.mrf.mxu0 }
 0x276   : > { %v10566_v22 = vadd.f32 %v3625_v18, %v3297_v30  ;;  %v3308_v11 = vadd.f32 %v7485_v29, %v10394_v54 }
 0x277   : > { %v3299_v55 = vpop.f32.mrf.mxu1  ;;  %v3628_v6 = vpop.f32.mrf.mxu0 }
 0x278   : > { %v10571_v31 = vadd.f32 %v7519_v36, %v3308_v11  ;;  %v3300_v33 = vadd.f32 %v3299_v55, %v10402_v24  ;;  %v8020_v11 = vld [vmem:[%s10140_s29 + $0x4d8] sm:$0xff]  }
 0x279   : > { %v7488_v25 = vpop.f32.mrf.mxu1  ;;  %v7522_v53 = vpop.f32.mrf.mxu0  ;;  %7691 = vmatmul.mubr.msk.bf16.gmra.mxu1 %vm2850_vm9, %v8011_v16  ;;  %7725 = vmatmul.mubr.msk.bf16.gmra.mxu0 %vm2850_vm9, %v8012_v32  ;;  %v8019_v32 = vld [vmem:[%s10140_s29 + $0x2b8] sm:$0xff]  }
 0x27a   : > { %v10576_v62 = vadd.f32 %v3628_v6, %v3300_v33  ;;  %v3321_v54 = vadd.f32 %v7488_v25, %v10406_v9  ;;  %7694 = vmatprep.mubr.msk.bf16.mxu1 %vm2850_vm9, %v8013_v59  ;;  %7728 = vmatprep.mubr.msk.bf16.mxu0 %vm2850_vm9, %v8014_v60  ;;  %v8018_v9 = vld [vmem:[%s10140_s29 + $0x4d0] sm:$0xff]   ;;  %s8027_s29 = scalar_lea.vmem %s8026_s7, 4096 }
 0x27b   : > { %v3312_v17 = vpop.f32.mrf.mxu1  ;;  %v3641_v21 = vpop.f32.mrf.mxu0  ;;  %p8029_p5 = scmp.lt.s32.totalorder %s8027_s29, %s8021_s5 }
 0x27c   : > { %v10581_v24 = vadd.f32 %v7522_v53, %v3321_v54  ;;  %v3313_v48 = vadd.f32 %v3312_v17, %v10414_v45 }
 0x27d   : > { %v7489_v58 = vpop.f32.mrf.mxu1  ;;  %v7523_v35 = vpop.f32.mrf.mxu0  ;;  %p8030_p6 = por %p8029_p5, %p8028_p4 }
 0x27e   : > { %v10586_v4 = vadd.f32 %v3641_v21, %v3313_v48  ;;  %v3324_v38 = vadd.f32 %v7489_v58, %v10418_v14 }
 0x27f   : > { %v3315_v44 = vpop.f32.mrf.mxu1  ;;  %v3644_v13 = vpop.f32.mrf.mxu0  ;;  %p8031_p7 = pnand %p8030_p6, %p8024_p2 }
 0x280   : > { %v10591_v46 = vadd.f32 %v7523_v35, %v3324_v38  ;;  %v3316_v57 = vadd.f32 %v3315_v44, %v10426_v34 }
 0x281   : > { %v7492_v37 = vpop.f32.mrf.mxu1  ;;  %v7526_v45 = vpop.f32.mrf.mxu0  ;;  %7695 = vmatmul.mubr.msk.bf16.gmra.mxu1 %vm2850_vm9, %v8015_v51  ;;  %7729 = vmatmul.mubr.msk.bf16.gmra.mxu0 %vm2850_vm9, %v8016_v28 }
 0x282   : > { %v10596_v39 = vadd.f32 %v3644_v13, %v3316_v57  ;;  %v3337_v14 = vadd.f32 %v7492_v37, %v10430_v23  ;;  %7698 = vmatprep.mubr.msk.bf16.mxu1 %vm2850_vm9, %v8017_v26  ;;  %7732 = vmatprep.mubr.msk.bf16.mxu0 %vm2850_vm9, %v8018_v9 }
 0x283   : > { %v3328_v18 = vpop.f32.mrf.mxu1  ;;  %v3657_v30 = vpop.f32.mrf.mxu0 }
 0x284   : > { %v10601_v29 = vadd.f32 %v7526_v45, %v3337_v14  ;;  %v3329_v34 = vadd.f32 %v3328_v18, %v10438_v50 }
 0x285   : > { %v7493_v36 = vpop.f32.mrf.mxu1  ;;  %v7527_v16 = vpop.f32.mrf.mxu0 }
 0x286   : > { %v10606_v59 = vadd.f32 %v3657_v30, %v3329_v34  ;;  %v3340_v60 = vadd.f32 %v7493_v36, %v10442_v20 }
 0x287   : > { %v3331_v55 = vpop.f32.mrf.mxu1  ;;  %v3660_v23 = vpop.f32.mrf.mxu0 }
 0x288   : > { %v10609_v6 = vadd.f32 %v7527_v16, %v3340_v60  ;;  %v3332_v33 = vadd.f32 %v3331_v55, %v10450_v10 }
 0x289   : > { %v7496_v25 = vpop.f32.mrf.mxu1  ;;  %v7530_v53 = vpop.f32.mrf.mxu0  ;;  %7699 = vmatmul.mubr.msk.bf16.gmra.mxu1 %vm2850_vm9, %v8019_v32  ;;  %7733 = vmatmul.mubr.msk.bf16.gmra.mxu0 %vm2850_vm9, %v8020_v11 }
 0x28a   : > { %v10614_v50 = vadd.f32 %v3660_v23, %v3332_v33  ;;  %v3353_v54 = vadd.f32 %v7496_v25, %v10454_v2 }
 0x28b   : > { %v3344_v17 = vpop.f32.mrf.mxu1  ;;  %v3673_v21 = vpop.f32.mrf.mxu0 }
 0x28c   : > { %v10617_v48 = vadd.f32 %v7530_v53, %v3353_v54  ;;  %v3345_v20 = vadd.f32 %v3344_v17, %v10462_v63 }
 0x28d   : > { %v7497_v58 = vpop.f32.mrf.mxu1  ;;  %v7531_v35 = vpop.f32.mrf.mxu0 }
 0x28e   : > { %v10620_v51 = vadd.f32 %v3673_v21, %v3345_v20  ;;  %v3356_v10 = vadd.f32 %v7497_v58, %v10466_v52 }
 0x28f   : > { %v3347_v28 = vpop.f32.mrf.mxu1  ;;  %v3676_v38 = vpop.f32.mrf.mxu0 }
 0x290   : > { %v10623_v26 = vadd.f32 %v7531_v35, %v3356_v10  ;;  %v3348_v9 = vadd.f32 %v3347_v28, %v10474_v56 }
 0x291   : > { %v7536_v44 = vpop.f32.mrf.mxu1  ;;  %v7570_v2 = vpop.f32.mrf.mxu0 }
 0x292   : > { %v10626_v13 = vadd.f32 %v3676_v38, %v3348_v9  ;;  %v4052_v57 = vadd.f32 %v7536_v44, %v10481_v7 }
 0x293   : > { %v3923_v37 = vpop.f32.mrf.mxu1  ;;  %v4284_v63 = vpop.f32.mrf.mxu0 }
 0x294   : > { %v10629_v45 = vadd.f32 %v7570_v2, %v4052_v57  ;;  %v4050_v14 = vadd.f32 %v3923_v37, %v10486_v61 }
 0x295   : > { %v7537_v18 = vpop.f32.mrf.mxu1  ;;  %v7571_v52 = vpop.f32.mrf.mxu0 }
 0x296   : > { %v10632_v30 = vadd.f32 %v4284_v63, %v4050_v14  ;;  %v4053_v34 = vadd.f32 %v7537_v18, %v10491_v49 }
 0x297   : > { %v3926_v36 = vpop.f32.mrf.mxu1  ;;  %v4287_v56 = vpop.f32.mrf.mxu0 }
 0x298   : > { %v10635_v16 = vadd.f32 %v7571_v52, %v4053_v34  ;;  %v4051_v32 = vadd.f32 %v3926_v36, %v10496_v8 }
 0x299   : > { %v7540_v11 = vpop.f32.mrf.mxu1  ;;  %v7574_v7 = vpop.f32.mrf.mxu0 }
 0x29a   : > { %v10638_v60 = vadd.f32 %v4287_v56, %v4051_v32  ;;  %v4056_v55 = vadd.f32 %v7540_v11, %v10501_v3 }
 0x29b   : > { %v3939_v23 = vpop.f32.mrf.mxu1  ;;  %v4300_v61 = vpop.f32.mrf.mxu0 }
 0x29c   : > { %v10641_v33 = vadd.f32 %v7574_v7, %v4056_v55  ;;  %v4054_v25 = vadd.f32 %v3939_v23, %v10506_v15 }
 0x29d   : > { %v7541_v53 = vpop.f32.mrf.mxu1  ;;  %v7575_v49 = vpop.f32.mrf.mxu0 }
 0x29e   : > { %v10644_v54 = vadd.f32 %v4300_v61, %v4054_v25  ;;  %v4057_v17 = vadd.f32 %v7541_v53, %v10511_v43 }
 0x29f   : > { %v3942_v21 = vpop.f32.mrf.mxu1  ;;  %v4303_v8 = vpop.f32.mrf.mxu0 }
 0x2a0   : > { %v10647_v20 = vadd.f32 %v7575_v49, %v4057_v17  ;;  %v4055_v58 = vadd.f32 %v3942_v21, %v10516_v41 }
 0x2a1   : > { %v7544_v35 = vpop.f32.mrf.mxu1  ;;  %v7578_v3 = vpop.f32.mrf.mxu0 }
 0x2a2   : > { %v10650_v10 = vadd.f32 %v4303_v8, %v4055_v58  ;;  %v4060_v28 = vadd.f32 %v7544_v35, %v10521_v40 }
 0x2a3   : > { %v3955_v38 = vpop.f32.mrf.mxu1  ;;  %v4316_v15 = vpop.f32.mrf.mxu0 }
 0x2a4   : > { %v10653_v9 = vadd.f32 %v7578_v3, %v4060_v28  ;;  %v4058_v44 = vadd.f32 %v3955_v38, %v10526_v42 }
 0x2a5   : > { %v7545_v2 = vpop.f32.mrf.mxu1  ;;  %v7579_v43 = vpop.f32.mrf.mxu0 }
 0x2a6   : > { %v10656_v57 = vadd.f32 %v4316_v15, %v4058_v44  ;;  %v4061_v37 = vadd.f32 %v7545_v2, %v10531_v12 }
 0x2a7   : > { %v3958_v63 = vpop.f32.mrf.mxu1  ;;  %v4319_v41 = vpop.f32.mrf.mxu0 }
 0x2a8   : > { %v10659_v14 = vadd.f32 %v7579_v43, %v4061_v37  ;;  %v4059_v18 = vadd.f32 %v3958_v63, %v10536_v27 }
 0x2a9   : > { %v7548_v52 = vpop.f32.mrf.mxu1  ;;  %v7582_v40 = vpop.f32.mrf.mxu0 }
 0x2aa   : > { %v10662_v34 = vadd.f32 %v4319_v41, %v4059_v18  ;;  %v4064_v36 = vadd.f32 %v7548_v52, %v10541_v47 }
 0x2ab   : > { %v3971_v56 = vpop.f32.mrf.mxu1  ;;  %v4332_v42 = vpop.f32.mrf.mxu0 }
 0x2ac   : > { %v10665_v32 = vadd.f32 %v7582_v40, %v4064_v36  ;;  %v4062_v11 = vadd.f32 %v3971_v56, %v10546_v19 }
 0x2ad   : > { %v7549_v7 = vpop.f32.mrf.mxu1  ;;  %v7583_v12 = vpop.f32.mrf.mxu0 }
 0x2ae   : > { %v10668_v55 = vadd.f32 %v4332_v42, %v4062_v11  ;;  %v4065_v23 = vadd.f32 %v7549_v7, %v10551_v5 }
 0x2af   : > { %v3974_v61 = vpop.f32.mrf.mxu1  ;;  %v4335_v27 = vpop.f32.mrf.mxu0 }
 0x2b0   : > { %v10671_v25 = vadd.f32 %v7583_v12, %v4065_v23  ;;  %v4063_v53 = vadd.f32 %v3974_v61, %v10556_v0 }
 0x2b1   : > { %v7552_v49 = vpop.f32.mrf.mxu1  ;;  %v7586_v47 = vpop.f32.mrf.mxu0 }
 0x2b2   : > { %v10674_v17 = vadd.f32 %v4335_v27, %v4063_v53  ;;  %v4068_v21 = vadd.f32 %v7552_v49, %v10561_v1 }
 0x2b3   : > { %v3987_v8 = vpop.f32.mrf.mxu1  ;;  %v4348_v19 = vpop.f32.mrf.mxu0 }
 0x2b4   : > { %v10677_v58 = vadd.f32 %v7586_v47, %v4068_v21  ;;  %v4066_v35 = vadd.f32 %v3987_v8, %v10566_v22 }
 0x2b5   : > { %v7553_v3 = vpop.f32.mrf.mxu1  ;;  %v7587_v5 = vpop.f32.mrf.mxu0 }
 0x2b6   : > { %v10680_v28 = vadd.f32 %v4348_v19, %v4066_v35  ;;  %v4069_v38 = vadd.f32 %v7553_v3, %v10571_v31 }
 0x2b7   : > { %v3990_v15 = vpop.f32.mrf.mxu1  ;;  %v4351_v0 = vpop.f32.mrf.mxu0 }
 0x2b8   : > { %v10683_v44 = vadd.f32 %v7587_v5, %v4069_v38  ;;  %v4067_v2 = vadd.f32 %v3990_v15, %v10576_v62 }
 0x2b9   : > { %v7556_v43 = vpop.f32.mrf.mxu1  ;;  %v7590_v1 = vpop.f32.mrf.mxu0 }
 0x2ba   : > { %11529 = vst [vmem:[#allocation70_spill] sm:$0xff] %v10683_v44  ;;  %v10686_v37 = vadd.f32 %v4351_v0, %v4067_v2  ;;  %v4072_v63 = vadd.f32 %v7556_v43, %v10581_v24 }
 0x2bb   : > { %v4003_v41 = vpop.f32.mrf.mxu1  ;;  %v4364_v22 = vpop.f32.mrf.mxu0 }
 0x2bc   : > { %11530 = vst [vmem:[#allocation71_spill] sm:$0xff] %v10686_v37  ;;  %v10689_v18 = vadd.f32 %v7590_v1, %v4072_v63  ;;  %v4070_v52 = vadd.f32 %v4003_v41, %v10586_v4 }
 0x2bd   : > { %v7557_v40 = vpop.f32.mrf.mxu1  ;;  %v7591_v31 = vpop.f32.mrf.mxu0 }
 0x2be   : > { %11531 = vst [vmem:[#allocation72_spill] sm:$0xff] %v10689_v18  ;;  %v10692_v36 = vadd.f32 %v4364_v22, %v4070_v52  ;;  %v4073_v56 = vadd.f32 %v7557_v40, %v10591_v46 }
 0x2bf   : > { %v4006_v42 = vpop.f32.mrf.mxu1  ;;  %v4367_v62 = vpop.f32.mrf.mxu0 }
 0x2c0   : > { %11532 = vst [vmem:[#allocation73_spill] sm:$0xff] %v10692_v36  ;;  %v10695_v11 = vadd.f32 %v7591_v31, %v4073_v56  ;;  %v4071_v7 = vadd.f32 %v4006_v42, %v10596_v39 }
 0x2c1   : > { %v7560_v12 = vpop.f32.mrf.mxu1  ;;  %v7594_v24 = vpop.f32.mrf.mxu0 }
 0x2c2   : > { %11533 = vst [vmem:[#allocation74_spill] sm:$0xff] %v10695_v11  ;;  %v10698_v23 = vadd.f32 %v4367_v62, %v4071_v7  ;;  %v4076_v61 = vadd.f32 %v7560_v12, %v10601_v29 }
 0x2c3   : > { %v4019_v27 = vpop.f32.mrf.mxu1  ;;  %v4380_v4 = vpop.f32.mrf.mxu0 }
 0x2c4   : > { %11534 = vst [vmem:[#allocation75_spill] sm:$0xff] %v10698_v23  ;;  %v10701_v53 = vadd.f32 %v7594_v24, %v4076_v61  ;;  %v4074_v49 = vadd.f32 %v4019_v27, %v10606_v59 }
 0x2c5   : > { %v7561_v47 = vpop.f32.mrf.mxu1  ;;  %v7595_v46 = vpop.f32.mrf.mxu0 }
 0x2c6   : > { %11535 = vst [vmem:[#allocation76_spill] sm:$0xff] %v10701_v53  ;;  %v10704_v21 = vadd.f32 %v4380_v4, %v4074_v49  ;;  %v4077_v8 = vadd.f32 %v7561_v47, %v10609_v6 }
 0x2c7   : > { %v4022_v19 = vpop.f32.mrf.mxu1  ;;  %v4383_v39 = vpop.f32.mrf.mxu0 }
 0x2c8   : > { %11536 = vst [vmem:[#allocation77_spill] sm:$0xff] %v10704_v21  ;;  %v10707_v35 = vadd.f32 %v7595_v46, %v4077_v8  ;;  %v4075_v3 = vadd.f32 %v4022_v19, %v10614_v50 }
 0x2c9   : > { %v7564_v5 = vpop.f32.mrf.mxu1  ;;  %v7598_v29 = vpop.f32.mrf.mxu0 }
 0x2ca   : > { %11537 = vst [vmem:[#allocation78_spill] sm:$0xff] %v10707_v35  ;;  %v10710_v38 = vadd.f32 %v4383_v39, %v4075_v3  ;;  %v4080_v15 = vadd.f32 %v7564_v5, %v10617_v48 }
 0x2cb   : > { %v4035_v0 = vpop.f32.mrf.mxu1  ;;  %v4396_v59 = vpop.f32.mrf.mxu0 }
 0x2cc   : > { %11538 = vst [vmem:[#allocation79_spill] sm:$0xff] %v10710_v38  ;;  %v10713_v2 = vadd.f32 %v7598_v29, %v4080_v15  ;;  %v4078_v43 = vadd.f32 %v4035_v0, %v10620_v51 }
 0x2cd   : > { %v7565_v1 = vpop.f32.mrf.mxu1  ;;  %v7599_v6 = vpop.f32.mrf.mxu0 }
 0x2ce   : > { %11539 = vst [vmem:[#allocation80_spill] sm:$0xff] %v10713_v2  ;;  %v10716_v63 = vadd.f32 %v4396_v59, %v4078_v43  ;;  %v4081_v41 = vadd.f32 %v7565_v1, %v10623_v26 }
 0x2cf   : > { %v4038_v22 = vpop.f32.mrf.mxu1  ;;  %v4399_v50 = vpop.f32.mrf.mxu0 }
 0x2d0   : > { %11540 = vst [vmem:[#allocation81_spill] sm:$0xff] %v10716_v63  ;;  %v10719_v52 = vadd.f32 %v7599_v6, %v4081_v41  ;;  %v4079_v40 = vadd.f32 %v4038_v22, %v10626_v13 }
 0x2d1   : > { %v7604_v31 = vpop.f32.mrf.mxu1  ;;  %v10722_v48 = vpop.f32.mrf.mxu0 }
 0x2d2   : > { %11541 = vst [vmem:[#allocation82_spill] sm:$0xff] %v10719_v52  ;;  %v10724_v56 = vadd.f32 %v4399_v50, %v4079_v40 }
 0x2d3   : > { %v4645_v42 = vpop.f32.mrf.mxu1  ;;  %v10726_v62 = vpop.f32.mrf.mxu0 }
 0x2d4   : > { %11542 = vst [vmem:[#allocation83_spill] sm:$0xff] %v10724_v56 }
 0x2d5   : > { %v10728_v51 = vpop.f32.mrf.mxu1  ;;  %v10730_v7 = vpop.f32.mrf.mxu0 }
 0x2d7   : > { %v10732_v12 = vpop.f32.mrf.mxu1  ;;  %v10734_v26 = vpop.f32.mrf.mxu0 }
 0x2d9   : > { %v10736_v24 = vpop.f32.mrf.mxu1  ;;  %v10738_v61 = vpop.f32.mrf.mxu0 }
 0x2db   : > { %v10740_v13 = vpop.f32.mrf.mxu1  ;;  %v10742_v27 = vpop.f32.mrf.mxu0 }
 0x2dd   : > { %v10744_v4 = vpop.f32.mrf.mxu1  ;;  %v10746_v49 = vpop.f32.mrf.mxu0 }
 0x2df   : > { %v10748_v47 = vpop.f32.mrf.mxu1  ;;  %v10750_v46 = vpop.f32.mrf.mxu0 }
 0x2e1   : > { %v10752_v8 = vpop.f32.mrf.mxu1  ;;  %v10754_v19 = vpop.f32.mrf.mxu0 }
 0x2e3   : > { %v10756_v39 = vpop.f32.mrf.mxu1  ;;  %v10758_v3 = vpop.f32.mrf.mxu0 }
 0x2e5   : > { %v10760_v5 = vpop.f32.mrf.mxu1  ;;  %v10762_v29 = vpop.f32.mrf.mxu0 }
 0x2e7   : > { %v10764_v15 = vpop.f32.mrf.mxu1  ;;  %v10766_v0 = vpop.f32.mrf.mxu0 }
 0x2e9   : > { %v10768_v59 = vpop.f32.mrf.mxu1  ;;  %v10770_v43 = vpop.f32.mrf.mxu0 }
 0x2eb   : > { %v10772_v1 = vpop.f32.mrf.mxu1  ;;  %v10774_v6 = vpop.f32.mrf.mxu0 }
 0x2ed   : > { %v10776_v41 = vpop.f32.mrf.mxu1  ;;  %v10778_v22 = vpop.f32.mrf.mxu0 }
 0x2ef   : > { %v10780_v50 = vpop.f32.mrf.mxu1  ;;  %v10782_v40 = vpop.f32.mrf.mxu0 }
 0x2f1   : > { %v10784_v56 = vpop.f32.mrf.mxu1  ;;  %v10786_v52 = vpop.f32.mrf.mxu0 }
 0x2f3   : > { %v10788_v63 = vpop.f32.mrf.mxu1  ;;  %v10790_v2 = vpop.f32.mrf.mxu0 }
 0x2f4   : > { %11543 = vst [vmem:[#allocation84_spill] sm:$0xff] %v10790_v2 }
 0x2f5   : > { %v10792_v38 = vpop.f32.mrf.mxu1  ;;  %v10794_v35 = vpop.f32.mrf.mxu0 }
 0x2f6   : > { %11544 = vst [vmem:[#allocation85_spill] sm:$0xff] %v10792_v38  ;;  %11545 = vst [vmem:[#allocation86_spill] sm:$0xff] %v10794_v35 }
 0x2f7   : > { %v10796_v21 = vpop.f32.mrf.mxu1  ;;  %v10798_v53 = vpop.f32.mrf.mxu0 }
 0x2f8   : > { %11546 = vst [vmem:[#allocation87_spill] sm:$0xff] %v10796_v21  ;;  %11547 = vst [vmem:[#allocation88_spill] sm:$0xff] %v10798_v53 }
 0x2f9   : > { %v10800_v23 = vpop.f32.mrf.mxu1  ;;  %v10802_v11 = vpop.f32.mrf.mxu0 }
 0x2fa   : > { %11548 = vst [vmem:[#allocation89_spill] sm:$0xff] %v10800_v23  ;;  %11549 = vst [vmem:[#allocation90_spill] sm:$0xff] %v10802_v11 }
 0x2fb   : > { %v10804_v36 = vpop.f32.mrf.mxu1  ;;  %v10806_v18 = vpop.f32.mrf.mxu0 }
 0x2fc   : > { %11550 = vst [vmem:[#allocation91_spill] sm:$0xff] %v10804_v36  ;;  %11551 = vst [vmem:[#allocation92_spill] sm:$0xff] %v10806_v18 }
 0x2fd   : > { %v10808_v37 = vpop.f32.mrf.mxu1  ;;  %v10810_v44 = vpop.f32.mrf.mxu0 }
 0x2fe   : > { %11552 = vst [vmem:[#allocation93_spill] sm:$0xff] %v10808_v37  ;;  %11553 = vst [vmem:[#allocation94_spill] sm:$0xff] %v10810_v44 }
 0x2ff   : > { %v10812_v2 = vpop.f32.mrf.mxu1  ;;  %v10814_v38 = vpop.f32.mrf.mxu0 }
 0x300   : > { %11554 = vst [vmem:[#allocation95_spill] sm:$0xff] %v10812_v2  ;;  %11555 = vst [vmem:[#allocation96_spill] sm:$0xff] %v10814_v38 }
 0x301   : > { %v10816_v35 = vpop.f32.mrf.mxu1  ;;  %v10818_v21 = vpop.f32.mrf.mxu0 }
 0x302   : > { %11556 = vst [vmem:[#allocation97_spill] sm:$0xff] %v10816_v35  ;;  %11557 = vst [vmem:[#allocation98_spill] sm:$0xff] %v10818_v21  ;;  %v4774_v21 = vadd.f32 %v7604_v31, %v10629_v45  ;;  %v4773_v45 = vadd.f32 %v10732_v12, %v10638_v60 }
 0x303   : > { %v10820_v53 = vpop.f32.mrf.mxu1  ;;  %v10822_v23 = vpop.f32.mrf.mxu0 }
 0x304   : > { %11558 = vst [vmem:[#allocation99_spill] sm:$0xff] %v10820_v53  ;;  %11559 = vst [vmem:[#allocation100_spill] sm:$0xff] %v10822_v23 }
 0x305   : > { %v10824_v11 = vpop.f32.mrf.mxu1  ;;  %v10826_v36 = vpop.f32.mrf.mxu0 }
 0x306   : > { %11560 = vst [vmem:[#allocation101_spill] sm:$0xff] %v10824_v11  ;;  %11561 = vst [vmem:[#allocation102_spill] sm:$0xff] %v10826_v36  ;;  %v4772_v36 = vadd.f32 %v4645_v42, %v10632_v30  ;;  %v10859_v30 = vld [vmem:[%s11108_s2] ss:$0 sm:$0xff] }
 0x307   : > { %v10828_v18 = vpop.f32.mrf.mxu1  ;;  %v10830_v37 = vpop.f32.mrf.mxu0 }
 0x308   : > { %11562 = vst [vmem:[#allocation103_spill] sm:$0xff] %v10828_v18  ;;  %11563 = vst [vmem:[#allocation104_spill] sm:$0xff] %v10830_v37  ;;  %v5136_v37 = vadd.f32 %v10722_v48, %v4774_v21 }
 0x309   : > { %v10832_v44 = vpop.f32.mrf.mxu1  ;;  %v10834_v2 = vpop.f32.mrf.mxu0 }
 0x30a   : > { %11564 = vst [vmem:[#allocation105_spill] sm:$0xff] %v10832_v44  ;;  %11565 = vst [vmem:[#allocation106_spill] sm:$0xff] %v10834_v2  ;;  %v4775_v2 = vadd.f32 %v10728_v51, %v10635_v16  ;;  %v4778_v16 = vadd.f32 %v10736_v24, %v10641_v33 }
 0x30b   : > { %v10836_v38 = vpop.f32.mrf.mxu1  ;;  %v10838_v35 = vpop.f32.mrf.mxu0 }
 0x30c   : > { %11566 = vst [vmem:[#allocation107_spill] sm:$0xff] %v10836_v38  ;;  %11567 = vst [vmem:[#allocation108_spill] sm:$0xff] %v10838_v35  ;;  %v5134_v35 = vadd.f32 %v10726_v62, %v4772_v36  ;;  %v5137_v21 = vadd.f32 %v10730_v7, %v4775_v2  ;;  %v4776_v36 = vadd.f32 %v10740_v13, %v10644_v54 }
 0x30d   : > { %v10841_v53 = vpop.f32.mrf.mxu1  ;;  %v10843_v23 = vpop.f32.mrf.mxu0  ;;  %v5140_v54 = vadd.f32 %v10738_v61, %v4778_v16 }
 0x30e   : > { %11568 = vst [vmem:[#allocation109_spill] sm:$0xff] %v10843_v23  ;;  %v5138_v13 = vadd.f32 %v10742_v27, %v4776_v36 }
 0x30f   : > { %v10846_v11 = vpop.f32.mrf.mxu1  ;;  %v10848_v18 = vpop.f32.mrf.mxu0 }
 0x310   : > { %11569 = vst [vmem:[#allocation110_spill] sm:$0xff] %v10846_v11  ;;  %11570 = vst [vmem:[#allocation111_spill] sm:$0xff] %v10848_v18  ;;  %v4779_v11 = vadd.f32 %v10744_v4, %v10647_v20 }
 0x311   : > { %v7672_v38 = vpop.f32.mrf.mxu1  ;;  %v7706_v44 = vpop.f32.mrf.mxu0 }
 0x312   : > { %v5497_v31 = vadd.f32 %v7672_v38, %v5136_v37  ;;  %v5135_v37 = vadd.f32 %v10734_v26, %v4773_v45  ;;  %v4777_v26 = vadd.f32 %v10748_v47, %v10650_v10 }
 0x313   : > { %v5368_v42 = vpop.f32.mrf.mxu1  ;;  %v5729_v18 = vpop.f32.mrf.mxu0 }
 0x314   : > { %v5858_v48 = vadd.f32 %v7706_v44, %v5497_v31  ;;  %v5495_v23 = vadd.f32 %v5368_v42, %v5134_v35  ;;  %v5141_v42 = vadd.f32 %v10746_v49, %v4779_v11 }
 0x315   : > { %v7673_v62 = vpop.f32.mrf.mxu1  ;;  %v7707_v60 = vpop.f32.mrf.mxu0 }
 0x316   : > { %v5897_v38 = vadd.f32 %v10859_v30, %v5858_v48  ;;  %v5856_v51 = vadd.f32 %v5729_v18, %v5495_v23  ;;  %v5498_v12 = vadd.f32 %v7673_v62, %v5137_v21  ;;  %v4782_v21 = vadd.f32 %v10752_v8, %v10653_v9 }
 0x317   : > { %v5371_v2 = vpop.f32.mrf.mxu1  ;;  %v5732_v44 = vpop.f32.mrf.mxu0  ;;  %v5139_v62 = vadd.f32 %v10750_v46, %v4777_v26 }
 0x318   : > { %v5929_v35 = vmax.f32 %v5897_v38, 0.0  ;;  %v5895_v7 = vadd.f32 %v10859_v30, %v5856_v51  ;;  %v5859_v33 = vadd.f32 %v7707_v60, %v5498_v12  ;;  %v5496_v24 = vadd.f32 %v5371_v2, %v5135_v37 }
 0x319   : > { %v7676_v18 = vpop.f32.mrf.mxu1  ;;  %v7710_v23 = vpop.f32.mrf.mxu0  ;;  %v5144_v51 = vadd.f32 %v10754_v19, %v4782_v21  ;;  %v4780_v12 = vadd.f32 %v10756_v39, %v10656_v57  ;;  %v4783_v2 = vadd.f32 %v10760_v5, %v10659_v14  ;;  %v4781_v19 = vadd.f32 %v10764_v15, %v10662_v34 }
 0x31a   : > { %v7246_v45 = vpack.c.bf16 %v5929_v35, %v5929_v35  ;;  %v5927_v20 = vmax.f32 %v5895_v7, 0.0  ;;  %v5898_v4 = vadd.f32 %v10859_v30, %v5859_v33  ;;  %v5857_v31 = vadd.f32 %v5732_v44, %v5496_v24 }
 0x31b   : > { %v5501_v61 = vadd.f32 %v7676_v18, %v5140_v54  ;;  %v5384_v48 = vpop.f32.mrf.mxu1  ;;  %v5745_v27 = vpop.f32.mrf.mxu0 }
 0x31c   : > { %6090 = vst.msk [vmem:[%s8221_s11 + $0x8] sm:$0xf] %vm6087_vm10, %v7246_v45  ;;  %v7244_v10 = vpack.c.bf16 %v5927_v20, %v5927_v20  ;;  %v5930_v47 = vmax.f32 %v5898_v4, 0.0  ;;  %v5896_v16 = vadd.f32 %v10859_v30, %v5857_v31  ;;  %v5499_v36 = vadd.f32 %v5384_v48, %v5138_v13 }
 0x31d   : > { %v5862_v60 = vadd.f32 %v7710_v23, %v5501_v61  ;;  %v7677_v37 = vpop.f32.mrf.mxu1  ;;  %v7711_v38 = vpop.f32.mrf.mxu0  ;;  %v5142_v23 = vadd.f32 %v10758_v3, %v4780_v12  ;;  %v5145_v45 = vadd.f32 %v10762_v29, %v4783_v2  ;;  %v4786_v20 = vadd.f32 %v10768_v59, %v10665_v32 }
 0x31e   : > { %6088 = vst.msk [vmem:[%s8221_s11] sm:$0xf] %vm6087_vm10, %v7244_v10  ;;  %v7247_v11 = vpack.c.bf16 %v5930_v47, %v5930_v47  ;;  %v5928_v9 = vmax.f32 %v5896_v16, 0.0  ;;  %v5860_v49 = vadd.f32 %v5745_v27, %v5499_v36  ;;  %v5502_v8 = vadd.f32 %v7677_v37, %v5141_v42 }
 0x31f   : > { %v5901_v46 = vadd.f32 %v10859_v30, %v5862_v60  ;;  %v5387_v44 = vpop.f32.mrf.mxu1  ;;  %v5748_v35 = vpop.f32.mrf.mxu0  ;;  %v5143_v48 = vadd.f32 %v10766_v0, %v4781_v19  ;;  %v4784_v3 = vadd.f32 %v10772_v1, %v10668_v55  ;;  %v5148_v36 = vadd.f32 %v10770_v43, %v4786_v20 }
 0x320   : > { %6091 = vst.msk [vmem:[%s8221_s11 + $0xc] sm:$0xf] %vm6087_vm10, %v7247_v11  ;;  %v7245_v7 = vpack.c.bf16 %v5928_v9, %v5928_v9  ;;  %v5899_v33 = vadd.f32 %v10859_v30, %v5860_v49  ;;  %v5863_v24 = vadd.f32 %v7711_v38, %v5502_v8  ;;  %v5500_v54 = vadd.f32 %v5387_v44, %v5139_v62 }
 0x321   : > { %v5933_v13 = vmax.f32 %v5901_v46, 0.0  ;;  %v7680_v26 = vpop.f32.mrf.mxu1  ;;  %v7714_v57 = vpop.f32.mrf.mxu0  ;;  %v5146_v11 = vadd.f32 %v10774_v6, %v4784_v3  ;;  %v4787_v9 = vadd.f32 %v10776_v41, %v10671_v25  ;;  %v4785_v49 = vadd.f32 %v10780_v50, %v10674_v17 }
 0x322   : > { %6089 = vst.msk [vmem:[%s8221_s11 + $0x4] sm:$0xf] %vm6087_vm10, %v7245_v7  ;;  %v5931_v14 = vmax.f32 %v5899_v33, 0.0  ;;  %v5902_v39 = vadd.f32 %v10859_v30, %v5863_v24  ;;  %v5861_v5 = vadd.f32 %v5748_v35, %v5500_v54  ;;  %v5505_v18 = vadd.f32 %v7680_v26, %v5144_v51 }
 0x323   : > { %v7250_v34 = vpack.c.bf16 %v5933_v13, %v5933_v13  ;;  %v5400_v15 = vpop.f32.mrf.mxu1  ;;  %v5761_v4 = vpop.f32.mrf.mxu0  ;;  %v4790_v6 = vadd.f32 %v10784_v56, %v10677_v58  ;;  %v5149_v24 = vadd.f32 %v10778_v22, %v4787_v9  ;;  %v5147_v54 = vadd.f32 %v10782_v40, %v4785_v49  ;;  %v11579_v9 = vld [vmem:[#allocation73_spill] sm:$0xff]  ;;  %v11580_v49 = vld [vmem:[#allocation91_spill] sm:$0xff] }
 0x324   : > { %v7248_v31 = vpack.c.bf16 %v5931_v14, %v5931_v14  ;;  %v5934_v42 = vmax.f32 %v5902_v39, 0.0  ;;  %v5900_v21 = vadd.f32 %v10859_v30, %v5861_v5  ;;  %v5866_v61 = vadd.f32 %v7714_v57, %v5505_v18  ;;  %v11571_v18 = vld [vmem:[#allocation70_spill] sm:$0xff] }
 0x325   : > { %6094 = vst.msk [vmem:[%s8221_s11 + $0x18] sm:$0xf] %vm6087_vm10, %v7250_v34  ;;  %v5503_v29 = vadd.f32 %v5400_v15, %v5142_v23  ;;  %v7681_v27 = vpop.f32.mrf.mxu1  ;;  %v7715_v10 = vpop.f32.mrf.mxu0  ;;  %v4788_v19 = vadd.f32 %v10788_v63, %v10680_v28  ;;  %v5152_v5 = vadd.f32 %v10786_v52, %v4790_v6  ;;  %v11572_v23 = vld [vmem:[#allocation85_spill] sm:$0xff] }
 0x326   : > { %6092 = vst.msk [vmem:[%s8221_s11 + $0x10] sm:$0xf] %vm6087_vm10, %v7248_v31  ;;  %v7251_v32 = vpack.c.bf16 %v5934_v42, %v5934_v42  ;;  %v5932_v59 = vmax.f32 %v5900_v21, 0.0  ;;  %v5905_v47 = vadd.f32 %v10859_v30, %v5866_v61  ;;  %v5506_v16 = vadd.f32 %v7681_v27, %v5145_v45  ;;  %v11574_v27 = vld [vmem:[#allocation86_spill] sm:$0xff] }
 0x327   : > { %v5864_v62 = vadd.f32 %v5761_v4, %v5503_v29  ;;  %v5403_v0 = vpop.f32.mrf.mxu1  ;;  %v5764_v60 = vpop.f32.mrf.mxu0  ;;  %v4791_v22 = vadd.f32 %v11572_v23, %v11571_v18  ;;  %v11573_v4 = vld [vmem:[#allocation84_spill] sm:$0xff] }
 0x328   : > { %6095 = vst.msk [vmem:[%s8221_s11 + $0x1c] sm:$0xf] %vm6087_vm10, %v7251_v32  ;;  %v7249_v55 = vpack.c.bf16 %v5932_v59, %v5932_v59  ;;  %v5937_v1 = vmax.f32 %v5905_v47, 0.0  ;;  %v5867_v37 = vadd.f32 %v7715_v10, %v5506_v16  ;;  %v5504_v38 = vadd.f32 %v5403_v0, %v5143_v48  ;;  %v11575_v32 = vld [vmem:[#allocation71_spill] sm:$0xff]  ;;  %v11577_v16 = vld [vmem:[#allocation72_spill] sm:$0xff] }
 0x329   : > { %v5903_v43 = vadd.f32 %v10859_v30, %v5864_v62  ;;  %v7684_v8 = vpop.f32.mrf.mxu1  ;;  %v7718_v51 = vpop.f32.mrf.mxu0  ;;  %v5150_v31 = vadd.f32 %v11573_v4, %v4788_v19  ;;  %v5153_v10 = vadd.f32 %v11574_v27, %v4791_v22  ;;  %v11576_v59 = vld [vmem:[#allocation87_spill] sm:$0xff]  ;;  %v11590_v27 = vld [vmem:[#allocation76_spill] sm:$0xff] }
 0x32a   : > { %6093 = vst.msk [vmem:[%s8221_s11 + $0x14] sm:$0xf] %vm6087_vm10, %v7249_v55  ;;  %v7254_v12 = vpack.c.bf16 %v5937_v1, %v5937_v1  ;;  %v5906_v2 = vadd.f32 %v10859_v30, %v5867_v37  ;;  %v5865_v46 = vadd.f32 %v5764_v60, %v5504_v38  ;;  %v5509_v44 = vadd.f32 %v7684_v8, %v5148_v36  ;;  %v11578_v36 = vld [vmem:[#allocation89_spill] sm:$0xff] }
 0x32b   : > { %v5935_v35 = vmax.f32 %v5903_v43, 0.0  ;;  %v5416_v7 = vpop.f32.mrf.mxu1  ;;  %v5777_v25 = vpop.f32.mrf.mxu0  ;;  %v4789_v47 = vadd.f32 %v11576_v59, %v11575_v32  ;;  %v4794_v62 = vadd.f32 %v11578_v36, %v11577_v16  ;;  %v4792_v43 = vadd.f32 %v11580_v49, %v11579_v9  ;;  %v11592_v59 = vld [vmem:[#allocation77_spill] sm:$0xff] }
 0x32c   : > { %6098 = vst.msk [vmem:[%s8221_s11 + $0x28] sm:$0xf] %vm6087_vm10, %v7254_v12  ;;  %v5938_v17 = vmax.f32 %v5906_v2, 0.0  ;;  %v5904_v41 = vadd.f32 %v10859_v30, %v5865_v46  ;;  %v5870_v50 = vadd.f32 %v7718_v51, %v5509_v44  ;;  %v5507_v33 = vadd.f32 %v5416_v7, %v5146_v11 }
 0x32d   : > { %v7252_v58 = vpack.c.bf16 %v5935_v35, %v5935_v35  ;;  %v7685_v56 = vpop.f32.mrf.mxu1  ;;  %v7719_v13 = vpop.f32.mrf.mxu0  ;;  %v11581_v35 = vld [vmem:[#allocation88_spill] sm:$0xff] }
 0x32e   : > { %v7255_v26 = vpack.c.bf16 %v5938_v17, %v5938_v17  ;;  %v5936_v57 = vmax.f32 %v5904_v41, 0.0  ;;  %v5909_v14 = vadd.f32 %v10859_v30, %v5870_v50  ;;  %v5868_v39 = vadd.f32 %v5777_v25, %v5507_v33  ;;  %v11582_v25 = vld [vmem:[#allocation90_spill] sm:$0xff]  ;;  %v11584_v50 = vld [vmem:[#allocation93_spill] sm:$0xff] }
 0x32f   : > { %6096 = vst.msk [vmem:[%s8221_s11 + $0x20] sm:$0xf] %vm6087_vm10, %v7252_v58  ;;  %v5510_v40 = vadd.f32 %v7685_v56, %v5149_v24  ;;  %v5419_v45 = vpop.f32.mrf.mxu1  ;;  %v5780_v20 = vpop.f32.mrf.mxu0  ;;  %v5151_v7 = vadd.f32 %v11581_v35, %v4789_v47  ;;  %v5156_v17 = vadd.f32 %v11582_v25, %v4794_v62  ;;  %v11583_v41 = vld [vmem:[#allocation74_spill] sm:$0xff]  ;;  %v11593_v47 = vld [vmem:[#allocation99_spill] sm:$0xff]  ;;  %v11597_v35 = vld [vmem:[#allocation100_spill] sm:$0xff] }
 0x330   : > { %6099 = vst.msk [vmem:[%s8221_s11 + $0x2c] sm:$0xf] %vm6087_vm10, %v7255_v26  ;;  %v7253_v28 = vpack.c.bf16 %v5936_v57, %v5936_v57  ;;  %v5941_v63 = vmax.f32 %v5909_v14, 0.0  ;;  %v5907_v34 = vadd.f32 %v10859_v30, %v5868_v39  ;;  %v5508_v15 = vadd.f32 %v5419_v45, %v5147_v54  ;;  %v11585_v57 = vld [vmem:[#allocation92_spill] sm:$0xff]  ;;  %v11586_v39 = vld [vmem:[#allocation75_spill] sm:$0xff] }
 0x331   : > { %v5871_v42 = vadd.f32 %v7719_v13, %v5510_v40  ;;  %v7688_v52 = vpop.f32.mrf.mxu1  ;;  %v7722_v21 = vpop.f32.mrf.mxu0  ;;  %v4795_v33 = vadd.f32 %v11584_v50, %v11583_v41  ;;  %v5154_v14 = vadd.f32 %v11585_v57, %v4792_v43  ;;  %v4796_v16 = vadd.f32 %v11593_v47, %v11592_v59  ;;  %v11598_v25 = vld [vmem:[#allocation79_spill] sm:$0xff]  ;;  %v11601_v57 = vld [vmem:[#allocation80_spill] sm:$0xff] }
 0x332   : > { %6097 = vst.msk [vmem:[%s8221_s11 + $0x24] sm:$0xf] %vm6087_vm10, %v7253_v28  ;;  %v7258_v61 = vpack.c.bf16 %v5941_v63, %v5941_v63  ;;  %v5939_v48 = vmax.f32 %v5907_v34, 0.0  ;;  %v5869_v3 = vadd.f32 %v5780_v20, %v5508_v15  ;;  %v5513_v29 = vadd.f32 %v7688_v52, %v5152_v5  ;;  %v11587_v5 = vld [vmem:[#allocation95_spill] sm:$0xff]  ;;  %v11588_v34 = vld [vmem:[#allocation94_spill] sm:$0xff] }
 0x333   : > { %v5910_v0 = vadd.f32 %v10859_v30, %v5871_v42  ;;  %v5432_v60 = vpop.f32.mrf.mxu1  ;;  %v5793_v55 = vpop.f32.mrf.mxu0  ;;  %v4793_v18 = vadd.f32 %v11587_v5, %v11586_v39  ;;  %v5157_v15 = vadd.f32 %v11588_v34, %v4795_v33 }
 0x334   : > { %6102 = vst.msk [vmem:[%s8221_s11 + $0x38] sm:$0xf] %vm6087_vm10, %v7258_v61  ;;  %v7256_v1 = vpack.c.bf16 %v5939_v48, %v5939_v48  ;;  %v5908_v37 = vadd.f32 %v10859_v30, %v5869_v3  ;;  %v5874_v38 = vadd.f32 %v7722_v21, %v5513_v29  ;;  %v5511_v11 = vadd.f32 %v5432_v60, %v5150_v31  ;;  %v11589_v3 = vld [vmem:[#allocation96_spill] sm:$0xff] }
 0x335   : > { %v5942_v8 = vmax.f32 %v5910_v0, 0.0  ;;  %v7689_v51 = vpop.f32.mrf.mxu1  ;;  %v7723_v12 = vpop.f32.mrf.mxu0  ;;  %v5155_v29 = vadd.f32 %v11589_v3, %v4793_v18  ;;  %v11605_v3 = vld [vmem:[#allocation81_spill] sm:$0xff] }
 0x336   : > { %6100 = vst.msk [vmem:[%s8221_s11 + $0x30] sm:$0xf] %vm6087_vm10, %v7256_v1  ;;  %v5940_v2 = vmax.f32 %v5908_v37, 0.0  ;;  %v5913_v46 = vadd.f32 %v10859_v30, %v5874_v38  ;;  %v5872_v44 = vadd.f32 %v5793_v55, %v5511_v11  ;;  %v5514_v6 = vadd.f32 %v7689_v51, %v5153_v10  ;;  %v11591_v10 = vld [vmem:[#allocation97_spill] sm:$0xff]  ;;  %v11594_v38 = vld [vmem:[#allocation78_spill] sm:$0xff] }
 0x337   : > { %v7259_v24 = vpack.c.bf16 %v5942_v8, %v5942_v8  ;;  %v5435_v54 = vpop.f32.mrf.mxu1  ;;  %v5796_v19 = vpop.f32.mrf.mxu0  ;;  %v4798_v32 = vadd.f32 %v11591_v10, %v11590_v27  ;;  %v11595_v11 = vld [vmem:[#allocation101_spill] sm:$0xff]  ;;  %v11607_v10 = vld [vmem:[#allocation82_spill] sm:$0xff] }
 0x338   : > { %v7257_v58 = vpack.c.bf16 %v5940_v2, %v5940_v2  ;;  %v5945_v56 = vmax.f32 %v5913_v46, 0.0  ;;  %v5911_v13 = vadd.f32 %v10859_v30, %v5872_v44  ;;  %v5875_v26 = vadd.f32 %v7723_v12, %v5514_v6  ;;  %v11596_v44 = vld [vmem:[#allocation98_spill] sm:$0xff] }
 0x339   : > { %6103 = vst.msk [vmem:[%s8221_s11 + $0x3c] sm:$0xf] %vm6087_vm10, %v7259_v24  ;;  %v5512_v23 = vadd.f32 %v5435_v54, %v5151_v7  ;;  %v7692_v22 = vpop.f32.mrf.mxu1  ;;  %v7726_v40 = vpop.f32.mrf.mxu0  ;;  %v4799_v9 = vadd.f32 %v11595_v11, %v11594_v38  ;;  %v5160_v6 = vadd.f32 %v11596_v44, %v4798_v32  ;;  %v5158_v7 = vadd.f32 %v11597_v35, %v4796_v16 }
 0x33a   : > { %6101 = vst.msk [vmem:[%s8221_s11 + $0x34] sm:$0xf] %vm6087_vm10, %v7257_v58  ;;  %v7262_v45 = vpack.c.bf16 %v5945_v56, %v5945_v56  ;;  %v5943_v20 = vmax.f32 %v5911_v13, 0.0  ;;  %v5914_v28 = vadd.f32 %v10859_v30, %v5875_v26  ;;  %v5517_v63 = vadd.f32 %v7692_v22, %v5156_v17  ;;  %v11599_v17 = vld [vmem:[#allocation103_spill] sm:$0xff]  ;;  %v11600_v13 = vld [vmem:[#allocation102_spill] sm:$0xff] }
 0x33b   : > { %v5873_v4 = vadd.f32 %v5796_v19, %v5512_v23  ;;  %v5448_v31 = vpop.f32.mrf.mxu1  ;;  %v5809_v42 = vpop.f32.mrf.mxu0  ;;  %v4797_v41 = vadd.f32 %v11599_v17, %v11598_v25  ;;  %v5161_v26 = vadd.f32 %v11600_v13, %v4799_v9  ;;  %v4803_v32 = vadd.f32 %v10841_v53, %v11607_v10 }
 0x33c   : > { %6106 = vst.msk [vmem:[%s8221_s11 + $0x48] sm:$0xf] %vm6087_vm10, %v7262_v45  ;;  %v7260_v52 = vpack.c.bf16 %v5943_v20, %v5943_v20  ;;  %v5946_v21 = vmax.f32 %v5914_v28, 0.0  ;;  %v5878_v61 = vadd.f32 %v7726_v40, %v5517_v63  ;;  %v5515_v48 = vadd.f32 %v5448_v31, %v5154_v14  ;;  %v11602_v14 = vld [vmem:[#allocation105_spill] sm:$0xff]  ;;  %v11603_v28 = vld [vmem:[#allocation104_spill] sm:$0xff] }
 0x33d   : > { %v5912_v36 = vadd.f32 %v10859_v30, %v5873_v4  ;;  %v7693_v62 = vpop.f32.mrf.mxu1  ;;  %v7727_v0 = vpop.f32.mrf.mxu0  ;;  %v4802_v39 = vadd.f32 %v11602_v14, %v11601_v57  ;;  %v5159_v63 = vadd.f32 %v11603_v28, %v4797_v41 }
 0x33e   : > { %6104 = vst.msk [vmem:[%s8221_s11 + $0x40] sm:$0xf] %vm6087_vm10, %v7260_v52  ;;  %v7263_v60 = vpack.c.bf16 %v5946_v21, %v5946_v21  ;;  %v5917_v55 = vadd.f32 %v10859_v30, %v5878_v61  ;;  %v5876_v1 = vadd.f32 %v5809_v42, %v5515_v48  ;;  %v5518_v37 = vadd.f32 %v7693_v62, %v5157_v15  ;;  %v11604_v61 = vld [vmem:[#allocation106_spill] sm:$0xff] }
 0x33f   : > { %v5944_v49 = vmax.f32 %v5912_v36, 0.0  ;;  %v5451_v43 = vpop.f32.mrf.mxu1  ;;  %v5812_v8 = vpop.f32.mrf.mxu0  ;;  %v5164_v48 = vadd.f32 %v11604_v61, %v4802_v39 }
 0x340   : > { %6107 = vst.msk [vmem:[%s8221_s11 + $0x4c] sm:$0xf] %vm6087_vm10, %v7263_v60  ;;  %v5949_v51 = vmax.f32 %v5917_v55, 0.0  ;;  %v5915_v12 = vadd.f32 %v10859_v30, %v5876_v1  ;;  %v5879_v2 = vadd.f32 %v7727_v0, %v5518_v37  ;;  %v5516_v46 = vadd.f32 %v5451_v43, %v5155_v29  ;;  %v11606_v29 = vld [vmem:[#allocation107_spill] sm:$0xff]  ;;  %v11609_v1 = vld [vmem:[#allocation110_spill] sm:$0xff] }
 0x341   : > { %v7261_v50 = vpack.c.bf16 %v5944_v49, %v5944_v49  ;;  %v7696_v33 = vpop.f32.mrf.mxu1  ;;  %v7730_v24 = vpop.f32.mrf.mxu0  ;;  %v4800_v27 = vadd.f32 %v11606_v29, %v11605_v3  ;;  %v11608_v55 = vld [vmem:[#allocation83_spill] sm:$0xff] }
 0x342   : > { %v7266_v54 = vpack.c.bf16 %v5949_v51, %v5949_v51  ;;  %v5947_v19 = vmax.f32 %v5915_v12, 0.0  ;;  %v5918_v58 = vadd.f32 %v10859_v30, %v5879_v2  ;;  %v5877_v56 = vadd.f32 %v5812_v8, %v5516_v46  ;;  %v11610_v51 = vld [vmem:[#allocation108_spill] sm:$0xff]  ;;  %v11611_v2 = vld [vmem:[#allocation109_spill] sm:$0xff] }
 0x343   : > { %6105 = vst.msk [vmem:[%s8221_s11 + $0x44] sm:$0xf] %vm6087_vm10, %v7261_v50  ;;  %v5521_v5 = vadd.f32 %v7696_v33, %v5160_v6  ;;  %v5464_v18 = vpop.f32.mrf.mxu1  ;;  %v5825_v23 = vpop.f32.mrf.mxu0  ;;  %v4801_v37 = vadd.f32 %v11609_v1, %v11608_v55  ;;  %v5162_v12 = vadd.f32 %v11610_v51, %v4800_v27  ;;  %v5165_v46 = vadd.f32 %v11611_v2, %v4803_v32  ;;  %v11612_v50 = vld [vmem:[#allocation111_spill] sm:$0xff] }
 0x344   : > { %6110 = vst.msk [vmem:[%s8221_s11 + $0x58] sm:$0xf] %vm6087_vm10, %v7266_v54  ;;  %v7264_v22 = vpack.c.bf16 %v5947_v19, %v5947_v19  ;;  %v5950_v40 = vmax.f32 %v5918_v58, 0.0  ;;  %v5916_v45 = vadd.f32 %v10859_v30, %v5877_v56  ;;  %v5519_v20 = vadd.f32 %v5464_v18, %v5158_v7 }
 0x345   : > { %v5882_v34 = vadd.f32 %v7730_v24, %v5521_v5  ;;  %v7697_v15 = vpop.f32.mrf.mxu1  ;;  %v7731_v4 = vpop.f32.mrf.mxu0  ;;  %v5163_v33 = vadd.f32 %v11612_v50, %v4801_v37 }
 0x346   : > { %6108 = vst.msk [vmem:[%s8221_s11 + $0x50] sm:$0xf] %vm6087_vm10, %v7264_v22  ;;  %v7267_v31 = vpack.c.bf16 %v5950_v40, %v5950_v40  ;;  %v5948_v42 = vmax.f32 %v5916_v45, 0.0  ;;  %v5880_v52 = vadd.f32 %v5825_v23, %v5519_v20  ;;  %v5522_v21 = vadd.f32 %v7697_v15, %v5161_v26 }
 0x347   : > { %v5921_v59 = vadd.f32 %v10859_v30, %v5882_v34  ;;  %v5467_v47 = vpop.f32.mrf.mxu1  ;;  %v5828_v16 = vpop.f32.mrf.mxu0 }
 0x348   : > { %6111 = vst.msk [vmem:[%s8221_s11 + $0x5c] sm:$0xf] %vm6087_vm10, %v7267_v31  ;;  %v7265_v36 = vpack.c.bf16 %v5948_v42, %v5948_v42  ;;  %v5919_v62 = vadd.f32 %v10859_v30, %v5880_v52  ;;  %v5883_v0 = vadd.f32 %v7731_v4, %v5522_v21  ;;  %v5520_v60 = vadd.f32 %v5467_v47, %v5159_v63 }
 0x349   : > { %v5953_v38 = vmax.f32 %v5921_v59, 0.0  ;;  %v7700_v11 = vpop.f32.mrf.mxu1  ;;  %v7734_v9 = vpop.f32.mrf.mxu0 }
 0x34a   : > { %6109 = vst.msk [vmem:[%s8221_s11 + $0x54] sm:$0xf] %vm6087_vm10, %v7265_v36  ;;  %v5951_v53 = vmax.f32 %v5919_v62, 0.0  ;;  %v5922_v49 = vadd.f32 %v10859_v30, %v5883_v0  ;;  %v5881_v43 = vadd.f32 %v5828_v16, %v5520_v60  ;;  %v5525_v8 = vadd.f32 %v7700_v11, %v5164_v48 }
 0x34b   : > { %v7270_v44 = vpack.c.bf16 %v5953_v38, %v5953_v38  ;;  %v5480_v6 = vpop.f32.mrf.mxu1  ;;  %v5841_v35 = vpop.f32.mrf.mxu0 }
 0x34c   : > { %v7268_v7 = vpack.c.bf16 %v5951_v53, %v5951_v53  ;;  %v5954_v25 = vmax.f32 %v5922_v49, 0.0  ;;  %v5920_v17 = vadd.f32 %v10859_v30, %v5881_v43  ;;  %v5886_v41 = vadd.f32 %v7734_v9, %v5525_v8 }
 0x34d   : > { %6114 = vst.msk [vmem:[%s8221_s11 + $0x68] sm:$0xf] %vm6087_vm10, %v7270_v44  ;;  %v5523_v24 = vadd.f32 %v5480_v6, %v5162_v12  ;;  %v7701_v54 = vpop.f32.mrf.mxu1  ;;  %v7735_v19 = vpop.f32.mrf.mxu0 }
 0x34e   : > { %6112 = vst.msk [vmem:[%s8221_s11 + $0x60] sm:$0xf] %vm6087_vm10, %v7268_v7  ;;  %v7271_v58 = vpack.c.bf16 %v5954_v25, %v5954_v25  ;;  %v5952_v56 = vmax.f32 %v5920_v17, 0.0  ;;  %v5925_v13 = vadd.f32 %v10859_v30, %v5886_v41  ;;  %v5526_v26 = vadd.f32 %v7701_v54, %v5165_v46 }
 0x34f   : > { %v5884_v57 = vadd.f32 %v5841_v35, %v5523_v24  ;;  %v5483_v14 = vpop.f32.mrf.mxu1  ;;  %v5844_v40 = vpop.f32.mrf.mxu0 }
 0x350   : > { %6115 = vst.msk [vmem:[%s8221_s11 + $0x6c] sm:$0xf] %vm6087_vm10, %v7271_v58  ;;  %v7269_v39 = vpack.c.bf16 %v5952_v56, %v5952_v56  ;;  %v5957_v5 = vmax.f32 %v5925_v13, 0.0  ;;  %v5887_v18 = vadd.f32 %v7735_v19, %v5526_v26  ;;  %v5524_v23 = vadd.f32 %v5483_v14, %v5163_v33 }
 0x351   : > { %v5923_v22 = vadd.f32 %v10859_v30, %v5884_v57 }
 0x352   : > { %6113 = vst.msk [vmem:[%s8221_s11 + $0x64] sm:$0xf] %vm6087_vm10, %v7269_v39  ;;  %v7274_v45 = vpack.c.bf16 %v5957_v5, %v5957_v5  ;;  %v5926_v20 = vadd.f32 %v10859_v30, %v5887_v18  ;;  %v5885_v28 = vadd.f32 %v5844_v40, %v5524_v23 }
 0x353   : > { %v5955_v63 = vmax.f32 %v5923_v22, 0.0 }
 0x354   : > { %6118 = vst.msk [vmem:[%s8221_s11 + $0x78] sm:$0xf] %vm6087_vm10, %v7274_v45  ;;  %v5958_v34 = vmax.f32 %v5926_v20, 0.0  ;;  %v5924_v15 = vadd.f32 %v10859_v30, %v5885_v28 }
 0x355   : > { %v7272_v4 = vpack.c.bf16 %v5955_v63, %v5955_v63 }
 0x356   : > { %v7275_v31 = vpack.c.bf16 %v5958_v34, %v5958_v34  ;;  %v5956_v42 = vmax.f32 %v5924_v15, 0.0 }
 0x357   : > { %6116 = vst.msk [vmem:[%s8221_s11 + $0x70] sm:$0xf] %vm6087_vm10, %v7272_v4 }
 0x358   : > { %6119 = vst.msk [vmem:[%s8221_s11 + $0x7c] sm:$0xf] %vm6087_vm10, %v7275_v31  ;;  %v7273_v30 = vpack.c.bf16 %v5956_v42, %v5956_v42 }
 0x35a   : > { %6117 = vst.msk [vmem:[%s8221_s11 + $0x74] sm:$0xf] %vm6087_vm10, %v7273_v30 }
 0x35b   : > { %8034 = shalt.err (!%p8031_p7)
}
 0x35c   : > { %s8035_s4 = scalar_lea.hbm %s11045_s27, 2048  ;;  %s8039_s9 = scalar_lea.hbm %s11109_s3, 16384 }
 0x35d   : > { %p8036_p9 = scmp.ne.s32.totalorder %s11045_s27, %s8035_s4  ;;  %p8040_p12 = scmp.lt.s32.totalorder %s11045_s27, %s11109_s3 }
 0x35e   : > { %p8041_p13 = scmp.lt.s32.totalorder %s8039_s9, %s8035_s4 }
 0x35f   : > { %p8037_p10 = pnand %p8036_p9, %p8191_p3 }
 0x360   : > { %p8042_p0 = por %p8041_p13, %p8040_p12 }
 0x361   : > { %p8038_p11 = pneg %p8037_p10 }
 0x363   : > { %p8043_p1 = pnand %p8042_p0, %p8038_p11 }
 0x365   : > { %8046 = shalt.err (!%p8043_p1)
}
 0x366   : > { %s8118_s15 = smov 64   ;;  %s8119_s21 = smov 4  }
 0x367   : > { %7738 = dma.vmem_to_hbm [thread:$0]  (%p8191_p3), %s11047_s16, 2048, %s11045_s27, %s11055_s28, %s8118_s15, %s8118_s15, %s8119_s21  }
 0x368 PF: > { %p7744_p2 = scmp.ge.s32.totalorder %s8113_s19, 2  ;;  %s6153_s24 = sand.u32 1, %s8085_s12  }
 0x369   : > { %s6154_s5 = scalar_lea.sflag [#allocation4], %s6153_s24 }
 0x36a   : > { %p7741_p4 = pnand %p7744_p2, %p8200_p8 }
 0x36c   : > { %p7742_p5 = pneg %p7741_p4 }
 0x36e   : > { %8080 = dma.done.wait (%p7742_p5), %s6154_s5, 2048  }
 0x36f   : > { %8082 = vsyncadd (%p7742_p5), %s6154_s5, 4294965248  ;;  %s16_s19 = sadd.s32 1, %s8113_s19   ;;  %s11613_s12 = smov %s8089_s13 }
 0x370   : > { %p13_p6 = scmp.ge.s32.totalorder %s16_s19, 10   ;;  %s11614_s13 = smov %s8093_s14 }
 0x371   : > { %s11615_s14 = smov %s8209_s30  ;;  %s11616_s15 = smov %s8105_s17 }
 0x372   : > { %s11617_s16 = smov %s8109_s18  ;;  %s11618_s17 = smov %s11621_s22 }
 0x373   : > { %s11619_s18 = smov %s11625_s23  ;;  %15 = sbr.rel (!%p13_p6) target bundleno = 5 (0x5), region = 98 }
 0x378   :  { %6159 = vsyncpa [#allocation4], 1 }
 0x379   :  { %6161 = vsyncpa [#allocation4 + $0x1], 1 }

</bundles_post_ra>
